<compile_context>
chip_gen: v6e
topology: v6e:2x2x1
jax: 0.10.0
libtpu: 0.0.40
codegen_flags: <defaults>
</compile_context>

<pallas_src>
import functools

import jax
import jax.numpy as jnp
from jax.experimental import pallas as pl
from jax.experimental.pallas import tpu as pltpu


def _round_up(x, m):
    return (x + m - 1) // m * m


def _conv_stats_kernel(x_ref, w_ref, mask_ref, y_ref, sum_ref, sq_ref, *,
                       lout, wp):
    """One image per grid step: 3x3 conv + masked per-channel sum / sumsq."""
    n = pl.program_id(0)

    x = x_ref[0]                                    # (Lin, Cin_p) bf16
    cout_p = w_ref.shape[2]
    acc = jnp.zeros((lout, cout_p), jnp.float32)
    # 3x3 conv as 9 shifted matmuls: output anchor q reads input row
    # q + kh*wp + kw of the margin-padded flat image (all reads in bounds).
    for t in range(9):
        kh, kw = divmod(t, 3)
        off = kh * wp + kw
        acc = acc + jnp.dot(x[off:off + lout, :], w_ref[t],
                            preferred_element_type=jnp.float32)

    y_ref[0] = acc.astype(y_ref.dtype)

    # Batch-norm statistics over *valid* output pixels only (border anchors of
    # the padded grid hold garbage and are masked out / sliced off later).
    m = mask_ref[...]                               # (Lout, 1) f32 in {0,1}
    ym = acc * m
    s1 = jnp.sum(ym, axis=0, keepdims=True)         # (1, Cout_p)  sum(y)
    s2 = jnp.sum(ym * acc, axis=0, keepdims=True)   # (1, Cout_p)  sum(y^2)

    @pl.when(n == 0)
    def _():
        sum_ref[...] = jnp.zeros_like(sum_ref)
        sq_ref[...] = jnp.zeros_like(sq_ref)

    sum_ref[...] += s1
    sq_ref[...] += s2


def _bn_act_kernel(y_ref, sum_ref, sq_ref, gamma_ref, beta_ref, alpha_ref,
                   o_ref, *, act, eps, count):
    """Folded batch-norm affine + activation on one image's conv output."""
    y = y_ref[0]                                    # (Lout, Cout_p) f32
    inv_n = 1.0 / count
    mean = sum_ref[...] * inv_n                     # (1, Cout_p)
    # Single-pass E[y^2] - mean^2 with f32 sums (bf16 only fed the matmul);
    # clamp to guard against tiny negative round-off.
    var = jnp.maximum(sq_ref[...] * inv_n - mean * mean, 0.0)
    scale = gamma_ref[...] * jax.lax.rsqrt(var + eps)
    shift = beta_ref[...] - mean * scale            # folded affine
    z = y * scale + shift
    if act == 'relu':
        z = jnp.maximum(z, 0.0)
    elif act == 'prelu':
        z = jnp.where(z > 0.0, z, alpha_ref[...] * z)
    elif act == 'elu':
        z = jnp.where(z > 0.0, z, jnp.exp(jnp.minimum(z, 0.0)) - 1.0)
    else:
        raise ValueError(act)
    o_ref[0] = z.astype(o_ref.dtype)


def luconv2d(x_nchw, conv_w, conv_b, bn_gamma, bn_beta, prelu_alpha,
             act='relu', eps=1e-5):
    """x_nchw: (N, Cin, H, W); conv_w: (Cout, Cin, 3, 3). Returns (N, Cout, H, W)."""
    del conv_b  # exactly cancelled by the batch-norm mean subtraction
    N, Cin, H, W = x_nchw.shape
    Cout = conv_w.shape[0]
    Hq, Wp = H + 2, W + 2            # 1-ring padded spatial grid
    Lout = Hq * Wp                   # conv evaluated on all padded anchors
    margin = Wp + 1                  # zero rows so shifted tap reads stay in-bounds
    Lin = Lout + 2 * margin
    Cin_p = _round_up(Cin, 128)
    Cout_p = _round_up(Cout, 128)

    # --- glue: NHWC, zero-pad ring + channels, flatten spatial, add margin ---
    x_nhwc = jnp.transpose(x_nchw, (0, 2, 3, 1)).astype(jnp.float32)
    xp = jnp.pad(x_nhwc, ((0, 0), (1, 1), (1, 1), (0, Cin_p - Cin)))
    x_flat = xp.reshape(N, Lout, Cin_p)
    x_flat = jnp.pad(x_flat, ((0, 0), (margin, margin), (0, 0)))
    x_flat = x_flat.astype(jnp.bfloat16)

    # per-tap weights: (Cout, Cin, 3, 3) -> (9, Cin_p, Cout_p) bf16
    w_taps = jnp.transpose(conv_w.astype(jnp.float32), (2, 3, 1, 0))
    w_taps = w_taps.reshape(9, Cin, Cout)
    w_taps = jnp.pad(w_taps, ((0, 0), (0, Cin_p - Cin), (0, Cout_p - Cout)))
    w_taps = w_taps.astype(jnp.bfloat16)

    # validity mask over padded anchors (same for every image)
    q = jnp.arange(Lout)
    hq, wq = q // Wp, q % Wp
    mask = (((hq >= 1) & (hq <= H) & (wq >= 1) & (wq <= W))
            .astype(jnp.float32).reshape(Lout, 1))

    g2 = jnp.pad(bn_gamma.astype(jnp.float32), (0, Cout_p - Cout),
                 constant_values=1.0).reshape(1, Cout_p)
    be2 = jnp.pad(bn_beta.astype(jnp.float32),
                  (0, Cout_p - Cout)).reshape(1, Cout_p)
    al2 = jnp.pad(prelu_alpha.astype(jnp.float32),
                  (0, Cout_p - Cout)).reshape(1, Cout_p)

    # ---- pass 1: conv (bf16 MXU, f32 acc) + BN sum/sumsq accumulation ----
    k1 = functools.partial(_conv_stats_kernel, lout=Lout, wp=Wp)
    y2d, bn_sum, bn_sq = pl.pallas_call(
        k1,
        out_shape=(jax.ShapeDtypeStruct((N, Lout, Cout_p), jnp.float32),
                   jax.ShapeDtypeStruct((1, Cout_p), jnp.float32),
                   jax.ShapeDtypeStruct((1, Cout_p), jnp.float32)),
        grid_spec=pltpu.PrefetchScalarGridSpec(
            num_scalar_prefetch=0,
            grid=(N,),
            in_specs=[
                pl.BlockSpec((1, Lin, Cin_p), lambda n: (n, 0, 0)),
                pl.BlockSpec((9, Cin_p, Cout_p), lambda n: (0, 0, 0)),
                pl.BlockSpec((Lout, 1), lambda n: (0, 0)),
            ],
            out_specs=(
                pl.BlockSpec((1, Lout, Cout_p), lambda n: (n, 0, 0)),
                pl.BlockSpec((1, Cout_p), lambda n: (0, 0)),
                pl.BlockSpec((1, Cout_p), lambda n: (0, 0)),
            ),
        ),
        compiler_params=pltpu.CompilerParams(
            dimension_semantics=("arbitrary",)),   # stats accumulate across images
    )(x_flat, w_taps, mask)

    # ---- pass 2: folded BN affine + activation (lane-dense stores) ----
    k2 = functools.partial(_bn_act_kernel, act=act, eps=eps,
                           count=float(N * H * W))
    out_flat = pl.pallas_call(
        k2,
        out_shape=jax.ShapeDtypeStruct((N, Lout, Cout_p), jnp.float32),
        grid_spec=pltpu.PrefetchScalarGridSpec(
            num_scalar_prefetch=0,
            grid=(N,),
            in_specs=[
                pl.BlockSpec((1, Lout, Cout_p), lambda n: (n, 0, 0)),
                pl.BlockSpec((1, Cout_p), lambda n: (0, 0)),
                pl.BlockSpec((1, Cout_p), lambda n: (0, 0)),
                pl.BlockSpec((1, Cout_p), lambda n: (0, 0)),
                pl.BlockSpec((1, Cout_p), lambda n: (0, 0)),
                pl.BlockSpec((1, Cout_p), lambda n: (0, 0)),
            ],
            out_specs=pl.BlockSpec((1, Lout, Cout_p), lambda n: (n, 0, 0)),
        ),
        compiler_params=pltpu.CompilerParams(
            dimension_semantics=("parallel",)),    # images independent (megacore)
    )(y2d, bn_sum, bn_sq, g2, be2, al2)

    # --- glue: drop padded anchors / channels, back to NCHW ---
    out = out_flat.reshape(N, Hq, Wp, Cout_p)[:, 1:H + 1, 1:W + 1, :Cout]
    return jnp.transpose(out, (0, 3, 1, 2))


def _reference(x_nchw, conv_w, conv_b, bn_gamma, bn_beta, prelu_alpha,
               act='relu', eps=1e-5):
    # conv inputs rounded through bf16 to match the kernel's MXU operand dtype
    xq = x_nchw.astype(jnp.bfloat16).astype(jnp.float32)
    wq = conv_w.astype(jnp.bfloat16).astype(jnp.float32)
    y = jax.lax.conv_general_dilated(
        xq, wq, window_strides=(1, 1), padding='SAME',
        dimension_numbers=('NCHW', 'OIHW', 'NCHW'))
    y = y + conv_b.reshape(1, -1, 1, 1)
    mean = y.mean(axis=(0, 2, 3), keepdims=True)
    var = y.var(axis=(0, 2, 3), keepdims=True)   # biased, like F.batch_norm training
    y = (y - mean) / jnp.sqrt(var + eps)
    y = y * bn_gamma.reshape(1, -1, 1, 1) + bn_beta.reshape(1, -1, 1, 1)
    if act == 'relu':
        y = jnp.maximum(y, 0.0)
    elif act == 'prelu':
        a = prelu_alpha.reshape(1, -1, 1, 1)
        y = jnp.where(y > 0, y, a * y)
    else:
        y = jnp.where(y > 0, y, jnp.exp(jnp.minimum(y, 0.0)) - 1.0)
    return y


if __name__ == "__main__":
    N, Cin, H, W = 2, 4, 16, 16
    Cout = 8
    act = 'relu'

    key = jax.random.PRNGKey(0)
    kx, kw, kb, kg, kbe = jax.random.split(key, 5)

    x = jax.random.normal(kx, (N, Cin, H, W), dtype=jnp.float32)
    conv_w = 0.1 * jax.random.normal(kw, (Cout, Cin, 3, 3), dtype=jnp.float32)
    conv_b = 0.1 * jax.random.normal(kb, (Cout,), dtype=jnp.float32)
    bn_gamma = 1.0 + 0.1 * jax.random.normal(kg, (Cout,), dtype=jnp.float32)
    bn_beta = 0.1 * jax.random.normal(kbe, (Cout,), dtype=jnp.float32)
    prelu_alpha = jnp.full((Cout,), 0.25, dtype=jnp.float32)  # torch PReLU default

    out = luconv2d(x, conv_w, conv_b, bn_gamma, bn_beta, prelu_alpha, act=act)
    out = jax.block_until_ready(out)

    ref = _reference(x, conv_w, conv_b, bn_gamma, bn_beta, prelu_alpha, act=act)
    assert out.shape == (N, Cout, H, W)
    err = float(jnp.max(jnp.abs(out - ref)))
    assert jnp.allclose(out, ref, atol=5e-3, rtol=5e-3), err

    print("KERNEL_OK")
</pallas_src>

<mosaic_0001>
module attributes {stable_mosaic.version = 11 : i64} {
  func.func @_conv_stats_kernel(%arg0: i32, %arg1: memref<1x362x128xbf16, #tpu.memory_space<vmem>>, %arg2: memref<9x128x128xbf16, #tpu.memory_space<vmem>>, %arg3: memref<324x1xf32, #tpu.memory_space<vmem>>, %arg4: memref<1x324x128xf32, #tpu.memory_space<vmem>>, %arg5: memref<1x128xf32, #tpu.memory_space<vmem>>, %arg6: memref<1x128xf32, #tpu.memory_space<vmem>>) attributes {dimension_semantics = [#tpu.dimension_semantics<arbitrary>], iteration_bounds = array<i64: 2>, scalar_prefetch = 0 : i64, scratch_operands = 0 : i64, tpu.core_type = #tpu.core_type<tc>, window_params = [{transform_indices = @transform_0, window_bounds = array<i64: 1, 362, 128>}, {pipeline_mode = #tpu.pipeline_mode<synchronous>, transform_indices = @transform_1, window_bounds = array<i64: 9, 128, 128>}, {pipeline_mode = #tpu.pipeline_mode<synchronous>, transform_indices = @transform_2, window_bounds = array<i64: 324, 1>}, {transform_indices = @transform_3, window_bounds = array<i64: 1, 324, 128>}, {pipeline_mode = #tpu.pipeline_mode<synchronous>, transform_indices = @transform_4, window_bounds = array<i64: 1, 128>}, {pipeline_mode = #tpu.pipeline_mode<synchronous>, transform_indices = @transform_5, window_bounds = array<i64: 1, 128>}]} {
    %c0 = arith.constant 0 : index
    %c0_0 = arith.constant 0 : index
    %c0_1 = arith.constant 0 : index
    %0 = vector.load %arg1[%c0, %c0_0, %c0_1] : memref<1x362x128xbf16, #tpu.memory_space<vmem>>, vector<1x362x128xbf16>
    %1 = vector.shape_cast %0 : vector<1x362x128xbf16> to vector<362x128xbf16>
    %cst = arith.constant 0.000000e+00 : f32
    %2 = vector.broadcast %cst : f32 to vector<324x128xf32>
    %3 = vector.extract_strided_slice %1 {offsets = [0, 0], sizes = [324, 128], strides = [1, 1]} : vector<362x128xbf16> to vector<324x128xbf16>
    %c0_2 = arith.constant 0 : index
    %c0_3 = arith.constant 0 : index
    %c0_4 = arith.constant 0 : index
    %4 = vector.load %arg2[%c0_2, %c0_3, %c0_4] : memref<9x128x128xbf16, #tpu.memory_space<vmem>>, vector<1x128x128xbf16>
    %5 = vector.shape_cast %4 : vector<1x128x128xbf16> to vector<128x128xbf16>
    %cst_5 = arith.constant dense<0.000000e+00> : vector<324x128xf32>
    %6 = tpu.matmul %3, %5, %cst_5 {dimension_numbers = #tpu.dot_dimension_numbers<[1], [0], [0], [1], [0, 0, 1, 1], [], []>} : vector<324x128xbf16>, vector<128x128xbf16>, vector<324x128xf32> -> vector<324x128xf32>
    %7 = arith.addf %2, %6 : vector<324x128xf32>
    %8 = vector.extract_strided_slice %1 {offsets = [1, 0], sizes = [324, 128], strides = [1, 1]} : vector<362x128xbf16> to vector<324x128xbf16>
    %c1 = arith.constant 1 : index
    %c0_6 = arith.constant 0 : index
    %c0_7 = arith.constant 0 : index
    %9 = vector.load %arg2[%c1, %c0_6, %c0_7] : memref<9x128x128xbf16, #tpu.memory_space<vmem>>, vector<1x128x128xbf16>
    %10 = vector.shape_cast %9 : vector<1x128x128xbf16> to vector<128x128xbf16>
    %cst_8 = arith.constant dense<0.000000e+00> : vector<324x128xf32>
    %11 = tpu.matmul %8, %10, %cst_8 {dimension_numbers = #tpu.dot_dimension_numbers<[1], [0], [0], [1], [0, 0, 1, 1], [], []>} : vector<324x128xbf16>, vector<128x128xbf16>, vector<324x128xf32> -> vector<324x128xf32>
    %12 = arith.addf %7, %11 : vector<324x128xf32>
    %13 = vector.extract_strided_slice %1 {offsets = [2, 0], sizes = [324, 128], strides = [1, 1]} : vector<362x128xbf16> to vector<324x128xbf16>
    %c2 = arith.constant 2 : index
    %c0_9 = arith.constant 0 : index
    %c0_10 = arith.constant 0 : index
    %14 = vector.load %arg2[%c2, %c0_9, %c0_10] : memref<9x128x128xbf16, #tpu.memory_space<vmem>>, vector<1x128x128xbf16>
    %15 = vector.shape_cast %14 : vector<1x128x128xbf16> to vector<128x128xbf16>
    %cst_11 = arith.constant dense<0.000000e+00> : vector<324x128xf32>
    %16 = tpu.matmul %13, %15, %cst_11 {dimension_numbers = #tpu.dot_dimension_numbers<[1], [0], [0], [1], [0, 0, 1, 1], [], []>} : vector<324x128xbf16>, vector<128x128xbf16>, vector<324x128xf32> -> vector<324x128xf32>
    %17 = arith.addf %12, %16 : vector<324x128xf32>
    %18 = vector.extract_strided_slice %1 {offsets = [18, 0], sizes = [324, 128], strides = [1, 1]} : vector<362x128xbf16> to vector<324x128xbf16>
    %c3 = arith.constant 3 : index
    %c0_12 = arith.constant 0 : index
    %c0_13 = arith.constant 0 : index
    %19 = vector.load %arg2[%c3, %c0_12, %c0_13] : memref<9x128x128xbf16, #tpu.memory_space<vmem>>, vector<1x128x128xbf16>
    %20 = vector.shape_cast %19 : vector<1x128x128xbf16> to vector<128x128xbf16>
    %cst_14 = arith.constant dense<0.000000e+00> : vector<324x128xf32>
    %21 = tpu.matmul %18, %20, %cst_14 {dimension_numbers = #tpu.dot_dimension_numbers<[1], [0], [0], [1], [0, 0, 1, 1], [], []>} : vector<324x128xbf16>, vector<128x128xbf16>, vector<324x128xf32> -> vector<324x128xf32>
    %22 = arith.addf %17, %21 : vector<324x128xf32>
    %23 = vector.extract_strided_slice %1 {offsets = [19, 0], sizes = [324, 128], strides = [1, 1]} : vector<362x128xbf16> to vector<324x128xbf16>
    %c4 = arith.constant 4 : index
    %c0_15 = arith.constant 0 : index
    %c0_16 = arith.constant 0 : index
    %24 = vector.load %arg2[%c4, %c0_15, %c0_16] : memref<9x128x128xbf16, #tpu.memory_space<vmem>>, vector<1x128x128xbf16>
    %25 = vector.shape_cast %24 : vector<1x128x128xbf16> to vector<128x128xbf16>
    %cst_17 = arith.constant dense<0.000000e+00> : vector<324x128xf32>
    %26 = tpu.matmul %23, %25, %cst_17 {dimension_numbers = #tpu.dot_dimension_numbers<[1], [0], [0], [1], [0, 0, 1, 1], [], []>} : vector<324x128xbf16>, vector<128x128xbf16>, vector<324x128xf32> -> vector<324x128xf32>
    %27 = arith.addf %22, %26 : vector<324x128xf32>
    %28 = vector.extract_strided_slice %1 {offsets = [20, 0], sizes = [324, 128], strides = [1, 1]} : vector<362x128xbf16> to vector<324x128xbf16>
    %c5 = arith.constant 5 : index
    %c0_18 = arith.constant 0 : index
    %c0_19 = arith.constant 0 : index
    %29 = vector.load %arg2[%c5, %c0_18, %c0_19] : memref<9x128x128xbf16, #tpu.memory_space<vmem>>, vector<1x128x128xbf16>
    %30 = vector.shape_cast %29 : vector<1x128x128xbf16> to vector<128x128xbf16>
    %cst_20 = arith.constant dense<0.000000e+00> : vector<324x128xf32>
    %31 = tpu.matmul %28, %30, %cst_20 {dimension_numbers = #tpu.dot_dimension_numbers<[1], [0], [0], [1], [0, 0, 1, 1], [], []>} : vector<324x128xbf16>, vector<128x128xbf16>, vector<324x128xf32> -> vector<324x128xf32>
    %32 = arith.addf %27, %31 : vector<324x128xf32>
    %33 = vector.extract_strided_slice %1 {offsets = [36, 0], sizes = [324, 128], strides = [1, 1]} : vector<362x128xbf16> to vector<324x128xbf16>
    %c6 = arith.constant 6 : index
    %c0_21 = arith.constant 0 : index
    %c0_22 = arith.constant 0 : index
    %34 = vector.load %arg2[%c6, %c0_21, %c0_22] : memref<9x128x128xbf16, #tpu.memory_space<vmem>>, vector<1x128x128xbf16>
    %35 = vector.shape_cast %34 : vector<1x128x128xbf16> to vector<128x128xbf16>
    %cst_23 = arith.constant dense<0.000000e+00> : vector<324x128xf32>
    %36 = tpu.matmul %33, %35, %cst_23 {dimension_numbers = #tpu.dot_dimension_numbers<[1], [0], [0], [1], [0, 0, 1, 1], [], []>} : vector<324x128xbf16>, vector<128x128xbf16>, vector<324x128xf32> -> vector<324x128xf32>
    %37 = arith.addf %32, %36 : vector<324x128xf32>
    %38 = vector.extract_strided_slice %1 {offsets = [37, 0], sizes = [324, 128], strides = [1, 1]} : vector<362x128xbf16> to vector<324x128xbf16>
    %c7 = arith.constant 7 : index
    %c0_24 = arith.constant 0 : index
    %c0_25 = arith.constant 0 : index
    %39 = vector.load %arg2[%c7, %c0_24, %c0_25] : memref<9x128x128xbf16, #tpu.memory_space<vmem>>, vector<1x128x128xbf16>
    %40 = vector.shape_cast %39 : vector<1x128x128xbf16> to vector<128x128xbf16>
    %cst_26 = arith.constant dense<0.000000e+00> : vector<324x128xf32>
    %41 = tpu.matmul %38, %40, %cst_26 {dimension_numbers = #tpu.dot_dimension_numbers<[1], [0], [0], [1], [0, 0, 1, 1], [], []>} : vector<324x128xbf16>, vector<128x128xbf16>, vector<324x128xf32> -> vector<324x128xf32>
    %42 = arith.addf %37, %41 : vector<324x128xf32>
    %43 = vector.extract_strided_slice %1 {offsets = [38, 0], sizes = [324, 128], strides = [1, 1]} : vector<362x128xbf16> to vector<324x128xbf16>
    %c8 = arith.constant 8 : index
    %c0_27 = arith.constant 0 : index
    %c0_28 = arith.constant 0 : index
    %44 = vector.load %arg2[%c8, %c0_27, %c0_28] : memref<9x128x128xbf16, #tpu.memory_space<vmem>>, vector<1x128x128xbf16>
    %45 = vector.shape_cast %44 : vector<1x128x128xbf16> to vector<128x128xbf16>
    %cst_29 = arith.constant dense<0.000000e+00> : vector<324x128xf32>
    %46 = tpu.matmul %43, %45, %cst_29 {dimension_numbers = #tpu.dot_dimension_numbers<[1], [0], [0], [1], [0, 0, 1, 1], [], []>} : vector<324x128xbf16>, vector<128x128xbf16>, vector<324x128xf32> -> vector<324x128xf32>
    %47 = arith.addf %42, %46 : vector<324x128xf32>
    %c0_30 = arith.constant 0 : index
    %c0_31 = arith.constant 0 : index
    %c0_32 = arith.constant 0 : index
    %48 = vector.load %arg4[%c0_30, %c0_31, %c0_32] : memref<1x324x128xf32, #tpu.memory_space<vmem>>, vector<1x324x128xf32>
    %49 = vector.shape_cast %48 : vector<1x324x128xf32> to vector<324x128xf32>
    %50 = vector.shape_cast %47 : vector<324x128xf32> to vector<1x324x128xf32>
    tpu.vector_store %arg4[%c0_30, %c0_31, %c0_32], %50 {strides = array<i32>} : memref<1x324x128xf32, #tpu.memory_space<vmem>>, vector<1x324x128xf32>,
    %c0_33 = arith.constant 0 : index
    %c0_34 = arith.constant 0 : index
    %51 = vector.load %arg3[%c0_33, %c0_34] : memref<324x1xf32, #tpu.memory_space<vmem>>, vector<324x1xf32>
    %52 = vector.broadcast %51 : vector<324x1xf32> to vector<324x128xf32>
    %53 = arith.mulf %47, %52 : vector<324x128xf32>
    %cst_35 = arith.constant dense<0.000000e+00> : vector<128xf32>
    %54 = vector.multi_reduction <add>, %53, %cst_35 [0] : vector<324x128xf32> to vector<128xf32>
    %55 = vector.shape_cast %54 : vector<128xf32> to vector<1x128xf32>
    %56 = arith.mulf %53, %47 : vector<324x128xf32>
    %cst_36 = arith.constant dense<0.000000e+00> : vector<128xf32>
    %57 = vector.multi_reduction <add>, %56, %cst_36 [0] : vector<324x128xf32> to vector<128xf32>
    %58 = vector.shape_cast %57 : vector<128xf32> to vector<1x128xf32>
    %c0_i32 = arith.constant 0 : i32
    %59 = arith.cmpi eq, %arg0, %c0_i32 : i32
    %60 = arith.extui %59 : i1 to i32
    %c0_i32_37 = arith.constant 0 : i32
    %61 = arith.cmpi ne, %60, %c0_i32_37 : i32
    scf.if %61 {
      %cst_46 = arith.constant 0.000000e+00 : f32
      %68 = vector.broadcast %cst_46 : f32 to vector<1x128xf32>
      %c0_47 = arith.constant 0 : index
      %c0_48 = arith.constant 0 : index
      %69 = vector.load %arg5[%c0_47, %c0_48] : memref<1x128xf32, #tpu.memory_space<vmem>>, vector<1x128xf32>
      tpu.vector_store %arg5[%c0_47, %c0_48], %68 {strides = array<i32>} : memref<1x128xf32, #tpu.memory_space<vmem>>, vector<1x128xf32>,
      %cst_49 = arith.constant 0.000000e+00 : f32
      %70 = vector.broadcast %cst_49 : f32 to vector<1x128xf32>
      %c0_50 = arith.constant 0 : index
      %c0_51 = arith.constant 0 : index
      %71 = vector.load %arg6[%c0_50, %c0_51] : memref<1x128xf32, #tpu.memory_space<vmem>>, vector<1x128xf32>
      tpu.vector_store %arg6[%c0_50, %c0_51], %70 {strides = array<i32>} : memref<1x128xf32, #tpu.memory_space<vmem>>, vector<1x128xf32>,
    } else {
    }
    %c0_38 = arith.constant 0 : index
    %c0_39 = arith.constant 0 : index
    %62 = vector.load %arg5[%c0_38, %c0_39] : memref<1x128xf32, #tpu.memory_space<vmem>>, vector<1x128xf32>
    %63 = arith.addf %62, %55 : vector<1x128xf32>
    %c0_40 = arith.constant 0 : index
    %c0_41 = arith.constant 0 : index
    %64 = vector.load %arg5[%c0_40, %c0_41] : memref<1x128xf32, #tpu.memory_space<vmem>>, vector<1x128xf32>
    tpu.vector_store %arg5[%c0_40, %c0_41], %63 {strides = array<i32>} : memref<1x128xf32, #tpu.memory_space<vmem>>, vector<1x128xf32>,
    %c0_42 = arith.constant 0 : index
    %c0_43 = arith.constant 0 : index
    %65 = vector.load %arg6[%c0_42, %c0_43] : memref<1x128xf32, #tpu.memory_space<vmem>>, vector<1x128xf32>
    %66 = arith.addf %65, %58 : vector<1x128xf32>
    %c0_44 = arith.constant 0 : index
    %c0_45 = arith.constant 0 : index
    %67 = vector.load %arg6[%c0_44, %c0_45] : memref<1x128xf32, #tpu.memory_space<vmem>>, vector<1x128xf32>
    tpu.vector_store %arg6[%c0_44, %c0_45], %66 {strides = array<i32>} : memref<1x128xf32, #tpu.memory_space<vmem>>, vector<1x128xf32>,
    return
  }
  func.func @transform_0(%arg0: i32) -> (i32, i32, i32) {
    %c0_i32 = arith.constant 0 : i32
    %c0_i32_0 = arith.constant 0 : i32
    %c0_i32_1 = arith.constant 0 : i32
    return %arg0, %c0_i32, %c0_i32_0 : i32, i32, i32
  }
  func.func @transform_1(%arg0: i32) -> (i32, i32, i32) {
    %c0_i32 = arith.constant 0 : i32
    %c0_i32_0 = arith.constant 0 : i32
    %c0_i32_1 = arith.constant 0 : i32
    %c0_i32_2 = arith.constant 0 : i32
    return %c0_i32, %c0_i32_0, %c0_i32_1 : i32, i32, i32
  }
  func.func @transform_2(%arg0: i32) -> (i32, i32) {
    %c0_i32 = arith.constant 0 : i32
    %c0_i32_0 = arith.constant 0 : i32
    %c0_i32_1 = arith.constant 0 : i32
    return %c0_i32, %c0_i32_0 : i32, i32
  }
  func.func @transform_3(%arg0: i32) -> (i32, i32, i32) {
    %c0_i32 = arith.constant 0 : i32
    %c0_i32_0 = arith.constant 0 : i32
    %c0_i32_1 = arith.constant 0 : i32
    return %arg0, %c0_i32, %c0_i32_0 : i32, i32, i32
  }
  func.func @transform_4(%arg0: i32) -> (i32, i32) {
    %c0_i32 = arith.constant 0 : i32
    %c0_i32_0 = arith.constant 0 : i32
    %c0_i32_1 = arith.constant 0 : i32
    return %c0_i32, %c0_i32_0 : i32, i32
  }
  func.func @transform_5(%arg0: i32) -> (i32, i32) {
    %c0_i32 = arith.constant 0 : i32
    %c0_i32_0 = arith.constant 0 : i32
    %c0_i32_1 = arith.constant 0 : i32
    return %c0_i32, %c0_i32_0 : i32, i32
  }
}

</mosaic_0001>

<bundles_post_ra>
// kernel: tpu_custom_call.1
= control target key start
LH: loop header
LB: loop body
LE: loop exit
PB: predicated region body
PF: predicated region fallthrough
CT: control target
= control target key end

     0   :  { %11 = vsyncpa [#allocation3], 0  ;;  %s8003_s0 = inlined_call_operand.vmem [shape: bf16[2,362,128], index: 0, kind: input, shape index: {}]   ;;  %s8004_s1 = inlined_call_operand.vmem [shape: bf16[9,128,128], index: 1, kind: input, shape index: {}]   ;;  %s8005_s2 = inlined_call_operand.vmem [shape: f32[324,1], index: 2, kind: input, shape index: {}]   ;;  %s8006_s3 = inlined_call_operand.vmem [shape: f32[2,324,128], index: 3, kind: output, shape index: {0}]   ;;  %s8007_s4 = inlined_call_operand.hbm [shape: f32[1,128], index: 4, kind: output, shape index: {1}]   ;;  %s8008_s5 = inlined_call_operand.hbm [shape: f32[1,128], index: 5, kind: output, shape index: {2}]  }
   0x1   :  { %12 = vsyncpa [#allocation5], 0  ;;  %s5950_s18 = smov 0  }
   0x2 LB: > { %s5956_s19 = sadd.s32 4294967295, %s5912_s18   ;;  %p4282_p0 = scmp.ge.s32.totalorder %s5912_s18, 1  ;;  %s5912_s18 = sphi %s5950_s18, %s18_s18  }
   0x3   : > { %p184_p1 = scmp.lt.s32.totalorder %s5912_s18, 3 }
   0x5   : > { %p185_p2 = pnand %p4282_p0, %p184_p1 }
   0x7   : > { %188 = sbr.rel (%p185_p2) target bundleno = 1040 (0x410), region = 32 }
   0xc   : > { %v5725_v0 = vld [vmem:[%s8004_s1 + $0x78] sm:$0xff]   ;;  %v8010_v1 = vmov 0.0   ;;  %v5726_v2 = vld [vmem:[%s8004_s1 + $0x70] sm:$0xff]   ;;  %p212_p3 = scmp.lt.s32.totalorder %s5956_s19, 1  ;;  %vm5915_vm0 = vmmov 0   ;;  %v5727_v3 = vld [vmem:[%s8004_s1 + $0x68] sm:$0xff]  }
   0xd   : > { %4779 = vmatprep.subr.bf16.mxu0 %v8010_v1  ;;  %5679 = vmatprep.subr.bf16.mxu1 %v8010_v1  ;;  %v5728_v4 = vld [vmem:[%s8004_s1 + $0x60] sm:$0xff]   ;;  %v5729_v8 = vld [vmem:[%s8004_s1 + $0x58] sm:$0xff]   ;;  %v5730_v13 = vld [vmem:[%s8004_s1 + $0x50] sm:$0xff]   ;;  %vm405_vm1 = vsmask.f32 7424  ;;  %vm1128_vm2 = vcmask 1046528  }
   0xe   : > { %4780 = vmatpush3.bf16.msra.mxu0 %v5725_v0  ;;  %5687 = vmatpush3.bf16.msra.mxu1 %v5725_v0  ;;  %s5976_s24 = scalar_select %p212_p3, %s5956_s19, 1  ;;  %v5731_v18 = vld [vmem:[%s8004_s1 + $0x48] sm:$0xff]   ;;  %v5732_v25 = vld [vmem:[%s8004_s1 + $0x40] sm:$0xff]   ;;  %v5737_v31 = vld [vmem:[%s8004_s1 + $0xb8] sm:$0xff]   ;;  %vm1816_vm3 = vsmask.f32 6400 }
   0xf   : > { %4781 = vmatprep.subr.bf16.mxu0 %v8010_v1  ;;  %5680 = vmatprep.subr.bf16.mxu1 %v8010_v1  ;;  %v5738_v37 = vld [vmem:[%s8004_s1 + $0x38] sm:$0xff]   ;;  %v5741_v38 = vld [vmem:[%s8004_s1 + $0xb0] sm:$0xff]   ;;  %v5745_v49 = vld [vmem:[%s8004_s1 + $0xa8] sm:$0xff]   ;;  %vm2237_vm4 = vcmask 1045504   ;;  %vm2928_vm5 = vsmask.f32 5376 }
  0x10   : > { %4795 = vmatprep.mubr.msk.bf16.mxu0 %vm5915_vm0, %v8010_v1  ;;  %4839 = vmatprep.mubr.msk.bf16.mxu1 %vm5915_vm0, %v8010_v1  ;;  %s5695_s27 = smul.u32 184, %s5976_s24  ;;  %v5744_v45 = vld [vmem:[%s8004_s1 + $0x30] sm:$0xff]   ;;  %v5748_v55 = vld [vmem:[%s8004_s1 + $0x28] sm:$0xff]   ;;  %vm3349_vm6 = vcmask 1044480   ;;  %vm4068_vm7 = vcmask 1043456   ;;  %p4511_p4 = scmp.ne.s32.totalorder %s5956_s19, 0 }
  0x12   : > { %4782 = vmatpush3.bf16.msra.mxu0 %v5726_v2  ;;  %5688 = vmatpush3.bf16.msra.mxu1 %v5726_v2  ;;  %s5987_s30 = scalar_lea.vmem %s8003_s0, %s5695_s27  ;;  %v5751_v2 = vld [vmem:[%s8004_s1 + $0xa0] sm:$0xff]  }
  0x13   : > { %4783 = vmatprep.subr.bf16.mxu0 %v8010_v1  ;;  %5681 = vmatprep.subr.bf16.mxu1 %v8010_v1  ;;  %v5993_v5 = vld [vmem:[%s5987_s30 + $0x8] sm:$0xff]   ;;  %v5999_v7 = vld [vmem:[%s5987_s30] sm:$0xff]   ;;  %v6007_v10 = vld [vmem:[%s5987_s30 + $0x58] sm:$0xff]  }
  0x14   : > { %v414_v6 = vshll.u32 %v5993_v5, 16  ;;  %v418_v11 = vshrl.u32 %v5993_v5, 16  ;;  %v409_v14 = vshll.u32 %v5999_v7, 16  ;;  %v6019_v15 = vld [vmem:[%s5987_s30 + $0x60] sm:$0xff]   ;;  %v6022_v16 = vshll.u32 %v6007_v10, 16  ;;  %v6042_v24 = vld [vmem:[%s5987_s30 + $0x10] sm:$0xff]  }
  0x15   : > { %v407_v19 = vshrl.u32 %v5999_v7, 16  ;;  %v6033_v21 = vshrl.u32 %v6007_v10, 16  ;;  %v6037_v23 = vshll.u32 %v6019_v15, 16  ;;  %v6052_v30 = vld [vmem:[%s5987_s30 + $0x68] sm:$0xff]   ;;  %v6060_v32 = vshll.u32 %v6042_v24, 16  ;;  %v6079_v39 = vld [vmem:[%s5987_s30 + $0x18] sm:$0xff]  }
  0x16   : > { %4784 = vmatpush3.bf16.msra.mxu0 %v5727_v3  ;;  %5689 = vmatpush3.bf16.msra.mxu1 %v5727_v3  ;;  %v6004_v9 = vrot.slane %v414_v6, 2  ;;  %v6012_v12 = vrot.slane %v418_v11, 1  ;;  %8074 = vst [vmem:[#allocation8_spill] sm:$0xff] %v6022_v16  ;;  %v411_v20 = vrot.slane %v409_v14, 1  ;;  %v496_v22 = vrot.slane %v6022_v16, 1  ;;  %v6082_v40 = vld [vmem:[%s5987_s30 + $0x70] sm:$0xff]  }
  0x17   : > { %4785 = vmatprep.subr.bf16.mxu0 %v8010_v1  ;;  %5682 = vmatprep.subr.bf16.mxu1 %v8010_v1  ;;  %8075 = vst [vmem:[#allocation9_spill] sm:$0xff] %v6033_v21  ;;  %8076 = vst [vmem:[#allocation10_spill] sm:$0xff] %v6037_v23  ;;  %v416_v27 = vrot.slane %v414_v6, 1  ;;  %v504_v29 = vrot.slane %v6037_v23, 1  ;;  %v6065_v35 = vshrl.u32 %v6019_v15, 16  ;;  %v6068_v36 = vshll.u32 %v6052_v30, 16 }
  0x18   : > { %v412_v26 = vor.u32 %v411_v20, %v407_v19  ;;  %v500_v28 = vor.u32 %v6033_v21, %v496_v22  ;;  %8077 = vst [vmem:[#allocation11_spill] sm:$0xff] %v6060_v32  ;;  %v424_v42 = vrot.slane %v6060_v32, 1  ;;  %v6096_v46 = vshrl.u32 %v6042_v24, 16  ;;  %v6109_v50 = vld [vmem:[%s5987_s30 + $0x20] sm:$0xff]   ;;  %v6117_v54 = vld [vmem:[%s5987_s30 + $0x78] sm:$0xff]   ;;  %v6126_v57 = vld [vmem:[%s5987_s30 + $0x28] sm:$0xff]  }
  0x19   : > { %8078 = vst [vmem:[#allocation12_spill] sm:$0xff] %v6065_v35  ;;  %8079 = vst [vmem:[#allocation13_spill] sm:$0xff] %v6068_v36  ;;  %v420_v41 = vor.u32 %v418_v11, %v416_v27  ;;  %v508_v43 = vor.u32 %v6065_v35, %v504_v29  ;;  %v512_v44 = vrot.slane %v6068_v36, 1  ;;  %v6099_v47 = vshll.u32 %v6079_v39, 16  ;;  %v6142_v63 = vld [vmem:[%s5987_s30 + $0x80] sm:$0xff]   ;;  %v6165_v11 = vld [vmem:[%s5987_s30 + $0x30] sm:$0xff]  }
  0x1a   : > { %4786 = vmatpush3.bf16.msra.mxu0 %v5728_v4  ;;  %5690 = vmatpush3.bf16.msra.mxu1 %v5728_v4  ;;  %v417_v33 = vsel %vm405_vm1, %v412_v26, %v416_v27  ;;  %v505_v34 = vsel %vm405_vm1, %v500_v28, %v504_v29  ;;  %8080 = vst [vmem:[#allocation14_spill] sm:$0xff] %v6096_v46  ;;  %v6103_v48 = vshll.u32 %v6082_v40, 16  ;;  %v6114_v53 = vshrl.u32 %v6052_v30, 16  ;;  %v5752_v3 = vld [vmem:[%s8004_s1 + $0x20] sm:$0xff]   ;;  %v6169_v14 = vld [vmem:[%s5987_s30 + $0x88] sm:$0xff]   ;;  %v5756_v28 = vld [vmem:[%s8004_s1 + $0x18] sm:$0xff]  }
  0x1b   : > { %4787 = vmatprep.subr.bf16.mxu0 %v8010_v1  ;;  %5683 = vmatprep.subr.bf16.mxu1 %v8010_v1  ;;  %8081 = vst [vmem:[#allocation15_spill] sm:$0xff] %v6099_v47  ;;  %v425_v51 = vsel %vm405_vm1, %v420_v41, %v424_v42  ;;  %v513_v52 = vsel %vm405_vm1, %v508_v43, %v512_v44  ;;  %v432_v56 = vrot.slane %v6099_v47, 1  ;;  %v6130_v59 = vshll.u32 %v6109_v50, 16  ;;  %v6187_v29 = vld [vmem:[%s5987_s30 + $0x50] sm:$0xff]  }
  0x1c   : > { %8082 = vst [vmem:[#allocation16_spill] sm:$0xff] %v6103_v48  ;;  %8083 = vst [vmem:[#allocation17_spill] sm:$0xff] %v6114_v53  ;;  %v520_v58 = vrot.slane %v6103_v48, 1  ;;  %v428_v60 = vor.u32 %v6096_v46, %v424_v42  ;;  %v516_v61 = vor.u32 %v6114_v53, %v512_v44  ;;  %v6139_v62 = vshll.u32 %v6117_v54, 16  ;;  %v5761_v42 = vld [vmem:[%s8004_s1 + $0x90] sm:$0xff]  }
  0x1d   : > { %8084 = vst [vmem:[#allocation18_spill] sm:$0xff] %v6130_v59  ;;  %v6145_v0 = vshrl.u32 %v6079_v39, 16  ;;  %v6154_v4 = vshrl.u32 %v6082_v40, 16  ;;  %v6157_v6 = vshrl.u32 %v6109_v50, 16  ;;  %v6178_v26 = vshrl.u32 %v6117_v54, 16  ;;  %v5762_v44 = vld [vmem:[%s8004_s1 + $0x10] sm:$0xff]  }
  0x1e   : > { %4788 = vmatpush3.bf16.msra.mxu0 %v5729_v8  ;;  %5691 = vmatpush3.bf16.msra.mxu1 %v5729_v8  ;;  %8085 = vst [vmem:[#allocation19_spill] sm:$0xff] %v6139_v62  ;;  %v6160_v8 = vshll.u32 %v6126_v57, 16  ;;  %v521_v19 = vsel %vm405_vm1, %v516_v61, %v520_v58  ;;  %v528_v20 = vrot.slane %v6139_v62, 1  ;;  %v6181_v27 = vshll.u32 %v6142_v63, 16  ;;  %v6332_v62 = vld [vmem:[%s5987_s30 + $0x48] sm:$0xff]  }
  0x1f   : > { %4789 = vmatprep.subr.bf16.mxu0 %v8010_v1  ;;  %5684 = vmatprep.subr.bf16.mxu1 %v8010_v1  ;;  %8086 = vst [vmem:[#allocation20_spill] sm:$0xff] %v6145_v0  ;;  %8087 = vst [vmem:[#allocation21_spill] sm:$0xff] %v6154_v4  ;;  %v524_v41 = vor.u32 %v6154_v4, %v520_v58  ;;  %v6211_v43 = vshrl.u32 %v6187_v29, 16 }
  0x20   : > { %8088 = vst [vmem:[#allocation22_spill] sm:$0xff] %v6157_v6  ;;  %8089 = vst [vmem:[#allocation23_spill] sm:$0xff] %v6160_v8 }
  0x21   : > { %8090 = vst [vmem:[#allocation24_spill] sm:$0xff] %v6178_v26  ;;  %8091 = vst [vmem:[#allocation25_spill] sm:$0xff] %v6181_v27 }
  0x22   : > { %4790 = vmatpush3.bf16.msra.mxu0 %v5730_v13  ;;  %5692 = vmatpush3.bf16.msra.mxu1 %v5730_v13  ;;  %v440_v13 = vrot.slane %v6130_v59, 1  ;;  %8094 = vst [vmem:[#allocation28_spill] sm:$0xff] %v6211_v43 }
  0x23   : > { %4791 = vmatprep.subr.bf16.mxu0 %v8010_v1  ;;  %5685 = vmatprep.subr.bf16.mxu1 %v8010_v1 }
  0x26   : > { %4792 = vmatpush3.bf16.msra.mxu0 %v5731_v18  ;;  %5693 = vmatpush3.bf16.msra.mxu1 %v5731_v18  ;;  %v433_v18 = vsel %vm405_vm1, %v428_v60, %v432_v56  ;;  %v529_v60 = vsel %vm405_vm1, %v524_v41, %v528_v20  ;;  %v6257_v41 = vld [vmem:[%s5987_s30 + $0x40] sm:$0xff]  }
  0x27   : > { %4793 = vmatprep.subr.bf16.mxu0 %v8010_v1  ;;  %5686 = vmatprep.subr.bf16.mxu1 %v8010_v1 }
  0x2a   : > { %4794 = vmatpush3.bf16.msra.mxu0 %v5732_v25  ;;  %5694 = vmatpush3.bf16.msra.mxu1 %v5732_v25  ;;  %v5755_v25 = vld [vmem:[%s8004_s1 + $0x98] sm:$0xff]  }
  0x2b   : > { %4979 = vmatprep.subr.bf16.mxu0 %v8010_v1  ;;  %4879 = vmatprep.subr.bf16.mxu1 %v8010_v1 }
  0x2d   : > { %4796 = vmatmul.mubr.bf16.vlgmr.msra.gmra.mxu0 %v417_v33  ;;  %4840 = vmatmul.mubr.bf16.vlgmr.msra.gmra.mxu1 %v505_v34  ;;  %v6191_v33 = vshll.u32 %v6165_v11, 16  ;;  %v6196_v34 = vshll.u32 %v6169_v14, 16 }
  0x2e   : > { %4980 = vmatpush3.bf16.msra.mxu0 %v5737_v31  ;;  %4799 = vmatprep.mubr.msk.bf16.mxu0 %vm5915_vm0, %v8010_v1  ;;  %v448_v31 = vrot.slane %v6160_v8, 1 }
  0x2f   : > { %4843 = vmatprep.mubr.msk.bf16.mxu1 %vm5915_vm0, %v8010_v1  ;;  %4880 = vmatpush3.bf16.msra.mxu1 %v5738_v37  ;;  %8092 = vst [vmem:[#allocation26_spill] sm:$0xff] %v6196_v34  ;;  %v6199_v37 = vshll.u32 %v6187_v29, 16  ;;  %v456_v61 = vrot.slane %v6191_v33, 1 }
  0x30   : > { %4981 = vmatprep.subr.bf16.mxu0 %v8010_v1  ;;  %4881 = vmatprep.subr.bf16.mxu1 %v8010_v1 }
  0x31   : > { %8093 = vst [vmem:[#allocation27_spill] sm:$0xff] %v6199_v37 }
  0x32   : > { %4982 = vmatpush3.bf16.msra.mxu0 %v5741_v38  ;;  %v436_v38 = vor.u32 %v6145_v0, %v432_v56 }
  0x33   : > { %4882 = vmatpush3.bf16.msra.mxu1 %v5744_v45  ;;  %4983 = vmatprep.subr.bf16.mxu0 %v8010_v1  ;;  %v8009_v45 = vrot.slane %v6199_v37, 1 }
  0x34   : > { %4883 = vmatprep.subr.bf16.mxu1 %v8010_v1  ;;  %v441_v58 = vsel %vm405_vm1, %v436_v38, %v440_v13  ;;  %v6254_v38 = vshrl.u32 %v6169_v14, 16 }
  0x35   : > { %4800 = vmatmul.mubr.bf16.gmra.mxu0 %v425_v51  ;;  %4844 = vmatmul.mubr.bf16.gmra.mxu1 %v513_v52  ;;  %v6219_v51 = vshrl.u32 %v6126_v57, 16  ;;  %v6222_v52 = vshrl.u32 %v6142_v63, 16  ;;  %v492_v56 = vor.u32 %v6211_v43, %v8009_v45  ;;  %v6289_v45 = vshll.u32 %v6257_v41, 16 }
  0x36   : > { %4803 = vmatprep.mubr.msk.bf16.mxu0 %vm5915_vm0, %v8010_v1  ;;  %4847 = vmatprep.mubr.msk.bf16.mxu1 %vm5915_vm0, %v8010_v1  ;;  %8097 = vst [vmem:[#allocation31_spill] sm:$0xff] %v6254_v38 }
  0x37   : > { %4984 = vmatpush3.bf16.msra.mxu0 %v5745_v49  ;;  %4884 = vmatpush3.bf16.msra.mxu1 %v5748_v55  ;;  %v536_v49 = vrot.slane %v6181_v27, 1  ;;  %8095 = vst [vmem:[#allocation29_spill] sm:$0xff] %v6219_v51  ;;  %8096 = vst [vmem:[#allocation30_spill] sm:$0xff] %v6222_v52  ;;  %v6225_v55 = vld [vmem:[%s5987_s30 + $0x38] sm:$0xff]  }
  0x38   : > { %4985 = vmatprep.subr.bf16.mxu0 %v8010_v1  ;;  %4885 = vmatprep.subr.bf16.mxu1 %v8010_v1  ;;  %v6286_v17 = vshrl.u32 %v6225_v55, 16  ;;  %8101 = vst [vmem:[#allocation35_spill] sm:$0xff] %v6289_v45 }
  0x3a   : > { %8100 = vst [vmem:[#allocation34_spill] sm:$0xff] %v6286_v17 }
  0x3b   : > { %4986 = vmatpush3.bf16.msra.mxu0 %v5751_v2  ;;  %4886 = vmatpush3.bf16.msra.mxu1 %v5752_v3  ;;  %v544_v2 = vrot.slane %v6196_v34, 1  ;;  %v6237_v3 = vld [vmem:[%s5987_s30 + $0x90] sm:$0xff]  }
  0x3c   : > { %4987 = vmatprep.subr.bf16.mxu0 %v8010_v1  ;;  %4887 = vmatprep.subr.bf16.mxu1 %v8010_v1 }
  0x3d   : > { %4804 = vmatmul.mubr.bf16.gmra.mxu0 %v433_v18  ;;  %4848 = vmatmul.mubr.bf16.gmra.mxu1 %v521_v19  ;;  %v5766_v18 = vld [vmem:[%s8004_s1 + $0x8] sm:$0xff]   ;;  %v6243_v19 = vshrl.u32 %v6165_v11, 16 }
  0x3e   : > { %4807 = vmatprep.mubr.msk.bf16.mxu0 %vm5915_vm0, %v8010_v1  ;;  %4851 = vmatprep.mubr.msk.bf16.mxu1 %vm5915_vm0, %v8010_v1 }
  0x3f   : > { %4988 = vmatpush3.bf16.msra.mxu0 %v5755_v25  ;;  %4888 = vmatpush3.bf16.msra.mxu1 %v5756_v28  ;;  %v5767_v25 = vld [vmem:[%s8004_s1 + $0x88] sm:$0xff]   ;;  %v6251_v28 = vsel %vm405_vm1, %v492_v56, %v496_v22  ;;  %v444_v22 = vor.u32 %v6157_v6, %v440_v13  ;;  %v532_v56 = vor.u32 %v6178_v26, %v528_v20 }
  0x40   : > { %4989 = vmatprep.subr.bf16.mxu0 %v8010_v1  ;;  %4889 = vmatprep.subr.bf16.mxu1 %v8010_v1 }
  0x41   : > { %v449_v13 = vsel %vm405_vm1, %v444_v22, %v448_v31  ;;  %v537_v20 = vsel %vm405_vm1, %v532_v56, %v536_v49 }
  0x43   : > { %4990 = vmatpush3.bf16.msra.mxu0 %v5761_v42  ;;  %4890 = vmatpush3.bf16.msra.mxu1 %v5762_v44  ;;  %v6262_v42 = vshll.u32 %v6225_v55, 16  ;;  %v5769_v44 = vld [vmem:[%s8004_s1] sm:$0xff]  }
  0x44   : > { %4891 = vmatprep.subr.bf16.mxu1 %v8010_v1  ;;  %4991 = vmatprep.subr.bf16.mxu0 %v8010_v1 }
  0x45   : > { %4808 = vmatmul.mubr.bf16.gmra.mxu0 %v441_v58  ;;  %4852 = vmatmul.mubr.bf16.gmra.mxu1 %v529_v60  ;;  %8098 = vst [vmem:[#allocation32_spill] sm:$0xff] %v6262_v42  ;;  %v6274_v58 = vshll.u32 %v6237_v3, 16  ;;  %v5770_v60 = vld [vmem:[%s8004_s1 + $0x80] sm:$0xff]  }
  0x46   : > { %4811 = vmatprep.mubr.msk.bf16.mxu0 %vm5915_vm0, %v8010_v1  ;;  %4855 = vmatprep.mubr.msk.bf16.mxu1 %vm5915_vm0, %v8010_v1 }
  0x47   : > { %8099 = vst [vmem:[#allocation33_spill] sm:$0xff] %v6274_v58  ;;  %4892 = vmatpush3.bf16.msra.mxu1 %v5766_v18  ;;  %4992 = vmatpush3.bf16.msra.mxu0 %v5767_v25  ;;  %v452_v18 = vor.u32 %v6219_v51, %v448_v31  ;;  %v540_v25 = vor.u32 %v6222_v52, %v536_v49  ;;  %v6310_v31 = vshrl.u32 %v6237_v3, 16 }
  0x48   : > { %4893 = vmatprep.subr.bf16.mxu1 %v8010_v1  ;;  %4993 = vmatprep.subr.bf16.mxu0 %v8010_v1 }
  0x49   : > { %v457_v22 = vsel %vm405_vm1, %v452_v18, %v456_v61  ;;  %v545_v56 = vsel %vm405_vm1, %v540_v25, %v544_v2  ;;  %8102 = vst [vmem:[#allocation36_spill] sm:$0xff] %v6310_v31  ;;  %v8105_v18 = vmov 0.0   ;;  %v460_v25 = vor.u32 %v6243_v19, %v456_v61 }
  0x4b   : > { %4894 = vmatpush3.bf16.msra.mxu1 %v5769_v44  ;;  %4994 = vmatpush3.bf16.msra.mxu0 %v5770_v60  ;;  %v6302_v44 = vld [vmem:[%s5987_s30 + $0x98] sm:$0xff]   ;;  %v464_v60 = vrot.slane %v6262_v42, 1 }
  0x4c   : > { %5079 = vmatprep.subr.bf16.mxu1 %v8010_v1  ;;  %5179 = vmatprep.subr.bf16.mxu0 %v8010_v1  ;;  %v6313_v49 = vshll.u32 %v6302_v44, 16  ;;  %v6329_v52 = vshrl.u32 %v6302_v44, 16 }
  0x4d   : > { %4812 = vmatmul.mubr.bf16.gmra.mxu0 %v449_v13  ;;  %4856 = vmatmul.mubr.bf16.gmra.mxu1 %v537_v20  ;;  %v552_v13 = vrot.slane %v6274_v58, 1  ;;  %v472_v20 = vrot.slane %v6289_v45, 1  ;;  %v465_v58 = vsel %vm405_vm1, %v460_v25, %v464_v60  ;;  %v468_v61 = vor.u32 %v6286_v17, %v464_v60 }
  0x4e   : > { %4815 = vmatprep.mubr.msk.bf16.mxu0 %vm5915_vm0, %v8010_v1  ;;  %4859 = vmatprep.mubr.msk.bf16.mxu1 %vm5915_vm0, %v8010_v1  ;;  %8103 = vst [vmem:[#allocation37_spill] sm:$0xff] %v6313_v49  ;;  %v6316_v1 = vshrl.u32 %v6257_v41, 16  ;;  %v560_v27 = vrot.slane %v6313_v49, 1  ;;  %8106 = vst [vmem:[#allocation39_spill] sm:$0xff] %v6329_v52 }
  0x50   : > { %8104 = vst [vmem:[#allocation38_spill] sm:$0xff] %v6316_v1 }
  0x55   : > { %4816 = vmatmul.mubr.bf16.gmra.mxu0 %v457_v22  ;;  %4860 = vmatmul.mubr.bf16.gmra.mxu1 %v545_v56  ;;  %v548_v22 = vor.u32 %v6254_v38, %v544_v2  ;;  %v263_v56 = vld [vmem:[%s5987_s30 + $0xa0] sm:$0xf]  ;;  %v556_v2 = vor.u32 %v6310_v31, %v552_v13  ;;  %v6345_v38 = vshll.u32 %v6332_v62, 16 }
  0x56   : > { %4819 = vmatprep.mubr.msk.bf16.mxu0 %vm5915_vm0, %v8105_v18  ;;  %4863 = vmatprep.mubr.msk.bf16.mxu1 %vm5915_vm0, %v8105_v18  ;;  %v6340_v25 = vcombine.low %v263_v56, %v263_v56 }
  0x57   : > { %v553_v34 = vsel %vm405_vm1, %v548_v22, %v552_v13  ;;  %v473_v22 = vsel %vm405_vm1, %v468_v61, %v472_v20  ;;  %v561_v49 = vsel %vm405_vm1, %v556_v2, %v560_v27  ;;  %8107 = vst [vmem:[#allocation40_spill] sm:$0xff] %v6345_v38  ;;  %v480_v60 = vrot.slane %v6345_v38, 1 }
  0x58   : > { %v564_v13 = vor.u32 %v6329_v52, %v560_v27 }
  0x5d   : > { %4820 = vmatmul.mubr.bf16.gmra.mxu0 %v465_v58  ;;  %4864 = vmatmul.mubr.bf16.gmra.mxu1 %v553_v34  ;;  %v566_v34 = vshll.u32 %v6340_v25, 16  ;;  %v476_v58 = vor.u32 %v6316_v1, %v472_v20 }
  0x5e   : > { %4823 = vmatprep.mubr.msk.bf16.mxu0 %vm5915_vm0, %v8105_v18  ;;  %4867 = vmatprep.mubr.msk.bf16.mxu1 %vm5915_vm0, %v8105_v18 }
  0x5f   : > { %v568_v56 = vrot.slane %v566_v34, 1  ;;  %v481_v61 = vsel %vm405_vm1, %v476_v58, %v480_v60  ;;  %v8109_v34 = vrot.slane %v6199_v37, 1 }
  0x61   : > { %v569_v2 = vsel %vm405_vm1, %v564_v13, %v568_v56  ;;  %v5771_v13 = vld [vmem:[%s8004_s1 + $0xf8] sm:$0xff]  }
  0x65   : > { %4824 = vmatmul.mubr.bf16.gmra.mxu0 %v473_v22  ;;  %4868 = vmatmul.mubr.bf16.gmra.mxu1 %v561_v49  ;;  %v6358_v22 = vshrl.u32 %v6332_v62, 16  ;;  %v570_v49 = vshrl.u32 %v6340_v25, 16 }
  0x66   : > { %4827 = vmatprep.mubr.msk.bf16.mxu0 %vm5915_vm0, %v8105_v18  ;;  %4871 = vmatprep.mubr.msk.bf16.mxu1 %vm5915_vm0, %v8105_v18 }
  0x67   : > { %8108 = vst [vmem:[#allocation41_spill] sm:$0xff] %v6358_v22  ;;  %v484_v27 = vor.u32 %v6358_v22, %v480_v60  ;;  %v572_v20 = vor.u32 %v570_v49, %v568_v56  ;;  %v1129_v60 = vrot.slane %v5999_v7, 1  ;;  %v1130_v56 = vrot.slane %v5993_v5, 1 }
  0x68   : > { %v1132_v49 = vrot.slane %v6042_v24, 1 }
  0x69   : > { %v489_v58 = vsel %vm405_vm1, %v484_v27, %v8109_v34  ;;  %v5774_v27 = vld [vmem:[%s8004_s1 + $0x130] sm:$0xff]   ;;  %v5776_v34 = vld [vmem:[%s8004_s1 + $0x128] sm:$0xff]  }
  0x6d   : > { %4828 = vmatmul.mubr.bf16.gmra.mxu0 %v481_v61  ;;  %4872 = vmatmul.mubr.bf16.gmra.mxu1 %v569_v2  ;;  %v5773_v61 = vld [vmem:[%s8004_s1 + $0xf0] sm:$0xff]   ;;  %v5772_v2 = vld [vmem:[%s8004_s1 + $0x138] sm:$0xff]  }
  0x6e   : > { %4831 = vmatprep.mubr.msk.bf16.mxu0 %vm5915_vm0, %v8105_v18  ;;  %4875 = vmatprep.mubr.msk.bf16.mxu1 %vm5915_vm0, %v8105_v18 }
  0x75   : > { %4832 = vmatmul.mubr.bf16.gmra.mxu0 %v489_v58  ;;  %4876 = vmatmul.mubr.bf16.gmra.mxu1 %v572_v20  ;;  %v6411_v20 = vsel %vm1128_vm2, %v1130_v56, %v1132_v49  ;;  %v5779_v58 = vld [vmem:[%s8004_s1 + $0xd8] sm:$0xff]  }
  0x76   : > { %4835 = vmatprep.mubr.msk.bf16.mxu0 %vm5915_vm0, %v8105_v18  ;;  %4895 = vmatprep.mubr.msk.bf16.mxu1 %vm5915_vm0, %v8105_v18 }
  0x7d   : > { %4836 = vmatmul.mubr.bf16.gmra.mxu0 %v6251_v28  ;;  %4896 = vmatmul.mubr.bf16.vlgmr.msra.gmra.mxu1 %v5999_v7  ;;  %v1131_v28 = vsel %vm1128_vm2, %v1129_v60, %v1130_v56  ;;  %v5775_v7 = vld [vmem:[%s8004_s1 + $0xe8] sm:$0xff]   ;;  %v5778_v60 = vld [vmem:[%s8004_s1 + $0x120] sm:$0xff]  }
  0x7e   : > { %4899 = vmatprep.mubr.msk.bf16.mxu1 %vm5915_vm0, %v8105_v18  ;;  %4995 = vmatprep.mubr.msk.bf16.mxu0 %vm5915_vm0, %v8105_v18 }
  0x7f   : > { %5080 = vmatpush3.bf16.msra.mxu1 %v5771_v13  ;;  %v1134_v13 = vrot.slane %v6079_v39, 1 }
  0x80   : > { %5081 = vmatprep.subr.bf16.mxu1 %v8105_v18 }
  0x81   : > { %v6437_v56 = vsel %vm1128_vm2, %v1132_v49, %v1134_v13 }
  0x83   : > { %5082 = vmatpush3.bf16.msra.mxu1 %v5773_v61  ;;  %v5780_v61 = vld [vmem:[%s8004_s1 + $0x118] sm:$0xff]  }
  0x84   : > { %5083 = vmatprep.subr.bf16.mxu1 %v8105_v18 }
  0x85   : > { %4900 = vmatmul.mubr.bf16.gmra.mxu1 %v5993_v5  ;;  %4996 = vmatmul.mubr.bf16.vlgmr.msra.gmra.mxu0 %v1131_v28  ;;  %v5777_v5 = vld [vmem:[%s8004_s1 + $0xe0] sm:$0xff]   ;;  %v5783_v28 = vld [vmem:[%s8004_s1 + $0xc8] sm:$0xff]  }
  0x86   : > { %5180 = vmatpush3.bf16.msra.mxu0 %v5772_v2  ;;  %4903 = vmatprep.mubr.msk.bf16.mxu1 %vm5915_vm0, %v8105_v18  ;;  %v1136_v2 = vrot.slane %v6109_v50, 1 }
  0x87   : > { %4999 = vmatprep.mubr.msk.bf16.mxu0 %vm5915_vm0, %v8105_v18  ;;  %5181 = vmatprep.subr.bf16.mxu0 %v8105_v18 }
  0x88   : > { %5084 = vmatpush3.bf16.msra.mxu1 %v5775_v7  ;;  %v5782_v7 = vld [vmem:[%s8004_s1 + $0x110] sm:$0xff]   ;;  %v6463_v49 = vsel %vm1128_vm2, %v1134_v13, %v1136_v2 }
  0x89   : > { %5085 = vmatprep.subr.bf16.mxu1 %v8105_v18 }
  0x8a   : > { %5182 = vmatpush3.bf16.msra.mxu0 %v5774_v27  ;;  %v5784_v27 = vld [vmem:[%s8004_s1 + $0x108] sm:$0xff]  }
  0x8b   : > { %5183 = vmatprep.subr.bf16.mxu0 %v8105_v18 }
  0x8c   : > { %5086 = vmatpush3.bf16.msra.mxu1 %v5777_v5  ;;  %v1138_v5 = vrot.slane %v6126_v57, 1 }
  0x8d   : > { %4904 = vmatmul.mubr.bf16.gmra.mxu1 %v6042_v24  ;;  %5000 = vmatmul.mubr.bf16.gmra.mxu0 %v6411_v20  ;;  %v5781_v24 = vld [vmem:[%s8004_s1 + $0xd0] sm:$0xff]  }
  0x8e   : > { %4907 = vmatprep.mubr.msk.bf16.mxu1 %vm5915_vm0, %v8105_v18  ;;  %5003 = vmatprep.mubr.msk.bf16.mxu0 %vm5915_vm0, %v8105_v18 }
  0x8f   : > { %5184 = vmatpush3.bf16.msra.mxu0 %v5776_v34  ;;  %5087 = vmatprep.subr.bf16.mxu1 %v8105_v18  ;;  %v5786_v34 = vld [vmem:[%s8004_s1 + $0x100] sm:$0xff]  }
  0x90   : > { %5185 = vmatprep.subr.bf16.mxu0 %v8105_v18  ;;  %5088 = vmatpush3.bf16.msra.mxu1 %v5779_v58  ;;  %v1140_v58 = vrot.slane %v6165_v11, 1 }
  0x91   : > { %5089 = vmatprep.subr.bf16.mxu1 %v8105_v18 }
  0x92   : > { %v6493_v13 = vsel %vm1128_vm2, %v1138_v5, %v1140_v58 }
  0x93   : > { %5186 = vmatpush3.bf16.msra.mxu0 %v5778_v60 }
  0x94   : > { %5187 = vmatprep.subr.bf16.mxu0 %v8105_v18  ;;  %5090 = vmatpush3.bf16.msra.mxu1 %v5781_v24 }
  0x95   : > { %4908 = vmatmul.mubr.bf16.gmra.mxu1 %v6079_v39  ;;  %5004 = vmatmul.mubr.bf16.gmra.mxu0 %v6437_v56  ;;  %v5785_v39 = vld [vmem:[%s8004_s1 + $0xc0] sm:$0xff]  }
  0x96   : > { %4911 = vmatprep.mubr.msk.bf16.mxu1 %vm5915_vm0, %v8105_v18  ;;  %5007 = vmatprep.mubr.msk.bf16.mxu0 %vm5915_vm0, %v8105_v18 }
  0x97   : > { %5188 = vmatpush3.bf16.msra.mxu0 %v5780_v61  ;;  %5091 = vmatprep.subr.bf16.mxu1 %v8105_v18 }
  0x98   : > { %5189 = vmatprep.subr.bf16.mxu0 %v8105_v18  ;;  %5092 = vmatpush3.bf16.msra.mxu1 %v5783_v28 }
  0x99   : > { %5093 = vmatprep.subr.bf16.mxu1 %v8105_v18 }
  0x9b   : > { %5190 = vmatpush3.bf16.msra.mxu0 %v5782_v7 }
  0x9c   : > { %5191 = vmatprep.subr.bf16.mxu0 %v8105_v18  ;;  %5094 = vmatpush3.bf16.msra.mxu1 %v5785_v39 }
  0x9d   : > { %4912 = vmatmul.mubr.bf16.gmra.mxu1 %v6109_v50  ;;  %5008 = vmatmul.mubr.bf16.gmra.mxu0 %v6463_v49  ;;  %v6482_v50 = vsel %vm1128_vm2, %v1136_v2, %v1138_v5 }
  0x9e   : > { %4915 = vmatprep.mubr.msk.bf16.mxu1 %vm5915_vm0, %v8105_v18  ;;  %5011 = vmatprep.mubr.msk.bf16.mxu0 %vm5915_vm0, %v8105_v18 }
  0x9f   : > { %5192 = vmatpush3.bf16.msra.mxu0 %v5784_v27  ;;  %5279 = vmatprep.subr.bf16.mxu1 %v8105_v18 }
  0xa0   : > { %5193 = vmatprep.subr.bf16.mxu0 %v8105_v18 }
  0xa3   : > { %5194 = vmatpush3.bf16.msra.mxu0 %v5786_v34 }
  0xa4   : > { %5379 = vmatprep.subr.bf16.mxu0 %v8105_v18 }
  0xa5   : > { %4916 = vmatmul.mubr.bf16.gmra.mxu1 %v6126_v57  ;;  %5012 = vmatmul.mubr.bf16.gmra.mxu0 %v6482_v50  ;;  %v1142_v57 = vrot.slane %v6225_v55, 1 }
  0xa6   : > { %4919 = vmatprep.mubr.msk.bf16.mxu1 %vm5915_vm0, %v8105_v18  ;;  %5015 = vmatprep.mubr.msk.bf16.mxu0 %vm5915_vm0, %v8105_v18 }
  0xa7   : > { %v6503_v60 = vsel %vm1128_vm2, %v1140_v58, %v1142_v57 }
  0xad   : > { %4920 = vmatmul.mubr.bf16.gmra.mxu1 %v6165_v11  ;;  %5016 = vmatmul.mubr.bf16.gmra.mxu0 %v6493_v13  ;;  %v1144_v11 = vrot.slane %v6257_v41, 1 }
  0xae   : > { %4923 = vmatprep.mubr.msk.bf16.mxu1 %vm5915_vm0, %v8105_v18  ;;  %5019 = vmatprep.mubr.msk.bf16.mxu0 %vm5915_vm0, %v8105_v18 }
  0xaf   : > { %v6513_v24 = vsel %vm1128_vm2, %v1142_v57, %v1144_v11 }
  0xb5   : > { %4924 = vmatmul.mubr.bf16.gmra.mxu1 %v6225_v55  ;;  %5020 = vmatmul.mubr.bf16.gmra.mxu0 %v6503_v60  ;;  %v1146_v55 = vrot.slane %v6332_v62, 1 }
  0xb6   : > { %4927 = vmatprep.mubr.msk.bf16.mxu1 %vm5915_vm0, %v8105_v18  ;;  %5023 = vmatprep.mubr.msk.bf16.mxu0 %vm5915_vm0, %v8105_v18 }
  0xb7   : > { %v6523_v61 = vsel %vm1128_vm2, %v1144_v11, %v1146_v55 }
  0xbd   : > { %4928 = vmatmul.mubr.bf16.gmra.mxu1 %v6257_v41  ;;  %5024 = vmatmul.mubr.bf16.gmra.mxu0 %v6513_v24  ;;  %v1148_v41 = vrot.slane %v6187_v29, 1 }
  0xbe   : > { %4931 = vmatprep.mubr.msk.bf16.mxu1 %vm5915_vm0, %v8105_v18  ;;  %5027 = vmatprep.mubr.msk.bf16.mxu0 %vm5915_vm0, %v8105_v18 }
  0xbf   : > { %v6533_v28 = vsel %vm1128_vm2, %v1146_v55, %v1148_v41 }
  0xc5   : > { %4932 = vmatmul.mubr.bf16.gmra.mxu1 %v6332_v62  ;;  %5028 = vmatmul.mubr.bf16.gmra.mxu0 %v6523_v61  ;;  %v1150_v62 = vrot.slane %v6007_v10, 1 }
  0xc6   : > { %4935 = vmatprep.mubr.msk.bf16.mxu1 %vm5915_vm0, %v8105_v18  ;;  %5031 = vmatprep.mubr.msk.bf16.mxu0 %vm5915_vm0, %v8105_v18 }
  0xc7   : > { %v6543_v2 = vsel %vm1128_vm2, %v1148_v41, %v1150_v62 }
  0xcd   : > { %4936 = vmatmul.mubr.bf16.gmra.mxu1 %v6187_v29  ;;  %5032 = vmatmul.mubr.bf16.gmra.mxu0 %v6533_v28  ;;  %v1152_v29 = vrot.slane %v6019_v15, 1 }
  0xce   : > { %4939 = vmatprep.mubr.msk.bf16.mxu1 %vm5915_vm0, %v8105_v18  ;;  %5035 = vmatprep.mubr.msk.bf16.mxu0 %vm5915_vm0, %v8105_v18 }
  0xcf   : > { %v6553_v7 = vsel %vm1128_vm2, %v1150_v62, %v1152_v29 }
  0xd5   : > { %4940 = vmatmul.mubr.bf16.gmra.mxu1 %v6007_v10  ;;  %5036 = vmatmul.mubr.bf16.gmra.mxu0 %v6543_v2  ;;  %v1154_v10 = vrot.slane %v6052_v30, 1 }
  0xd6   : > { %4943 = vmatprep.mubr.msk.bf16.mxu1 %vm5915_vm0, %v8105_v18  ;;  %5039 = vmatprep.mubr.msk.bf16.mxu0 %vm5915_vm0, %v8105_v18 }
  0xd7   : > { %v6563_v39 = vsel %vm1128_vm2, %v1152_v29, %v1154_v10 }
  0xdd   : > { %4944 = vmatmul.mubr.bf16.gmra.mxu1 %v6019_v15  ;;  %5040 = vmatmul.mubr.bf16.gmra.mxu0 %v6553_v7  ;;  %v1156_v15 = vrot.slane %v6082_v40, 1 }
  0xde   : > { %4947 = vmatprep.mubr.msk.bf16.mxu1 %vm5915_vm0, %v8105_v18  ;;  %5043 = vmatprep.mubr.msk.bf16.mxu0 %vm5915_vm0, %v8105_v18 }
  0xdf   : > { %v6573_v27 = vsel %vm1128_vm2, %v1154_v10, %v1156_v15 }
  0xe0   : > { %8110 = vst [vmem:[#allocation42_spill] sm:$0xff] %v6573_v27 }
  0xe5   : > { %4948 = vmatmul.mubr.bf16.gmra.mxu1 %v6052_v30  ;;  %5044 = vmatmul.mubr.bf16.gmra.mxu0 %v6563_v39  ;;  %v1158_v30 = vrot.slane %v6117_v54, 1 }
  0xe6   : > { %4951 = vmatprep.mubr.msk.bf16.mxu1 %vm5915_vm0, %v8105_v18  ;;  %5047 = vmatprep.mubr.msk.bf16.mxu0 %vm5915_vm0, %v8105_v18 }
  0xe7   : > { %v6591_v41 = vsel %vm1128_vm2, %v1156_v15, %v1158_v30 }
  0xe8   : > { %8113 = vst [vmem:[#allocation45_spill] sm:$0xff] %v6591_v41 }
  0xed   : > { %v6575_v5 = vpop.f32.mrf.mxu0  ;;  %v6577_v34 = vpop.f32.mrf.mxu1  ;;  %4952 = vmatmul.mubr.bf16.gmra.mxu1 %v6082_v40  ;;  %5048 = vmatmul.mubr.bf16.gmra.mxu0 %v6573_v27 }
  0xee   : > { %8111 = vst [vmem:[#allocation43_spill] sm:$0xff] %v6577_v34  ;;  %4955 = vmatprep.mubr.msk.bf16.mxu1 %vm5915_vm0, %v8105_v18  ;;  %5051 = vmatprep.mubr.msk.bf16.mxu0 %vm5915_vm0, %v8105_v18 }
  0xef   : > { %v4797_v58 = vpop.f32.mrf.mxu0  ;;  %v4841_v57 = vpop.f32.mrf.mxu1 }
  0xf0   : > { %v1160_v58 = vrot.slane %v6142_v63, 1 }
  0xf1   : > { %v6586_v11 = vpop.f32.mrf.mxu0  ;;  %v6588_v55 = vpop.f32.mrf.mxu1 }
  0xf2   : > { %8112 = vst [vmem:[#allocation44_spill] sm:$0xff] %v6588_v55  ;;  %v6609_v52 = vsel %vm1128_vm2, %v1158_v30, %v1160_v58 }
  0xf3   : > { %v4798_v40 = vpop.f32.mrf.mxu0  ;;  %v4842_v62 = vpop.f32.mrf.mxu1  ;;  %8116 = vst [vmem:[#allocation48_spill] sm:$0xff] %v6609_v52 }
  0xf5   : > { %v6593_v29 = vpop.f32.mrf.mxu0  ;;  %v6595_v10 = vpop.f32.mrf.mxu1  ;;  %4956 = vmatmul.mubr.bf16.gmra.mxu1 %v6117_v54  ;;  %5052 = vmatmul.mubr.bf16.gmra.mxu0 %v6591_v41 }
  0xf6   : > { %8114 = vst [vmem:[#allocation46_spill] sm:$0xff] %v6595_v10  ;;  %4959 = vmatprep.mubr.msk.bf16.mxu1 %vm5915_vm0, %v8105_v18  ;;  %5055 = vmatprep.mubr.msk.bf16.mxu0 %vm5915_vm0, %v8105_v18 }
  0xf7   : > { %v4801_v15 = vpop.f32.mrf.mxu0  ;;  %v4845_v57 = vpop.f32.mrf.mxu1 }
  0xf8   : > { %v1162_v15 = vrot.slane %v6169_v14, 1 }
  0xf9   : > { %v6604_v40 = vpop.f32.mrf.mxu0  ;;  %v6606_v62 = vpop.f32.mrf.mxu1 }
  0xfa   : > { %8115 = vst [vmem:[#allocation47_spill] sm:$0xff] %v6606_v62 }
  0xfb   : > { %v4802_v54 = vpop.f32.mrf.mxu0  ;;  %v4846_v10 = vpop.f32.mrf.mxu1 }
  0xfd   : > { %v6611_v31 = vpop.f32.mrf.mxu0  ;;  %v6613_v55 = vpop.f32.mrf.mxu1  ;;  %4960 = vmatmul.mubr.bf16.gmra.mxu1 %v6142_v63  ;;  %5056 = vmatmul.mubr.bf16.gmra.mxu0 %v6609_v52 }
  0xfe   : > { %8117 = vst [vmem:[#allocation49_spill] sm:$0xff] %v6613_v55  ;;  %4963 = vmatprep.mubr.msk.bf16.mxu1 %vm5915_vm0, %v8105_v18  ;;  %5059 = vmatprep.mubr.msk.bf16.mxu0 %vm5915_vm0, %v8105_v18  ;;  %v6627_v55 = vsel %vm1128_vm2, %v1160_v58, %v1162_v15 }
  0xff   : > { %v4805_v30 = vpop.f32.mrf.mxu0  ;;  %v4849_v57 = vpop.f32.mrf.mxu1  ;;  %8119 = vst [vmem:[#allocation51_spill] sm:$0xff] %v6627_v55 }
 0x100   : > { %v1164_v30 = vrot.slane %v6237_v3, 1 }
 0x101   : > { %v6622_v54 = vpop.f32.mrf.mxu0  ;;  %v6624_v10 = vpop.f32.mrf.mxu1 }
 0x102   : > { %8118 = vst [vmem:[#allocation50_spill] sm:$0xff] %v6624_v10 }
 0x103   : > { %v4806_v63 = vpop.f32.mrf.mxu0  ;;  %v4850_v62 = vpop.f32.mrf.mxu1 }
 0x105   : > { %v6629_v34 = vpop.f32.mrf.mxu0  ;;  %v6631_v52 = vpop.f32.mrf.mxu1  ;;  %4964 = vmatmul.mubr.bf16.gmra.mxu1 %v6169_v14  ;;  %5060 = vmatmul.mubr.bf16.gmra.mxu0 %v6627_v55 }
 0x106   : > { %8120 = vst [vmem:[#allocation52_spill] sm:$0xff] %v6631_v52  ;;  %4967 = vmatprep.mubr.msk.bf16.mxu1 %vm5915_vm0, %v8105_v18  ;;  %5063 = vmatprep.mubr.msk.bf16.mxu0 %vm5915_vm0, %v8105_v18  ;;  %v6645_v52 = vsel %vm1128_vm2, %v1162_v15, %v1164_v30 }
 0x107   : > { %v4809_v58 = vpop.f32.mrf.mxu0  ;;  %v4853_v57 = vpop.f32.mrf.mxu1  ;;  %8122 = vst [vmem:[#allocation54_spill] sm:$0xff] %v6645_v52 }
 0x108   : > { %v6658_v58 = vrot.slane %v6302_v44, 1 }
 0x109   : > { %v6640_v63 = vpop.f32.mrf.mxu0  ;;  %v6642_v62 = vpop.f32.mrf.mxu1 }
 0x10a   : > { %8121 = vst [vmem:[#allocation53_spill] sm:$0xff] %v6642_v62  ;;  %8124 = vst [vmem:[#allocation56_spill] sm:$0xff] %v6658_v58 }
 0x10b   : > { %v4810_v14 = vpop.f32.mrf.mxu0  ;;  %v4854_v10 = vpop.f32.mrf.mxu1 }
 0x10d   : > { %v6647_v55 = vpop.f32.mrf.mxu0  ;;  %v6649_v41 = vpop.f32.mrf.mxu1  ;;  %4968 = vmatmul.mubr.bf16.gmra.mxu1 %v6237_v3  ;;  %5064 = vmatmul.mubr.bf16.gmra.mxu0 %v6645_v52  ;;  %v6666_v3 = vsel %vm1128_vm2, %v1164_v30, %v6658_v58 }
 0x10e   : > { %8123 = vst [vmem:[#allocation55_spill] sm:$0xff] %v6649_v41  ;;  %4971 = vmatprep.mubr.msk.bf16.mxu1 %vm5915_vm0, %v8105_v18  ;;  %5067 = vmatprep.mubr.msk.bf16.mxu0 %vm5915_vm0, %v8105_v18  ;;  %8126 = vst [vmem:[#allocation58_spill] sm:$0xff] %v6666_v3 }
 0x10f   : > { %v4813_v15 = vpop.f32.mrf.mxu0  ;;  %v4857_v57 = vpop.f32.mrf.mxu1 }
 0x110   : > { %v1168_v15 = vrot.slane %v6340_v25, 1 }
 0x111   : > { %v6660_v10 = vpop.f32.mrf.mxu0  ;;  %v6662_v14 = vpop.f32.mrf.mxu1 }
 0x112   : > { %8125 = vst [vmem:[#allocation57_spill] sm:$0xff] %v6662_v14 }
 0x113   : > { %v4814_v41 = vpop.f32.mrf.mxu0  ;;  %v4858_v62 = vpop.f32.mrf.mxu1 }
 0x115   : > { %v6668_v52 = vpop.f32.mrf.mxu0  ;;  %v6670_v26 = vpop.f32.mrf.mxu1  ;;  %4972 = vmatmul.mubr.bf16.gmra.mxu1 %v6302_v44  ;;  %5068 = vmatmul.mubr.bf16.gmra.mxu0 %v6666_v3 }
 0x116   : > { %8127 = vst [vmem:[#allocation59_spill] sm:$0xff] %v6670_v26  ;;  %4975 = vmatprep.mubr.msk.bf16.mxu1 %vm5915_vm0, %v8105_v18  ;;  %5071 = vmatprep.mubr.msk.bf16.mxu0 %vm5915_vm0, %v8105_v18  ;;  %v1169_v26 = vsel %vm1128_vm2, %v6658_v58, %v1168_v15 }
 0x117   : > { %v4817_v30 = vpop.f32.mrf.mxu0  ;;  %v4861_v57 = vpop.f32.mrf.mxu1 }
 0x119   : > { %v6679_v41 = vpop.f32.mrf.mxu0  ;;  %v6681_v62 = vpop.f32.mrf.mxu1 }
 0x11a   : > { %8128 = vst [vmem:[#allocation60_spill] sm:$0xff] %v6681_v62 }
 0x11b   : > { %v4818_v44 = vpop.f32.mrf.mxu0  ;;  %v4862_v14 = vpop.f32.mrf.mxu1 }
 0x11c   : > { %v1820_v14 = vrot.slane %v6096_v46, 1  ;;  %v1821_v44 = vrot.slane %v6060_v32, 2  ;;  %v8131_v32 = vor.u32 %v6004_v9, %v6012_v12 }
 0x11d   : > { %v6685_v3 = vpop.f32.mrf.mxu0  ;;  %v6687_v27 = vpop.f32.mrf.mxu1  ;;  %4976 = vmatmul.mubr.bf16.gmra.mxu1 %v6340_v25  ;;  %5072 = vmatmul.mubr.bf16.gmra.mxu0 %v1169_v26  ;;  %v5787_v26 = vld [vmem:[%s8004_s1 + $0x178] sm:$0xff]  }
 0x11e   : > { %8129 = vst [vmem:[#allocation61_spill] sm:$0xff] %v6687_v27  ;;  %5075 = vmatprep.mubr.msk.bf16.mxu0 %vm5915_vm0, %v8105_v18  ;;  %5095 = vmatprep.mubr.msk.bf16.mxu1 %vm5915_vm0, %v8105_v18 }
 0x11f   : > { %v4821_v30 = vpop.f32.mrf.mxu0  ;;  %v4865_v57 = vpop.f32.mrf.mxu1 }
 0x120   : > { %v1822_v30 = vor.u32 %v1821_v44, %v1820_v14  ;;  %v5789_v57 = vld [vmem:[%s8004_s1 + $0x170] sm:$0xff]   ;;  %v5788_v14 = vld [vmem:[%s8004_s1 + $0x1b8] sm:$0xff]   ;;  %v1824_v44 = vrot.slane %v6145_v0, 1 }
 0x121   : > { %v6694_v62 = vpop.f32.mrf.mxu0  ;;  %v6696_v58 = vpop.f32.mrf.mxu1  ;;  %v5795_v0 = vld [vmem:[%s8004_s1 + $0x158] sm:$0xff]  }
 0x122   : > { %v1823_v46 = vsel %vm1816_vm3, %v8131_v32, %v1822_v30 }
 0x123   : > { %v4822_v27 = vpop.f32.mrf.mxu0  ;;  %v4866_v48 = vpop.f32.mrf.mxu1 }
 0x125   : > { %v6703_v25 = vpop.f32.mrf.mxu0  ;;  %v6705_v4 = vpop.f32.mrf.mxu1  ;;  %5076 = vmatmul.mubr.bf16.gmra.mxu0 %v1168_v15  ;;  %5096 = vmatmul.mubr.bf16.vlgmr.msra.gmra.mxu1 %v6411_v20 }
 0x126   : > { %5099 = vmatprep.mubr.msk.bf16.mxu1 %vm5915_vm0, %v8105_v18  ;;  %5195 = vmatprep.mubr.msk.bf16.mxu0 %vm5915_vm0, %v8105_v18 }
 0x127   : > { %v4825_v27 = vpop.f32.mrf.mxu0  ;;  %v4869_v48 = vpop.f32.mrf.mxu1  ;;  %5280 = vmatpush3.bf16.msra.mxu1 %v5787_v26  ;;  %v1825_v26 = vrot.slane %v6099_v47, 2 }
 0x128   : > { %5281 = vmatprep.subr.bf16.mxu1 %v8105_v18 }
 0x129   : > { %v6716_v15 = vpop.f32.mrf.mxu0  ;;  %v6718_v20 = vpop.f32.mrf.mxu1  ;;  %v1826_v32 = vor.u32 %v1825_v26, %v1824_v44  ;;  %v1828_v26 = vrot.slane %v6157_v6, 1 }
 0x12a   : > { %8130 = vst [vmem:[#allocation62_spill] sm:$0xff] %v6718_v20  ;;  %v5791_v20 = vld [vmem:[%s8004_s1 + $0x168] sm:$0xff]  }
 0x12b   : > { %v4826_v27 = vpop.f32.mrf.mxu0  ;;  %v4870_v48 = vpop.f32.mrf.mxu1  ;;  %5282 = vmatpush3.bf16.msra.mxu1 %v5789_v57  ;;  %v5790_v57 = vld [vmem:[%s8004_s1 + $0x1b0] sm:$0xff]   ;;  %v1827_v44 = vsel %vm1816_vm3, %v1822_v30, %v1826_v32 }
 0x12c   : > { %5283 = vmatprep.subr.bf16.mxu1 %v8105_v18 }
 0x12d   : > { %v6733_v9 = vpop.f32.mrf.mxu0  ;;  %v6735_v12 = vpop.f32.mrf.mxu1  ;;  %5100 = vmatmul.mubr.bf16.gmra.mxu1 %v6437_v56  ;;  %5196 = vmatmul.mubr.bf16.vlgmr.msra.gmra.mxu0 %v1823_v46  ;;  %v5793_v46 = vld [vmem:[%s8004_s1 + $0x160] sm:$0xff]  }
 0x12e   : > { %8132 = vst [vmem:[#allocation63_spill] sm:$0xff] %v6735_v12  ;;  %5380 = vmatpush3.bf16.msra.mxu0 %v5788_v14  ;;  %5103 = vmatprep.mubr.msk.bf16.mxu1 %vm5915_vm0, %v8105_v18 }
 0x12f   : > { %v4829_v27 = vpop.f32.mrf.mxu0  ;;  %v4873_v48 = vpop.f32.mrf.mxu1  ;;  %5199 = vmatprep.mubr.msk.bf16.mxu0 %vm5915_vm0, %v8105_v18  ;;  %5381 = vmatprep.subr.bf16.mxu0 %v8105_v18 }
 0x130   : > { %5284 = vmatpush3.bf16.msra.mxu1 %v5791_v20  ;;  %v1829_v27 = vrot.slane %v6130_v59, 2  ;;  %v5792_v20 = vld [vmem:[%s8004_s1 + $0x1a8] sm:$0xff]  }
 0x131   : > { %v6749_v56 = vpop.f32.mrf.mxu0  ;;  %v6751_v14 = vpop.f32.mrf.mxu1  ;;  %5285 = vmatprep.subr.bf16.mxu1 %v8105_v18 }
 0x132   : > { %8133 = vst [vmem:[#allocation64_spill] sm:$0xff] %v6751_v14  ;;  %5382 = vmatpush3.bf16.msra.mxu0 %v5790_v57 }
 0x133   : > { %v4830_v48 = vpop.f32.mrf.mxu0  ;;  %v4874_v47 = vpop.f32.mrf.mxu1  ;;  %5383 = vmatprep.subr.bf16.mxu0 %v8105_v18 }
 0x134   : > { %5286 = vmatpush3.bf16.msra.mxu1 %v5793_v46  ;;  %v1830_v47 = vor.u32 %v1829_v27, %v1828_v26  ;;  %v5794_v48 = vld [vmem:[%s8004_s1 + $0x1a0] sm:$0xff]   ;;  %v1832_v27 = vrot.slane %v6219_v51, 1 }
 0x135   : > { %v6764_v14 = vpop.f32.mrf.mxu0  ;;  %v6766_v30 = vpop.f32.mrf.mxu1  ;;  %5104 = vmatmul.mubr.bf16.gmra.mxu1 %v6463_v49  ;;  %5200 = vmatmul.mubr.bf16.gmra.mxu0 %v1827_v44  ;;  %v5797_v49 = vld [vmem:[%s8004_s1 + $0x150] sm:$0xff]  }
 0x136   : > { %8134 = vst [vmem:[#allocation65_spill] sm:$0xff] %v6766_v30  ;;  %5107 = vmatprep.mubr.msk.bf16.mxu1 %vm5915_vm0, %v8105_v18  ;;  %5203 = vmatprep.mubr.msk.bf16.mxu0 %vm5915_vm0, %v8105_v18  ;;  %v1831_v26 = vsel %vm1816_vm3, %v1826_v32, %v1830_v47 }
 0x137   : > { %v4833_v57 = vpop.f32.mrf.mxu0  ;;  %v4877_v46 = vpop.f32.mrf.mxu1  ;;  %5384 = vmatpush3.bf16.msra.mxu0 %v5792_v20  ;;  %5287 = vmatprep.subr.bf16.mxu1 %v8105_v18  ;;  %v1833_v20 = vrot.slane %v6160_v8, 2 }
 0x138   : > { %5385 = vmatprep.subr.bf16.mxu0 %v8105_v18  ;;  %5288 = vmatpush3.bf16.msra.mxu1 %v5795_v0  ;;  %v5796_v0 = vld [vmem:[%s8004_s1 + $0x198] sm:$0xff]  }
 0x139   : > { %v6781_v44 = vpop.f32.mrf.mxu0  ;;  %v839_v59 = vpop.f32.mrf.mxu1  ;;  %5289 = vmatprep.subr.bf16.mxu1 %v8105_v18 }
 0x13a   : > { %v5799_v59 = vld [vmem:[%s8004_s1 + $0x148] sm:$0xff]  }
 0x13b   : > { %v4834_v57 = vpop.f32.mrf.mxu0  ;;  %v4878_v46 = vpop.f32.mrf.mxu1  ;;  %5386 = vmatpush3.bf16.msra.mxu0 %v5794_v48  ;;  %v1834_v48 = vor.u32 %v1833_v20, %v1832_v27  ;;  %v1836_v20 = vrot.slane %v6243_v19, 1 }
 0x13c   : > { %5387 = vmatprep.subr.bf16.mxu0 %v8105_v18  ;;  %5290 = vmatpush3.bf16.msra.mxu1 %v5797_v49  ;;  %v5798_v49 = vld [vmem:[%s8004_s1 + $0x190] sm:$0xff]  }
 0x13d   : > { %v6794_v6 = vpop.f32.mrf.mxu0  ;;  %v945_v32 = vpop.f32.mrf.mxu1  ;;  %5108 = vmatmul.mubr.bf16.gmra.mxu1 %v6482_v50  ;;  %5204 = vmatmul.mubr.bf16.gmra.mxu0 %v1831_v26  ;;  %v5802_v50 = vld [vmem:[%s8004_s1 + $0x140] sm:$0xff]   ;;  %v1835_v27 = vsel %vm1816_vm3, %v1830_v47, %v1834_v48 }
 0x13e   : > { %5111 = vmatprep.mubr.msk.bf16.mxu1 %vm5915_vm0, %v8105_v18  ;;  %5207 = vmatprep.mubr.msk.bf16.mxu0 %vm5915_vm0, %v8105_v18  ;;  %v946_v51 = vadd.f32 %v945_v32, %v6575_v5  ;;  %v5803_v5 = vld [vmem:[%s8004_s1 + $0x180] sm:$0xff]  }
 0x13f   : > { %v4837_v57 = vpop.f32.mrf.mxu0  ;;  %v4897_v46 = vpop.f32.mrf.mxu1  ;;  %5388 = vmatpush3.bf16.msra.mxu0 %v5796_v0  ;;  %5291 = vmatprep.subr.bf16.mxu1 %v8105_v18  ;;  %v1837_v0 = vrot.slane %v6191_v33, 2 }
 0x140   : > { %5389 = vmatprep.subr.bf16.mxu0 %v8105_v18  ;;  %5292 = vmatpush3.bf16.msra.mxu1 %v5799_v59  ;;  %v5800_v59 = vld [vmem:[%s8004_s1 + $0x188] sm:$0xff]  }
 0x141   : > { %v6809_v26 = vpop.f32.mrf.mxu0  ;;  %v948_v8 = vpop.f32.mrf.mxu1  ;;  %5293 = vmatprep.subr.bf16.mxu1 %v8105_v18 }
 0x143   : > { %v4838_v57 = vpop.f32.mrf.mxu0  ;;  %v4898_v46 = vpop.f32.mrf.mxu1  ;;  %5390 = vmatpush3.bf16.msra.mxu0 %v5798_v49  ;;  %v1838_v49 = vor.u32 %v1837_v0, %v1836_v20  ;;  %v1841_v20 = vrot.slane %v6262_v42, 2 }
 0x144   : > { %5391 = vmatprep.subr.bf16.mxu0 %v8105_v18  ;;  %5294 = vmatpush3.bf16.msra.mxu1 %v5802_v50 }
 0x145   : > { %v953_v30 = vpop.f32.mrf.mxu1  ;;  %v1273_v12 = vpop.f32.mrf.mxu0  ;;  %5112 = vmatmul.mubr.bf16.gmra.mxu1 %v6493_v13  ;;  %5208 = vmatmul.mubr.bf16.gmra.mxu0 %v1835_v27  ;;  %v949_v13 = vadd.f32 %v948_v8, %v6586_v11  ;;  %v1839_v50 = vsel %vm1816_vm3, %v1834_v48, %v1838_v49  ;;  %v1840_v27 = vrot.slane %v6286_v17, 1 }
 0x146   : > { %v6821_v47 = vadd.f32 %v1273_v12, %v946_v51  ;;  %5115 = vmatprep.mubr.msk.bf16.mxu1 %vm5915_vm0, %v8105_v18  ;;  %5211 = vmatprep.mubr.msk.bf16.mxu0 %vm5915_vm0, %v8105_v18 }
 0x147   : > { %v4901_v57 = vpop.f32.mrf.mxu1  ;;  %v4997_v46 = vpop.f32.mrf.mxu0  ;;  %5392 = vmatpush3.bf16.msra.mxu0 %v5800_v59  ;;  %5479 = vmatprep.subr.bf16.mxu1 %v8105_v18  ;;  %v1842_v48 = vor.u32 %v1841_v20, %v1840_v27 }
 0x148   : > { %5393 = vmatprep.subr.bf16.mxu0 %v8105_v18  ;;  %v954_v57 = vadd.f32 %v953_v30, %v6593_v29 }
 0x149   : > { %v956_v51 = vpop.f32.mrf.mxu1  ;;  %v1276_v12 = vpop.f32.mrf.mxu0 }
 0x14a   : > { %v6833_v32 = vadd.f32 %v1276_v12, %v949_v13  ;;  %v957_v29 = vadd.f32 %v956_v51, %v6604_v40 }
 0x14b   : > { %v4902_v0 = vpop.f32.mrf.mxu1  ;;  %v4998_v59 = vpop.f32.mrf.mxu0  ;;  %5394 = vmatpush3.bf16.msra.mxu0 %v5803_v5 }
 0x14c   : > { %5579 = vmatprep.subr.bf16.mxu0 %v8105_v18  ;;  %v1845_v59 = vrot.slane %v6289_v45, 2 }
 0x14d   : > { %v961_v8 = vpop.f32.mrf.mxu1  ;;  %v1281_v11 = vpop.f32.mrf.mxu0  ;;  %5116 = vmatmul.mubr.bf16.gmra.mxu1 %v6503_v60  ;;  %5212 = vmatmul.mubr.bf16.gmra.mxu0 %v1839_v50  ;;  %v1843_v60 = vsel %vm1816_vm3, %v1838_v49, %v1842_v48  ;;  %v1844_v50 = vrot.slane %v6316_v1, 1 }
 0x14e   : > { %v6841_v46 = vadd.f32 %v1281_v11, %v954_v57  ;;  %5119 = vmatprep.mubr.msk.bf16.mxu1 %vm5915_vm0, %v8105_v18  ;;  %5215 = vmatprep.mubr.msk.bf16.mxu0 %vm5915_vm0, %v8105_v18  ;;  %v962_v42 = vadd.f32 %v961_v8, %v6611_v31 }
 0x14f   : > { %v4905_v13 = vpop.f32.mrf.mxu1  ;;  %v5001_v5 = vpop.f32.mrf.mxu0  ;;  %v1846_v49 = vor.u32 %v1845_v59, %v1844_v50 }
 0x151   : > { %v964_v30 = vpop.f32.mrf.mxu1  ;;  %v1284_v12 = vpop.f32.mrf.mxu0 }
 0x152   : > { %v6848_v0 = vadd.f32 %v1284_v12, %v957_v29  ;;  %v965_v13 = vadd.f32 %v964_v30, %v6622_v54  ;;  %v1849_v29 = vrot.slane %v6345_v38, 2 }
 0x153   : > { %v4906_v57 = vpop.f32.mrf.mxu1  ;;  %v5002_v11 = vpop.f32.mrf.mxu0 }
 0x155   : > { %v969_v17 = vpop.f32.mrf.mxu1  ;;  %v1289_v27 = vpop.f32.mrf.mxu0  ;;  %5120 = vmatmul.mubr.bf16.gmra.mxu1 %v6513_v24  ;;  %5216 = vmatmul.mubr.bf16.gmra.mxu0 %v1843_v60  ;;  %v1847_v24 = vsel %vm1816_vm3, %v1842_v48, %v1846_v49 }
 0x156   : > { %v6855_v40 = vadd.f32 %v1289_v27, %v962_v42  ;;  %5123 = vmatprep.mubr.msk.bf16.mxu1 %vm5915_vm0, %v8105_v18  ;;  %5219 = vmatprep.mubr.msk.bf16.mxu0 %vm5915_vm0, %v8105_v18  ;;  %v1848_v42 = vrot.slane %v6358_v22, 1  ;;  %v970_v57 = vadd.f32 %v969_v17, %v6629_v34 }
 0x157   : > { %v4909_v51 = vpop.f32.mrf.mxu1  ;;  %v5005_v20 = vpop.f32.mrf.mxu0 }
 0x158   : > { %v1850_v48 = vor.u32 %v1849_v29, %v1848_v42  ;;  %v1852_v20 = vrot.slane %v6211_v43, 1 }
 0x159   : > { %v972_v5 = vpop.f32.mrf.mxu1  ;;  %v1292_v31 = vpop.f32.mrf.mxu0 }
 0x15a   : > { %v6862_v8 = vadd.f32 %v1292_v31, %v965_v13  ;;  %v973_v27 = vadd.f32 %v972_v5, %v6640_v63  ;;  %v1853_v13 = vrot.slane %v6199_v37, 2 }
 0x15b   : > { %v4910_v12 = vpop.f32.mrf.mxu1  ;;  %v5006_v60 = vpop.f32.mrf.mxu0 }
 0x15d   : > { %v977_v11 = vpop.f32.mrf.mxu1  ;;  %v1297_v50 = vpop.f32.mrf.mxu0  ;;  %5124 = vmatmul.mubr.bf16.gmra.mxu1 %v6523_v61  ;;  %5220 = vmatmul.mubr.bf16.gmra.mxu0 %v1847_v24  ;;  %v1851_v61 = vsel %vm1816_vm3, %v1846_v49, %v1850_v48  ;;  %v1854_v49 = vor.u32 %v1853_v13, %v1852_v20 }
 0x15e   : > { %v6869_v54 = vadd.f32 %v1297_v50, %v970_v57  ;;  %5127 = vmatprep.mubr.msk.bf16.mxu1 %vm5915_vm0, %v8105_v18  ;;  %5223 = vmatprep.mubr.msk.bf16.mxu0 %vm5915_vm0, %v8105_v18  ;;  %v978_v12 = vadd.f32 %v977_v11, %v6647_v55 }
 0x15f   : > { %v4913_v30 = vpop.f32.mrf.mxu1  ;;  %v5009_v59 = vpop.f32.mrf.mxu0 }
 0x160   : > { %v1856_v30 = vrot.slane %v6033_v21, 1  ;;  %v1857_v59 = vrot.slane %v6022_v16, 2 }
 0x161   : > { %v980_v51 = vpop.f32.mrf.mxu1  ;;  %v1300_v17 = vpop.f32.mrf.mxu0 }
 0x162   : > { %v6876_v34 = vadd.f32 %v1300_v17, %v973_v27  ;;  %v981_v57 = vadd.f32 %v980_v51, %v6660_v10 }
 0x163   : > { %v4914_v31 = vpop.f32.mrf.mxu1  ;;  %v5010_v24 = vpop.f32.mrf.mxu0 }
 0x165   : > { %v985_v60 = vpop.f32.mrf.mxu1  ;;  %v1305_v42 = vpop.f32.mrf.mxu0  ;;  %5128 = vmatmul.mubr.bf16.gmra.mxu1 %v6533_v28  ;;  %5224 = vmatmul.mubr.bf16.gmra.mxu0 %v1851_v61  ;;  %v1855_v28 = vsel %vm1816_vm3, %v1850_v48, %v1854_v49  ;;  %v1858_v48 = vor.u32 %v1857_v59, %v1856_v30 }
 0x166   : > { %v6883_v63 = vadd.f32 %v1305_v42, %v978_v12  ;;  %5131 = vmatprep.mubr.msk.bf16.mxu1 %vm5915_vm0, %v8105_v18  ;;  %5227 = vmatprep.mubr.msk.bf16.mxu0 %vm5915_vm0, %v8105_v18  ;;  %v986_v61 = vadd.f32 %v985_v60, %v6668_v52  ;;  %v1860_v42 = vrot.slane %v6065_v35, 1 }
 0x167   : > { %v4917_v5 = vpop.f32.mrf.mxu1  ;;  %v5013_v29 = vpop.f32.mrf.mxu0 }
 0x168   : > { %v1861_v5 = vrot.slane %v6037_v23, 2 }
 0x169   : > { %v988_v50 = vpop.f32.mrf.mxu1  ;;  %v1308_v55 = vpop.f32.mrf.mxu0 }
 0x16a   : > { %v6890_v11 = vadd.f32 %v1308_v55, %v981_v57  ;;  %v989_v24 = vadd.f32 %v988_v50, %v6679_v41 }
 0x16b   : > { %v4918_v27 = vpop.f32.mrf.mxu1  ;;  %v5014_v17 = vpop.f32.mrf.mxu0 }
 0x16d   : > { %v993_v31 = vpop.f32.mrf.mxu1  ;;  %v1313_v20 = vpop.f32.mrf.mxu0  ;;  %5132 = vmatmul.mubr.bf16.gmra.mxu1 %v6543_v2  ;;  %5228 = vmatmul.mubr.bf16.gmra.mxu0 %v1855_v28  ;;  %v1859_v2 = vsel %vm1816_vm3, %v1854_v49, %v1858_v48  ;;  %v1862_v49 = vor.u32 %v1861_v5, %v1860_v42 }
 0x16e   : > { %v6897_v10 = vadd.f32 %v1313_v20, %v986_v61  ;;  %5135 = vmatprep.mubr.msk.bf16.mxu1 %vm5915_vm0, %v8105_v18  ;;  %5231 = vmatprep.mubr.msk.bf16.mxu0 %vm5915_vm0, %v8105_v18  ;;  %v994_v55 = vadd.f32 %v993_v31, %v6685_v3  ;;  %v1864_v31 = vrot.slane %v6114_v53, 1  ;;  %v1865_v20 = vrot.slane %v6068_v36, 2  ;;  %v8161_v36 = vld [vmem:[#allocation52_spill] sm:$0xff] }
 0x16f   : > { %v4921_v51 = vpop.f32.mrf.mxu1  ;;  %v5017_v13 = vpop.f32.mrf.mxu0 }
 0x171   : > { %v996_v12 = vpop.f32.mrf.mxu1  ;;  %v1316_v52 = vpop.f32.mrf.mxu0 }
 0x172   : > { %v6904_v60 = vadd.f32 %v1316_v52, %v989_v24  ;;  %v997_v27 = vadd.f32 %v996_v12, %v6694_v62 }
 0x173   : > { %v4922_v29 = vpop.f32.mrf.mxu1  ;;  %v5018_v57 = vpop.f32.mrf.mxu0 }
 0x175   : > { %v1001_v28 = vpop.f32.mrf.mxu1  ;;  %v1321_v30 = vpop.f32.mrf.mxu0  ;;  %5136 = vmatmul.mubr.bf16.gmra.mxu1 %v6553_v7  ;;  %5232 = vmatmul.mubr.bf16.gmra.mxu0 %v1859_v2  ;;  %v1863_v7 = vsel %vm1816_vm3, %v1858_v48, %v1862_v49  ;;  %v1866_v48 = vor.u32 %v1865_v20, %v1864_v31  ;;  %v8137_v20 = vld [vmem:[#allocation42_spill] sm:$0xff] }
 0x176   : > { %v6911_v41 = vadd.f32 %v1321_v30, %v994_v55  ;;  %5139 = vmatprep.mubr.msk.bf16.mxu1 %vm5915_vm0, %v8105_v18  ;;  %5235 = vmatprep.mubr.msk.bf16.mxu0 %vm5915_vm0, %v8105_v18  ;;  %v1002_v24 = vadd.f32 %v1001_v28, %v6703_v25  ;;  %v8135_v55 = vld [vmem:[#allocation21_spill] sm:$0xff]  ;;  %v8136_v30 = vld [vmem:[#allocation16_spill] sm:$0xff] }
 0x177   : > { %v4925_v50 = vpop.f32.mrf.mxu1  ;;  %v5021_v59 = vpop.f32.mrf.mxu0  ;;  %v1868_v28 = vrot.slane %v8135_v55, 1 }
 0x178   : > { %v1869_v50 = vrot.slane %v8136_v30, 2 }
 0x179   : > { %v1004_v17 = vpop.f32.mrf.mxu1  ;;  %v1324_v3 = vpop.f32.mrf.mxu0 }
 0x17a   : > { %v6918_v61 = vadd.f32 %v1324_v3, %v997_v27  ;;  %v1005_v5 = vadd.f32 %v1004_v17, %v6716_v15 }
 0x17b   : > { %v4926_v51 = vpop.f32.mrf.mxu1  ;;  %v5022_v13 = vpop.f32.mrf.mxu0 }
 0x17d   : > { %v1009_v52 = vpop.f32.mrf.mxu1  ;;  %v1329_v2 = vpop.f32.mrf.mxu0  ;;  %5140 = vmatmul.mubr.bf16.gmra.mxu1 %v6563_v39  ;;  %5236 = vmatmul.mubr.bf16.gmra.mxu0 %v1863_v7  ;;  %v1867_v39 = vsel %vm1816_vm3, %v1862_v49, %v1866_v48  ;;  %v1870_v49 = vor.u32 %v1869_v50, %v1868_v28  ;;  %v8140_v50 = vld [vmem:[#allocation45_spill] sm:$0xff] }
 0x17e   : > { %v6925_v62 = vadd.f32 %v1329_v2, %v1002_v24  ;;  %5143 = vmatprep.mubr.msk.bf16.mxu1 %vm5915_vm0, %v8105_v18  ;;  %5239 = vmatprep.mubr.msk.bf16.mxu0 %vm5915_vm0, %v8105_v18  ;;  %v1010_v3 = vadd.f32 %v1009_v52, %v6733_v9 }
 0x17f   : > { %v4929_v12 = vpop.f32.mrf.mxu1  ;;  %v5025_v42 = vpop.f32.mrf.mxu0  ;;  %v1871_v2 = vsel %vm1816_vm3, %v1866_v48, %v1870_v49 }
 0x180   : > { %v8138_v12 = vld [vmem:[#allocation24_spill] sm:$0xff] }
 0x181   : > { %v1012_v29 = vpop.f32.mrf.mxu1  ;;  %v1332_v25 = vpop.f32.mrf.mxu0  ;;  %v1872_v42 = vrot.slane %v8138_v12, 1  ;;  %v8155_v12 = vld [vmem:[#allocation37_spill] sm:$0xff] }
 0x182   : > { %v6932_v57 = vadd.f32 %v1332_v25, %v1005_v5  ;;  %v1013_v13 = vadd.f32 %v1012_v29, %v6749_v56  ;;  %v8139_v5 = vld [vmem:[#allocation19_spill] sm:$0xff]  ;;  %v1889_v30 = vrot.slane %v8155_v12, 2 }
 0x183   : > { %v4930_v59 = vpop.f32.mrf.mxu1  ;;  %v5026_v27 = vpop.f32.mrf.mxu0  ;;  %v1873_v25 = vrot.slane %v8139_v5, 2 }
 0x185   : > { %v1017_v7 = vpop.f32.mrf.mxu1  ;;  %v1337_v31 = vpop.f32.mrf.mxu0  ;;  %5144 = vmatmul.mubr.bf16.gmra.mxu1 %v8137_v20  ;;  %5240 = vmatmul.mubr.bf16.gmra.mxu0 %v1867_v39  ;;  %v1874_v48 = vor.u32 %v1873_v25, %v1872_v42  ;;  %v8143_v25 = vld [vmem:[#allocation48_spill] sm:$0xff] }
 0x186   : > { %v6939_v15 = vadd.f32 %v1337_v31, %v1010_v3  ;;  %5147 = vmatprep.mubr.msk.bf16.mxu1 %vm5915_vm0, %v8105_v18  ;;  %5243 = vmatprep.mubr.msk.bf16.mxu0 %vm5915_vm0, %v8105_v18  ;;  %v1018_v27 = vadd.f32 %v1017_v7, %v6764_v14 }
 0x187   : > { %v4933_v17 = vpop.f32.mrf.mxu1  ;;  %v5029_v51 = vpop.f32.mrf.mxu0 }
 0x188   : > { %v1875_v51 = vsel %vm1816_vm3, %v1870_v49, %v1874_v48 }
 0x189   : > { %v1020_v24 = vpop.f32.mrf.mxu1  ;;  %v1340_v9 = vpop.f32.mrf.mxu0 }
 0x18a   : > { %v6946_v52 = vadd.f32 %v1340_v9, %v1013_v13  ;;  %v1021_v20 = vadd.f32 %v1020_v24, %v6781_v44  ;;  %v8141_v13 = vld [vmem:[#allocation30_spill] sm:$0xff] }
 0x18b   : > { %v4934_v39 = vpop.f32.mrf.mxu1  ;;  %v5030_v59 = vpop.f32.mrf.mxu0  ;;  %v1876_v9 = vrot.slane %v8141_v13, 1 }
 0x18d   : > { %v1025_v3 = vpop.f32.mrf.mxu1  ;;  %v1345_v28 = vpop.f32.mrf.mxu0  ;;  %5148 = vmatmul.mubr.bf16.gmra.mxu1 %v8140_v50  ;;  %5244 = vmatmul.mubr.bf16.gmra.mxu0 %v1871_v2  ;;  %v8142_v2 = vld [vmem:[#allocation25_spill] sm:$0xff] }
 0x18e   : > { %v6953_v56 = vadd.f32 %v1345_v28, %v1018_v27  ;;  %5151 = vmatprep.mubr.msk.bf16.mxu1 %vm5915_vm0, %v8105_v18  ;;  %5247 = vmatprep.mubr.msk.bf16.mxu0 %vm5915_vm0, %v8105_v18  ;;  %v1877_v39 = vrot.slane %v8142_v2, 2  ;;  %v1026_v28 = vadd.f32 %v1025_v3, %v6794_v6  ;;  %v8146_v2 = vld [vmem:[#allocation43_spill] sm:$0xff] }
 0x18f   : > { %v4937_v29 = vpop.f32.mrf.mxu1  ;;  %v5033_v31 = vpop.f32.mrf.mxu0 }
 0x190   : > { %v1878_v49 = vor.u32 %v1877_v39, %v1876_v9  ;;  %v8147_v39 = vld [vmem:[#allocation51_spill] sm:$0xff] }
 0x191   : > { %v1028_v17 = vpop.f32.mrf.mxu1  ;;  %v1348_v14 = vpop.f32.mrf.mxu0 }
 0x192   : > { %v6960_v7 = vadd.f32 %v1348_v14, %v1021_v20  ;;  %v1029_v31 = vadd.f32 %v1028_v17, %v6809_v26  ;;  %v1879_v14 = vsel %vm1816_vm3, %v1874_v48, %v1878_v49 }
 0x193   : > { %v4938_v59 = vpop.f32.mrf.mxu1  ;;  %v5034_v27 = vpop.f32.mrf.mxu0 }
 0x194   : > { %v8145_v27 = vld [vmem:[#allocation26_spill] sm:$0xff] }
 0x195   : > { %v1033_v50 = vpop.f32.mrf.mxu1  ;;  %v1353_v42 = vpop.f32.mrf.mxu0  ;;  %5152 = vmatmul.mubr.bf16.gmra.mxu1 %v8143_v25  ;;  %5248 = vmatmul.mubr.bf16.gmra.mxu0 %v1875_v51  ;;  %v8144_v51 = vld [vmem:[#allocation31_spill] sm:$0xff] }
 0x196   : > { %v6967_v44 = vadd.f32 %v1353_v42, %v1026_v28  ;;  %5155 = vmatprep.mubr.msk.bf16.mxu1 %vm5915_vm0, %v8105_v18  ;;  %5251 = vmatprep.mubr.msk.bf16.mxu0 %vm5915_vm0, %v8105_v18  ;;  %v1880_v59 = vrot.slane %v8144_v51, 1  ;;  %v1881_v28 = vrot.slane %v8145_v27, 2  ;;  %v1034_v13 = vadd.f32 %v1033_v50, %v8146_v2  ;;  %v8151_v51 = vld [vmem:[#allocation46_spill] sm:$0xff] }
 0x197   : > { %v4941_v24 = vpop.f32.mrf.mxu1  ;;  %v5037_v29 = vpop.f32.mrf.mxu0 }
 0x198   : > { %v1882_v48 = vor.u32 %v1881_v28, %v1880_v59  ;;  %v8148_v29 = vld [vmem:[#allocation44_spill] sm:$0xff] }
 0x199   : > { %v1036_v20 = vpop.f32.mrf.mxu1  ;;  %v1356_v6 = vpop.f32.mrf.mxu0 }
 0x19a   : > { %v6974_v3 = vadd.f32 %v1356_v6, %v1029_v31  ;;  %v1037_v31 = vadd.f32 %v1036_v20, %v8148_v29  ;;  %v264_v20 = vld [vmem:[%s5987_s30 + $0xa4] sm:$0xf] }
 0x19b   : > { %v4942_v42 = vpop.f32.mrf.mxu1  ;;  %v5038_v25 = vpop.f32.mrf.mxu0 }
 0x19c   : > { %v8150_v25 = vld [vmem:[#allocation33_spill] sm:$0xff] }
 0x19d   : > { %v1041_v5 = vpop.f32.mrf.mxu1  ;;  %v1361_v9 = vpop.f32.mrf.mxu0  ;;  %5156 = vmatmul.mubr.bf16.gmra.mxu1 %v8147_v39  ;;  %5252 = vmatmul.mubr.bf16.gmra.mxu0 %v1879_v14  ;;  %v1883_v14 = vsel %vm1816_vm3, %v1878_v49, %v1882_v48 }
 0x19e   : > { %v6981_v26 = vadd.f32 %v1361_v9, %v1034_v13  ;;  %5159 = vmatprep.mubr.msk.bf16.mxu1 %vm5915_vm0, %v8105_v18  ;;  %5255 = vmatprep.mubr.msk.bf16.mxu0 %vm5915_vm0, %v8105_v18  ;;  %v8149_v13 = vld [vmem:[#allocation36_spill] sm:$0xff]  ;;  %v1885_v9 = vrot.slane %v8150_v25, 2  ;;  %v1042_v59 = vadd.f32 %v1041_v5, %v8151_v51  ;;  %v5823_v5 = vld [vmem:[%s5987_s30 + $0xa0] sm:$0xf] }
 0x19f   : > { %v4945_v17 = vpop.f32.mrf.mxu1  ;;  %v5041_v24 = vpop.f32.mrf.mxu0  ;;  %v1884_v42 = vrot.slane %v8149_v13, 1  ;;  %v7004_v51 = vcombine.low %v5823_v5, %v264_v20 }
 0x1a0   : > { %v8152_v24 = vld [vmem:[#allocation54_spill] sm:$0xff] }
 0x1a1   : > { %v1044_v2 = vpop.f32.mrf.mxu1  ;;  %v1364_v50 = vpop.f32.mrf.mxu0  ;;  %v1886_v49 = vor.u32 %v1885_v9, %v1884_v42  ;;  %v8156_v9 = vld [vmem:[#allocation49_spill] sm:$0xff]  ;;  %v1503_v20 = vrot.slane %v7004_v51, 1 }
 0x1a2   : > { %v6988_v6 = vadd.f32 %v1364_v50, %v1037_v31 }
 0x1a3   : > { %v4946_v39 = vpop.f32.mrf.mxu1  ;;  %v5042_v27 = vpop.f32.mrf.mxu0 }
 0x1a4   : > { %v8153_v27 = vld [vmem:[#allocation47_spill] sm:$0xff] }
 0x1a5   : > { %v1049_v28 = vpop.f32.mrf.mxu1  ;;  %v1369_v17 = vpop.f32.mrf.mxu0  ;;  %5160 = vmatmul.mubr.bf16.gmra.mxu1 %v8152_v24  ;;  %5256 = vmatmul.mubr.bf16.gmra.mxu0 %v1883_v14  ;;  %v1045_v39 = vadd.f32 %v1044_v2, %v8153_v27  ;;  %v8157_v27 = vld [vmem:[#allocation58_spill] sm:$0xff] }
 0x1a6   : > { %v6996_v29 = vadd.f32 %v1369_v17, %v1042_v59  ;;  %5163 = vmatprep.mubr.msk.bf16.mxu1 %vm5915_vm0, %v8105_v18  ;;  %5259 = vmatprep.mubr.msk.bf16.mxu0 %vm5915_vm0, %v8105_v18  ;;  %v1887_v59 = vsel %vm1816_vm3, %v1882_v48, %v1886_v49  ;;  %v8154_v17 = vld [vmem:[#allocation39_spill] sm:$0xff] }
 0x1a7   : > { %v4949_v31 = vpop.f32.mrf.mxu1  ;;  %v5045_v50 = vpop.f32.mrf.mxu0  ;;  %v1888_v13 = vrot.slane %v8154_v17, 1 }
 0x1a8   : > { %v1050_v31 = vadd.f32 %v1049_v28, %v8156_v9  ;;  %v8057_v28 = vshrl.u32 %v7004_v51, 16 }
 0x1a9   : > { %v1052_v25 = vpop.f32.mrf.mxu1  ;;  %v1372_v24 = vpop.f32.mrf.mxu0  ;;  %v1890_v48 = vor.u32 %v1889_v30, %v1888_v13 }
 0x1aa   : > { %v7006_v14 = vadd.f32 %v1372_v24, %v1045_v39  ;;  %v1895_v5 = vrot.slane %v8057_v28, 1 }
 0x1ab   : > { %v4950_v55 = vpop.f32.mrf.mxu1  ;;  %v5046_v42 = vpop.f32.mrf.mxu0  ;;  %v1891_v13 = vsel %vm1816_vm3, %v1886_v49, %v1890_v48 }
 0x1ac   : > { %v7021_v55 = vld [vmem:[%s5987_s30 + $0xa8] sm:$0xf] }
 0x1ad   : > { %v1057_v50 = vpop.f32.mrf.mxu1  ;;  %v1377_v2 = vpop.f32.mrf.mxu0  ;;  %5164 = vmatmul.mubr.bf16.gmra.mxu1 %v8157_v27  ;;  %5260 = vmatmul.mubr.bf16.gmra.mxu0 %v1887_v59  ;;  %v8158_v59 = vld [vmem:[#allocation50_spill] sm:$0xff]  ;;  %v7030_v17 = vcombine.low %v7021_v55, %v7021_v55 }
 0x1ae   : > { %v7014_v39 = vadd.f32 %v1377_v2, %v1050_v31  ;;  %5167 = vmatprep.mubr.msk.bf16.mxu1 %vm5915_vm0, %v8105_v18  ;;  %5263 = vmatprep.mubr.msk.bf16.mxu0 %vm5915_vm0, %v8105_v18  ;;  %v1053_v9 = vadd.f32 %v1052_v25, %v8158_v59  ;;  %v8159_v2 = vld [vmem:[#allocation56_spill] sm:$0xff]  ;;  %v1058_v53 = vadd.f32 %v1057_v50, %v8161_v36 }
 0x1af   : > { %v4953_v24 = vpop.f32.mrf.mxu1  ;;  %v5049_v42 = vpop.f32.mrf.mxu0  ;;  %v1504_v12 = vsel %vm1128_vm2, %v8159_v2, %v1503_v20  ;;  %v1505_v35 = vrot.slane %v7030_v17, 1 }
 0x1b0   : > { %v8160_v24 = vshll.u32 %v7004_v51, 16 }
 0x1b1   : > { %v1060_v27 = vpop.f32.mrf.mxu1  ;;  %v1380_v31 = vpop.f32.mrf.mxu0 }
 0x1b2   : > { %v7032_v30 = vadd.f32 %v1380_v31, %v1053_v9  ;;  %v1898_v42 = vrot.slane %v8160_v24, 2  ;;  %v1902_v31 = vshrl.u32 %v7030_v17, 16  ;;  %v1905_v24 = vshll.u32 %v7030_v17, 16 }
 0x1b3   : > { %v4954_v25 = vpop.f32.mrf.mxu1  ;;  %v5050_v59 = vpop.f32.mrf.mxu0 }
 0x1b4   : > { %v1899_v49 = vor.u32 %v1898_v42, %v1895_v5  ;;  %v8162_v25 = vld [vmem:[#allocation53_spill] sm:$0xff]  ;;  %v1904_v16 = vrot.slane %v1902_v31, 1  ;;  %v1907_v21 = vrot.slane %v1905_v24, 2  ;;  %v8163_v42 = vld [vmem:[#allocation55_spill] sm:$0xff] }
 0x1b5   : > { %v1065_v23 = vpop.f32.mrf.mxu1  ;;  %v1385_v2 = vpop.f32.mrf.mxu0  ;;  %5168 = vmatmul.mubr.bf16.gmra.mxu1 %v1504_v12  ;;  %5264 = vmatmul.mubr.bf16.gmra.mxu0 %v1891_v13  ;;  %v1061_v12 = vadd.f32 %v1060_v27, %v8162_v25  ;;  %v8164_v31 = vld [vmem:[#allocation57_spill] sm:$0xff]  ;;  %v8165_v25 = vld [vmem:[#allocation59_spill] sm:$0xff] }
 0x1b6   : > { %v7041_v9 = vadd.f32 %v1385_v2, %v1058_v53  ;;  %5171 = vmatprep.mubr.msk.bf16.mxu1 %vm5915_vm0, %v8105_v18  ;;  %5267 = vmatprep.mubr.msk.bf16.mxu0 %vm5915_vm0, %v8105_v18  ;;  %v1506_v53 = vsel %vm1128_vm2, %v1503_v20, %v1505_v35  ;;  %v1900_v28 = vsel %vm1816_vm3, %v1890_v48, %v1899_v49 }
 0x1b7   : > { %v4957_v36 = vpop.f32.mrf.mxu1  ;;  %v5053_v50 = vpop.f32.mrf.mxu0  ;;  %v1066_v43 = vadd.f32 %v1065_v23, %v8163_v42  ;;  %v1908_v20 = vor.u32 %v1907_v21, %v1904_v16  ;;  %v5824_v21 = vld [vmem:[%s5987_s30 + $0x8] sm:$0xff]  }
 0x1b9   : > { %v1068_v13 = vpop.f32.mrf.mxu1  ;;  %v1388_v59 = vpop.f32.mrf.mxu0 }
 0x1ba   : > { %v7051_v2 = vadd.f32 %v1388_v59, %v1061_v12 }
 0x1bb   : > { %v4958_v37 = vpop.f32.mrf.mxu1  ;;  %v5054_v5 = vpop.f32.mrf.mxu0 }
 0x1bc   : > { %v1069_v37 = vadd.f32 %v1068_v13, %v8164_v31  ;;  %v2238_v13 = vrot.slane %v5824_v21, 2  ;;  %v7074_v5 = vld [vmem:[%s5987_s30 + $0x10] sm:$0xff]  }
 0x1bd   : > { %v1073_v38 = vpop.f32.mrf.mxu1  ;;  %v1393_v22 = vpop.f32.mrf.mxu0  ;;  %5172 = vmatmul.mubr.bf16.gmra.mxu1 %v1506_v53  ;;  %5268 = vmatmul.mubr.bf16.gmra.mxu0 %v1900_v28 }
 0x1be   : > { %v7055_v36 = vadd.f32 %v1393_v22, %v1066_v43  ;;  %5175 = vmatprep.mubr.msk.bf16.mxu1 %vm5915_vm0, %v8105_v18  ;;  %5271 = vmatprep.mubr.msk.bf16.mxu0 %vm5915_vm0, %v8105_v18  ;;  %v1909_v43 = vsel %vm1816_vm3, %v1899_v49, %v1908_v20  ;;  %v1074_v12 = vadd.f32 %v1073_v38, %v8165_v25  ;;  %v2239_v49 = vrot.slane %v7074_v5, 2  ;;  %v8167_v25 = vld [vmem:[#allocation61_spill] sm:$0xff] }
 0x1bf   : > { %v4961_v48 = vpop.f32.mrf.mxu1  ;;  %v5057_v27 = vpop.f32.mrf.mxu0 }
 0x1c0   : > { %v8166_v48 = vld [vmem:[#allocation60_spill] sm:$0xff] }
 0x1c1   : > { %v1076_v24 = vpop.f32.mrf.mxu1  ;;  %v1396_v23 = vpop.f32.mrf.mxu0 }
 0x1c2   : > { %v7062_v50 = vadd.f32 %v1396_v23, %v1069_v37  ;;  %v2240_v23 = vsel %vm2237_vm4, %v2238_v13, %v2239_v49  ;;  %v7092_v13 = vld [vmem:[%s5987_s30 + $0x18] sm:$0xff]  }
 0x1c3   : > { %v4962_v22 = vpop.f32.mrf.mxu1  ;;  %v5058_v28 = vpop.f32.mrf.mxu0 }
 0x1c4   : > { %v5804_v28 = vld [vmem:[%s8004_s1 + $0x1f8] sm:$0xff]  }
 0x1c5   : > { %v1081_v59 = vpop.f32.mrf.mxu1  ;;  %v1401_v53 = vpop.f32.mrf.mxu0  ;;  %5176 = vmatmul.mubr.bf16.gmra.mxu1 %v1505_v35  ;;  %5272 = vmatmul.mubr.bf16.gmra.mxu0 %v1909_v43  ;;  %v1077_v35 = vadd.f32 %v1076_v24, %v8166_v48 }
 0x1c6   : > { %v7066_v16 = vadd.f32 %v1401_v53, %v1074_v12  ;;  %5275 = vmatprep.mubr.msk.bf16.mxu0 %vm5915_vm0, %v8105_v18  ;;  %5295 = vmatprep.mubr.msk.bf16.mxu1 %vm5915_vm0, %v8105_v18  ;;  %v1082_v12 = vadd.f32 %v1081_v59, %v8167_v25 }
 0x1c7   : > { %v4965_v42 = vpop.f32.mrf.mxu1  ;;  %v5061_v38 = vpop.f32.mrf.mxu0 }
 0x1c8   : > { %v2241_v42 = vrot.slane %v7092_v13, 2 }
 0x1c9   : > { %v1084_v27 = vpop.f32.mrf.mxu1  ;;  %v1404_v31 = vpop.f32.mrf.mxu0 }
 0x1ca   : > { %v7078_v37 = vadd.f32 %v1404_v31, %v1077_v35  ;;  %v1085_v59 = vadd.f32 %v1084_v27, %v6696_v58  ;;  %v5808_v58 = vld [vmem:[%s8004_s1 + $0x1e8] sm:$0xff]  }
 0x1cb   : > { %v4966_v43 = vpop.f32.mrf.mxu1  ;;  %v5062_v22 = vpop.f32.mrf.mxu0 }
 0x1cc   : > { %v2242_v43 = vsel %vm2237_vm4, %v2239_v49, %v2241_v42  ;;  %v5805_v22 = vld [vmem:[%s8004_s1 + $0x238] sm:$0xff]  }
 0x1cd   : > { %v1089_v53 = vpop.f32.mrf.mxu1  ;;  %v1409_v21 = vpop.f32.mrf.mxu0  ;;  %5276 = vmatmul.mubr.bf16.gmra.mxu0 %v1908_v20  ;;  %5296 = vmatmul.mubr.bf16.vlgmr.msra.gmra.mxu1 %v2240_v23  ;;  %v5806_v20 = vld [vmem:[%s8004_s1 + $0x1f0] sm:$0xff]  }
 0x1ce   : > { %v7085_v24 = vadd.f32 %v1409_v21, %v1082_v12  ;;  %5299 = vmatprep.mubr.msk.bf16.mxu1 %vm5915_vm0, %v8105_v18  ;;  %5395 = vmatprep.mubr.msk.bf16.mxu0 %vm5915_vm0, %v8105_v18  ;;  %v1090_v12 = vadd.f32 %v1089_v53, %v6705_v4  ;;  %v5807_v53 = vld [vmem:[%s8004_s1 + $0x230] sm:$0xff]  }
 0x1cf   : > { %v4969_v38 = vpop.f32.mrf.mxu1  ;;  %v5065_v48 = vpop.f32.mrf.mxu0  ;;  %5480 = vmatpush3.bf16.msra.mxu1 %v5804_v28 }
 0x1d0   : > { %5481 = vmatprep.subr.bf16.mxu1 %v8105_v18  ;;  %v7116_v38 = vld [vmem:[%s5987_s30 + $0x20] sm:$0xff]  }
 0x1d1   : > { %v1092_v35 = vpop.f32.mrf.mxu1  ;;  %v1412_v31 = vpop.f32.mrf.mxu0  ;;  %v2243_v4 = vrot.slane %v7116_v38, 2 }
 0x1d2   : > { %v7100_v23 = vadd.f32 %v1412_v31, %v1085_v59  ;;  %v8168_v59 = vld [vmem:[#allocation62_spill] sm:$0xff] }
 0x1d3   : > { %v4970_v28 = vpop.f32.mrf.mxu1  ;;  %v5066_v25 = vpop.f32.mrf.mxu0  ;;  %5482 = vmatpush3.bf16.msra.mxu1 %v5806_v20  ;;  %v1093_v31 = vadd.f32 %v1092_v35, %v8168_v59  ;;  %v5809_v35 = vld [vmem:[%s8004_s1 + $0x228] sm:$0xff]   ;;  %v5812_v59 = vld [vmem:[%s8004_s1 + $0x1d8] sm:$0xff]  }
 0x1d4   : > { %5483 = vmatprep.subr.bf16.mxu1 %v8105_v18 }
 0x1d5   : > { %v1097_v27 = vpop.f32.mrf.mxu1  ;;  %v1417_v21 = vpop.f32.mrf.mxu0  ;;  %5300 = vmatmul.mubr.bf16.gmra.mxu1 %v2242_v43  ;;  %5396 = vmatmul.mubr.bf16.vlgmr.msra.gmra.mxu0 %v2242_v43  ;;  %v5810_v43 = vld [vmem:[%s8004_s1 + $0x1e0] sm:$0xff]  }
 0x1d6   : > { %v7111_v49 = vadd.f32 %v1417_v21, %v1090_v12  ;;  %5580 = vmatpush3.bf16.msra.mxu0 %v5805_v22  ;;  %5303 = vmatprep.mubr.msk.bf16.mxu1 %vm5915_vm0, %v8105_v18  ;;  %v2244_v12 = vsel %vm2237_vm4, %v2241_v42, %v2243_v4 }
 0x1d7   : > { %v4973_v48 = vpop.f32.mrf.mxu1  ;;  %v5069_v20 = vpop.f32.mrf.mxu0  ;;  %5399 = vmatprep.mubr.msk.bf16.mxu0 %vm5915_vm0, %v8105_v18  ;;  %5581 = vmatprep.subr.bf16.mxu0 %v8105_v18 }
 0x1d8   : > { %5484 = vmatpush3.bf16.msra.mxu1 %v5808_v58  ;;  %v8169_v58 = vld [vmem:[#allocation63_spill] sm:$0xff] }
 0x1d9   : > { %v1100_v22 = vpop.f32.mrf.mxu1  ;;  %v1420_v28 = vpop.f32.mrf.mxu0  ;;  %5485 = vmatprep.subr.bf16.mxu1 %v8105_v18  ;;  %v1098_v20 = vadd.f32 %v1097_v27, %v8169_v58 }
 0x1da   : > { %v7130_v25 = vadd.f32 %v1420_v28, %v1093_v31  ;;  %5582 = vmatpush3.bf16.msra.mxu0 %v5807_v53  ;;  %v7148_v53 = vld [vmem:[%s5987_s30 + $0x28] sm:$0xff]  }
 0x1db   : > { %v4974_v21 = vpop.f32.mrf.mxu1  ;;  %v5070_v48 = vpop.f32.mrf.mxu0  ;;  %5583 = vmatprep.subr.bf16.mxu0 %v8105_v18  ;;  %v2245_v27 = vrot.slane %v7148_v53, 2 }
 0x1dc   : > { %5486 = vmatpush3.bf16.msra.mxu1 %v5810_v43  ;;  %v5811_v48 = vld [vmem:[%s8004_s1 + $0x220] sm:$0xff]  }
 0x1dd   : > { %v1105_v31 = vpop.f32.mrf.mxu1  ;;  %v1425_v28 = vpop.f32.mrf.mxu0  ;;  %5304 = vmatmul.mubr.bf16.gmra.mxu1 %v2244_v12  ;;  %5400 = vmatmul.mubr.bf16.gmra.mxu0 %v2244_v12  ;;  %v8170_v12 = vld [vmem:[#allocation64_spill] sm:$0xff] }
 0x1de   : > { %v7141_v42 = vadd.f32 %v1425_v28, %v1098_v20  ;;  %5307 = vmatprep.mubr.msk.bf16.mxu1 %vm5915_vm0, %v8105_v18  ;;  %5403 = vmatprep.mubr.msk.bf16.mxu0 %vm5915_vm0, %v8105_v18  ;;  %v1101_v58 = vadd.f32 %v1100_v22, %v8170_v12  ;;  %v5814_v20 = vld [vmem:[%s8004_s1 + $0x1d0] sm:$0xff]   ;;  %v5813_v22 = vld [vmem:[%s8004_s1 + $0x218] sm:$0xff]  }
 0x1df   : > { %v4977_v43 = vpop.f32.mrf.mxu1  ;;  %v5073_v21 = vpop.f32.mrf.mxu0  ;;  %5584 = vmatpush3.bf16.msra.mxu0 %v5809_v35  ;;  %5487 = vmatprep.subr.bf16.mxu1 %v8105_v18 }
 0x1e0   : > { %5585 = vmatprep.subr.bf16.mxu0 %v8105_v18  ;;  %5488 = vmatpush3.bf16.msra.mxu1 %v5812_v59  ;;  %v2246_v43 = vsel %vm2237_vm4, %v2243_v4, %v2245_v27  ;;  %v8171_v59 = vld [vmem:[#allocation65_spill] sm:$0xff] }
 0x1e1   : > { %v1108_v28 = vpop.f32.mrf.mxu1  ;;  %v1428_v45 = vpop.f32.mrf.mxu0  ;;  %5489 = vmatprep.subr.bf16.mxu1 %v8105_v18  ;;  %v1106_v12 = vadd.f32 %v1105_v31, %v8171_v59  ;;  %v7180_v31 = vld [vmem:[%s5987_s30 + $0x30] sm:$0xff]  }
 0x1e2   : > { %v7161_v35 = vadd.f32 %v1428_v45, %v1101_v58  ;;  %v5816_v45 = vld [vmem:[%s8004_s1 + $0x1c8] sm:$0xff]   ;;  %8172 = vst [vmem:[#allocation42_spill] sm:$0xff] %v7180_v31 }
 0x1e3   : > { %v4978_v21 = vpop.f32.mrf.mxu1  ;;  %v5074_v1 = vpop.f32.mrf.mxu0  ;;  %5586 = vmatpush3.bf16.msra.mxu0 %v5811_v48  ;;  %v2247_v48 = vrot.slane %v7180_v31, 2 }
 0x1e4   : > { %5587 = vmatprep.subr.bf16.mxu0 %v8105_v18  ;;  %5490 = vmatpush3.bf16.msra.mxu1 %v5814_v20 }
 0x1e5   : > { %v1433_v58 = vpop.f32.mrf.mxu0  ;;  %v1592_v28 = vpop.f32.mrf.mxu1  ;;  %5308 = vmatmul.mubr.bf16.gmra.mxu1 %v2246_v43  ;;  %5404 = vmatmul.mubr.bf16.gmra.mxu0 %v2246_v43  ;;  %v5815_v43 = vld [vmem:[%s8004_s1 + $0x210] sm:$0xff]  }
 0x1e6   : > { %v7172_v4 = vadd.f32 %v1433_v58, %v1106_v12  ;;  %v1758_v1 = vadd.f32 %v1592_v28, %v6821_v47  ;;  %5311 = vmatprep.mubr.msk.bf16.mxu1 %vm5915_vm0, %v8105_v18  ;;  %5407 = vmatprep.mubr.msk.bf16.mxu0 %vm5915_vm0, %v8105_v18  ;;  %v5819_v47 = vld [vmem:[%s8004_s1 + $0x1c0] sm:$0xff]  }
 0x1e7   : > { %v5077_v20 = vpop.f32.mrf.mxu0  ;;  %v5097_v21 = vpop.f32.mrf.mxu1  ;;  %5588 = vmatpush3.bf16.msra.mxu0 %v5813_v22  ;;  %5491 = vmatprep.subr.bf16.mxu1 %v8105_v18  ;;  %v2248_v22 = vsel %vm2237_vm4, %v2245_v27, %v2247_v48  ;;  %v7206_v27 = vld [vmem:[%s5987_s30 + $0x38] sm:$0xff]  }
 0x1e8   : > { %5589 = vmatprep.subr.bf16.mxu0 %v8105_v18  ;;  %5492 = vmatpush3.bf16.msra.mxu1 %v5816_v45  ;;  %v5817_v45 = vld [vmem:[%s8004_s1 + $0x208] sm:$0xff]   ;;  %8174 = vst [vmem:[#allocation48_spill] sm:$0xff] %v7206_v27 }
 0x1e9   : > { %v1436_v59 = vpop.f32.mrf.mxu0  ;;  %v1595_v12 = vpop.f32.mrf.mxu1  ;;  %5493 = vmatprep.subr.bf16.mxu1 %v8105_v18 }
 0x1ea   : > { %v1759_v58 = vadd.f32 %v1595_v12, %v6833_v32 }
 0x1eb   : > { %v5078_v28 = vpop.f32.mrf.mxu0  ;;  %v5098_v20 = vpop.f32.mrf.mxu1  ;;  %5590 = vmatpush3.bf16.msra.mxu0 %v5815_v43  ;;  %v2249_v43 = vrot.slane %v7206_v27, 2 }
 0x1ec   : > { %5591 = vmatprep.subr.bf16.mxu0 %v8105_v18  ;;  %5494 = vmatpush3.bf16.msra.mxu1 %v5819_v47 }
 0x1ed   : > { %v1600_v21 = vpop.f32.mrf.mxu1  ;;  %v2013_v59 = vpop.f32.mrf.mxu0  ;;  %5312 = vmatmul.mubr.bf16.gmra.mxu1 %v2248_v22  ;;  %5408 = vmatmul.mubr.bf16.gmra.mxu0 %v2248_v22  ;;  %v5820_v22 = vld [vmem:[%s8004_s1 + $0x200] sm:$0xff]  }
 0x1ee   : > { %v1760_v31 = vadd.f32 %v1600_v21, %v6841_v46  ;;  %v7199_v32 = vadd.f32 %v2013_v59, %v1758_v1  ;;  %5315 = vmatprep.mubr.msk.bf16.mxu1 %vm5915_vm0, %v8105_v18  ;;  %5411 = vmatprep.mubr.msk.bf16.mxu0 %vm5915_vm0, %v8105_v18  ;;  %v2250_v21 = vsel %vm2237_vm4, %v2247_v48, %v2249_v43 }
 0x1ef   : > { %v5101_v12 = vpop.f32.mrf.mxu1  ;;  %v5197_v47 = vpop.f32.mrf.mxu0  ;;  %5592 = vmatpush3.bf16.msra.mxu0 %v5817_v45 }
 0x1f0   : > { %8173 = vst [vmem:[#allocation45_spill] sm:$0xff] %v7199_v32  ;;  %5593 = vmatprep.subr.bf16.mxu0 %v8105_v18 }
 0x1f1   : > { %v1603_v46 = vpop.f32.mrf.mxu1  ;;  %v2016_v1 = vpop.f32.mrf.mxu0 }
 0x1f2   : > { %v1761_v28 = vadd.f32 %v1603_v46, %v6848_v0  ;;  %v7214_v20 = vadd.f32 %v2016_v1, %v1759_v58  ;;  %v7225_v0 = vld [vmem:[%s5987_s30 + $0x40] sm:$0xff]  }
 0x1f3   : > { %v5102_v59 = vpop.f32.mrf.mxu1  ;;  %v5198_v27 = vpop.f32.mrf.mxu0  ;;  %5594 = vmatpush3.bf16.msra.mxu0 %v5820_v22  ;;  %8176 = vst [vmem:[#allocation51_spill] sm:$0xff] %v7225_v0  ;;  %v2251_v48 = vrot.slane %v7225_v0, 2 }
 0x1f5   : > { %v1608_v12 = vpop.f32.mrf.mxu1  ;;  %v2021_v45 = vpop.f32.mrf.mxu0  ;;  %5316 = vmatmul.mubr.bf16.gmra.mxu1 %v2250_v21  ;;  %5412 = vmatmul.mubr.bf16.gmra.mxu0 %v2250_v21 }
 0x1f6   : > { %v1762_v47 = vadd.f32 %v1608_v12, %v6855_v40  ;;  %v7218_v32 = vadd.f32 %v2021_v45, %v1760_v31  ;;  %5319 = vmatprep.mubr.msk.bf16.mxu1 %vm5915_vm0, %v8105_v18  ;;  %5415 = vmatprep.mubr.msk.bf16.mxu0 %vm5915_vm0, %v8105_v18  ;;  %v2252_v31 = vsel %vm2237_vm4, %v2249_v43, %v2251_v48 }
 0x1f7   : > { %v5105_v58 = vpop.f32.mrf.mxu1  ;;  %v5201_v27 = vpop.f32.mrf.mxu0 }
 0x1f8   : > { %8175 = vst [vmem:[#allocation43_spill] sm:$0xff] %v7218_v32 }
 0x1f9   : > { %v1611_v22 = vpop.f32.mrf.mxu1  ;;  %v2024_v46 = vpop.f32.mrf.mxu0 }
 0x1fa   : > { %v1763_v1 = vadd.f32 %v1611_v22, %v6862_v8  ;;  %v7229_v40 = vadd.f32 %v2024_v46, %v1761_v28  ;;  %v7240_v8 = vld [vmem:[%s5987_s30 + $0x48] sm:$0xff]  }
 0x1fb   : > { %v5106_v21 = vpop.f32.mrf.mxu1  ;;  %v5202_v59 = vpop.f32.mrf.mxu0  ;;  %8177 = vst [vmem:[#allocation44_spill] sm:$0xff] %v7240_v8  ;;  %v2253_v43 = vrot.slane %v7240_v8, 2 }
 0x1fd   : > { %v1616_v12 = vpop.f32.mrf.mxu1  ;;  %v2029_v45 = vpop.f32.mrf.mxu0  ;;  %5320 = vmatmul.mubr.bf16.gmra.mxu1 %v2252_v31  ;;  %5416 = vmatmul.mubr.bf16.gmra.mxu0 %v2252_v31 }
 0x1fe   : > { %v1764_v32 = vadd.f32 %v1616_v12, %v6869_v54  ;;  %v7233_v0 = vadd.f32 %v2029_v45, %v1762_v47  ;;  %5323 = vmatprep.mubr.msk.bf16.mxu1 %vm5915_vm0, %v8105_v18  ;;  %5419 = vmatprep.mubr.msk.bf16.mxu0 %vm5915_vm0, %v8105_v18  ;;  %v2254_v47 = vsel %vm2237_vm4, %v2251_v48, %v2253_v43 }
 0x1ff   : > { %v5109_v28 = vpop.f32.mrf.mxu1  ;;  %v5205_v58 = vpop.f32.mrf.mxu0 }
 0x201   : > { %v1619_v27 = vpop.f32.mrf.mxu1  ;;  %v2032_v22 = vpop.f32.mrf.mxu0 }
 0x202   : > { %v1765_v46 = vadd.f32 %v1619_v27, %v6876_v34  ;;  %v7244_v54 = vadd.f32 %v2032_v22, %v1763_v1  ;;  %v7255_v34 = vld [vmem:[%s5987_s30 + $0x50] sm:$0xff]  }
 0x203   : > { %v5110_v31 = vpop.f32.mrf.mxu1  ;;  %v5206_v21 = vpop.f32.mrf.mxu0  ;;  %8178 = vst [vmem:[#allocation46_spill] sm:$0xff] %v7255_v34  ;;  %v2255_v48 = vrot.slane %v7255_v34, 2 }
 0x205   : > { %v1624_v59 = vpop.f32.mrf.mxu1  ;;  %v2037_v12 = vpop.f32.mrf.mxu0  ;;  %5324 = vmatmul.mubr.bf16.gmra.mxu1 %v2254_v47  ;;  %5420 = vmatmul.mubr.bf16.gmra.mxu0 %v2254_v47 }
 0x206   : > { %v1766_v45 = vadd.f32 %v1624_v59, %v6883_v63  ;;  %v7248_v8 = vadd.f32 %v2037_v12, %v1764_v32  ;;  %5327 = vmatprep.mubr.msk.bf16.mxu1 %vm5915_vm0, %v8105_v18  ;;  %5423 = vmatprep.mubr.msk.bf16.mxu0 %vm5915_vm0, %v8105_v18  ;;  %v2256_v32 = vsel %vm2237_vm4, %v2253_v43, %v2255_v48 }
 0x207   : > { %v5113_v1 = vpop.f32.mrf.mxu1  ;;  %v5209_v28 = vpop.f32.mrf.mxu0 }
 0x209   : > { %v1627_v58 = vpop.f32.mrf.mxu1  ;;  %v2040_v27 = vpop.f32.mrf.mxu0 }
 0x20a   : > { %v1767_v22 = vadd.f32 %v1627_v58, %v6890_v11  ;;  %v7259_v63 = vadd.f32 %v2040_v27, %v1765_v46  ;;  %v7270_v11 = vld [vmem:[%s5987_s30 + $0x58] sm:$0xff]  }
 0x20b   : > { %v5114_v47 = vpop.f32.mrf.mxu1  ;;  %v5210_v31 = vpop.f32.mrf.mxu0  ;;  %8179 = vst [vmem:[#allocation54_spill] sm:$0xff] %v7270_v11  ;;  %v2257_v43 = vrot.slane %v7270_v11, 2 }
 0x20d   : > { %v1632_v21 = vpop.f32.mrf.mxu1  ;;  %v2045_v59 = vpop.f32.mrf.mxu0  ;;  %5328 = vmatmul.mubr.bf16.gmra.mxu1 %v2256_v32  ;;  %5424 = vmatmul.mubr.bf16.gmra.mxu0 %v2256_v32 }
 0x20e   : > { %v1768_v12 = vadd.f32 %v1632_v21, %v6897_v10  ;;  %v7263_v34 = vadd.f32 %v2045_v59, %v1766_v45  ;;  %5331 = vmatprep.mubr.msk.bf16.mxu1 %vm5915_vm0, %v8105_v18  ;;  %5427 = vmatprep.mubr.msk.bf16.mxu0 %vm5915_vm0, %v8105_v18  ;;  %v2258_v45 = vsel %vm2237_vm4, %v2255_v48, %v2257_v43 }
 0x20f   : > { %v5117_v46 = vpop.f32.mrf.mxu1  ;;  %v5213_v1 = vpop.f32.mrf.mxu0 }
 0x211   : > { %v1635_v28 = vpop.f32.mrf.mxu1  ;;  %v2048_v58 = vpop.f32.mrf.mxu0 }
 0x212   : > { %v1769_v27 = vadd.f32 %v1635_v28, %v6904_v60  ;;  %v7274_v10 = vadd.f32 %v2048_v58, %v1767_v22  ;;  %v7285_v60 = vld [vmem:[%s5987_s30 + $0x60] sm:$0xff]  }
 0x213   : > { %v5118_v32 = vpop.f32.mrf.mxu1  ;;  %v5214_v47 = vpop.f32.mrf.mxu0  ;;  %8180 = vst [vmem:[#allocation47_spill] sm:$0xff] %v7285_v60  ;;  %v2259_v48 = vrot.slane %v7285_v60, 2 }
 0x215   : > { %v1640_v31 = vpop.f32.mrf.mxu1  ;;  %v2053_v21 = vpop.f32.mrf.mxu0  ;;  %5332 = vmatmul.mubr.bf16.gmra.mxu1 %v2258_v45  ;;  %5428 = vmatmul.mubr.bf16.gmra.mxu0 %v2258_v45 }
 0x216   : > { %v1770_v59 = vadd.f32 %v1640_v31, %v6911_v41  ;;  %v7278_v11 = vadd.f32 %v2053_v21, %v1768_v12  ;;  %5335 = vmatprep.mubr.msk.bf16.mxu1 %vm5915_vm0, %v8105_v18  ;;  %5431 = vmatprep.mubr.msk.bf16.mxu0 %vm5915_vm0, %v8105_v18  ;;  %v2260_v12 = vsel %vm2237_vm4, %v2257_v43, %v2259_v48 }
 0x217   : > { %v5121_v22 = vpop.f32.mrf.mxu1  ;;  %v5217_v46 = vpop.f32.mrf.mxu0 }
 0x219   : > { %v1643_v1 = vpop.f32.mrf.mxu1  ;;  %v2056_v28 = vpop.f32.mrf.mxu0 }
 0x21a   : > { %v1771_v58 = vadd.f32 %v1643_v1, %v6918_v61  ;;  %v7289_v41 = vadd.f32 %v2056_v28, %v1769_v27  ;;  %v5836_v61 = vld [vmem:[%s5987_s30 + $0x68] sm:$0xff]  }
 0x21b   : > { %v5122_v45 = vpop.f32.mrf.mxu1  ;;  %v5218_v32 = vpop.f32.mrf.mxu0  ;;  %v2261_v27 = vrot.slane %v5836_v61, 2 }
 0x21d   : > { %v1648_v47 = vpop.f32.mrf.mxu1  ;;  %v2061_v31 = vpop.f32.mrf.mxu0  ;;  %5336 = vmatmul.mubr.bf16.gmra.mxu1 %v2260_v12  ;;  %5432 = vmatmul.mubr.bf16.gmra.mxu0 %v2260_v12 }
 0x21e   : > { %v1772_v21 = vadd.f32 %v1648_v47, %v6925_v62  ;;  %v7293_v60 = vadd.f32 %v2061_v31, %v1770_v59  ;;  %5339 = vmatprep.mubr.msk.bf16.mxu1 %vm5915_vm0, %v8105_v18  ;;  %5435 = vmatprep.mubr.msk.bf16.mxu0 %vm5915_vm0, %v8105_v18  ;;  %v2262_v62 = vsel %vm2237_vm4, %v2259_v48, %v2261_v27 }
 0x21f   : > { %v5125_v22 = vpop.f32.mrf.mxu1  ;;  %v5221_v43 = vpop.f32.mrf.mxu0 }
 0x221   : > { %v1651_v46 = vpop.f32.mrf.mxu1  ;;  %v2064_v1 = vpop.f32.mrf.mxu0 }
 0x222   : > { %v1773_v28 = vadd.f32 %v1651_v46, %v6932_v57  ;;  %v7301_v12 = vadd.f32 %v2064_v1, %v1771_v58  ;;  %v5837_v57 = vld [vmem:[%s5987_s30 + $0x70] sm:$0xff]  }
 0x223   : > { %v5126_v59 = vpop.f32.mrf.mxu1  ;;  %v5222_v45 = vpop.f32.mrf.mxu0  ;;  %v2263_v58 = vrot.slane %v5837_v57, 2 }
 0x225   : > { %v1656_v32 = vpop.f32.mrf.mxu1  ;;  %v2069_v47 = vpop.f32.mrf.mxu0  ;;  %5340 = vmatmul.mubr.bf16.gmra.mxu1 %v2262_v62  ;;  %5436 = vmatmul.mubr.bf16.gmra.mxu0 %v2262_v62 }
 0x226   : > { %v1774_v31 = vadd.f32 %v1656_v32, %v6939_v15  ;;  %v7305_v61 = vadd.f32 %v2069_v47, %v1772_v21  ;;  %5343 = vmatprep.mubr.msk.bf16.mxu1 %vm5915_vm0, %v8105_v18  ;;  %5439 = vmatprep.mubr.msk.bf16.mxu0 %vm5915_vm0, %v8105_v18  ;;  %v2264_v15 = vsel %vm2237_vm4, %v2261_v27, %v2263_v58 }
 0x227   : > { %v5129_v22 = vpop.f32.mrf.mxu1  ;;  %v5225_v48 = vpop.f32.mrf.mxu0 }
 0x229   : > { %v1659_v43 = vpop.f32.mrf.mxu1  ;;  %v2072_v46 = vpop.f32.mrf.mxu0 }
 0x22a   : > { %v1775_v1 = vadd.f32 %v1659_v43, %v6946_v52  ;;  %v7313_v62 = vadd.f32 %v2072_v46, %v1773_v28  ;;  %v5838_v52 = vld [vmem:[%s5987_s30 + $0x78] sm:$0xff]  }
 0x22b   : > { %v5130_v21 = vpop.f32.mrf.mxu1  ;;  %v5226_v59 = vpop.f32.mrf.mxu0  ;;  %v2265_v28 = vrot.slane %v5838_v52, 2 }
 0x22d   : > { %v1664_v45 = vpop.f32.mrf.mxu1  ;;  %v2077_v32 = vpop.f32.mrf.mxu0  ;;  %5344 = vmatmul.mubr.bf16.gmra.mxu1 %v2264_v15  ;;  %5440 = vmatmul.mubr.bf16.gmra.mxu0 %v2264_v15 }
 0x22e   : > { %v1776_v47 = vadd.f32 %v1664_v45, %v6953_v56  ;;  %v7317_v57 = vadd.f32 %v2077_v32, %v1774_v31  ;;  %5347 = vmatprep.mubr.msk.bf16.mxu1 %vm5915_vm0, %v8105_v18  ;;  %5443 = vmatprep.mubr.msk.bf16.mxu0 %vm5915_vm0, %v8105_v18  ;;  %v2266_v56 = vsel %vm2237_vm4, %v2263_v58, %v2265_v28 }
 0x22f   : > { %v5133_v22 = vpop.f32.mrf.mxu1  ;;  %v5229_v27 = vpop.f32.mrf.mxu0 }
 0x231   : > { %v1667_v48 = vpop.f32.mrf.mxu1  ;;  %v2080_v43 = vpop.f32.mrf.mxu0 }
 0x232   : > { %v1777_v46 = vadd.f32 %v1667_v48, %v6960_v7  ;;  %v7325_v15 = vadd.f32 %v2080_v43, %v1775_v1  ;;  %v5839_v7 = vld [vmem:[%s5987_s30 + $0x80] sm:$0xff]  }
 0x233   : > { %v5134_v31 = vpop.f32.mrf.mxu1  ;;  %v5230_v21 = vpop.f32.mrf.mxu0  ;;  %v2267_v1 = vrot.slane %v5839_v7, 2 }
 0x235   : > { %v1672_v59 = vpop.f32.mrf.mxu1  ;;  %v2085_v45 = vpop.f32.mrf.mxu0  ;;  %5348 = vmatmul.mubr.bf16.gmra.mxu1 %v2266_v56  ;;  %5444 = vmatmul.mubr.bf16.gmra.mxu0 %v2266_v56 }
 0x236   : > { %v1778_v32 = vadd.f32 %v1672_v59, %v6967_v44  ;;  %v7329_v52 = vadd.f32 %v2085_v45, %v1776_v47  ;;  %5351 = vmatprep.mubr.msk.bf16.mxu1 %vm5915_vm0, %v8105_v18  ;;  %5447 = vmatprep.mubr.msk.bf16.mxu0 %vm5915_vm0, %v8105_v18  ;;  %v2268_v44 = vsel %vm2237_vm4, %v2265_v28, %v2267_v1 }
 0x237   : > { %v5137_v22 = vpop.f32.mrf.mxu1  ;;  %v5233_v58 = vpop.f32.mrf.mxu0 }
 0x239   : > { %v1675_v27 = vpop.f32.mrf.mxu1  ;;  %v2088_v48 = vpop.f32.mrf.mxu0 }
 0x23a   : > { %v1779_v43 = vadd.f32 %v1675_v27, %v6974_v3  ;;  %v7337_v56 = vadd.f32 %v2088_v48, %v1777_v46  ;;  %v5840_v3 = vld [vmem:[%s5987_s30 + $0x88] sm:$0xff]  }
 0x23b   : > { %v5138_v47 = vpop.f32.mrf.mxu1  ;;  %v5234_v31 = vpop.f32.mrf.mxu0  ;;  %v2269_v46 = vrot.slane %v5840_v3, 2 }
 0x23d   : > { %v1680_v21 = vpop.f32.mrf.mxu1  ;;  %v2093_v59 = vpop.f32.mrf.mxu0  ;;  %5352 = vmatmul.mubr.bf16.gmra.mxu1 %v2268_v44  ;;  %5448 = vmatmul.mubr.bf16.gmra.mxu0 %v2268_v44  ;;  %v3742_v44 = vld [vmem:[%s8005_s2] sm:$0xff] }
 0x23e   : > { %v1780_v45 = vadd.f32 %v1680_v21, %v6981_v26  ;;  %v7341_v7 = vadd.f32 %v2093_v59, %v1778_v32  ;;  %5355 = vmatprep.mubr.msk.bf16.mxu1 %vm5915_vm0, %v8105_v18  ;;  %5451 = vmatprep.mubr.msk.bf16.mxu0 %vm5915_vm0, %v8105_v18  ;;  %v2270_v26 = vsel %vm2237_vm4, %v2267_v1, %v2269_v46  ;;  %v5916_v32 = vmov 0   ;;  %v5841_v1 = vld [vmem:[%s5987_s30 + $0x90] sm:$0xff]  }
 0x23f   : > { %v5141_v22 = vpop.f32.mrf.mxu1  ;;  %v5237_v28 = vpop.f32.mrf.mxu0  ;;  %5723 = vset.pattern.permute.xlu0 %v5916_v32  ;;  %5724 = vset.pattern.permute.xlu1 %v5916_v32 }
 0x240   : > { %3785 = vperm.xlu0 %5723, %v3742_v44   ;;  %v2271_v22 = vrot.slane %v5841_v1, 2  ;;  %v3743_v28 = vld [vmem:[%s8005_s2 + $0x8] sm:$0xff] }
 0x241   : > { %v1683_v58 = vpop.f32.mrf.mxu1  ;;  %v2096_v27 = vpop.f32.mrf.mxu0 }
 0x242   : > { %v1781_v48 = vadd.f32 %v1683_v58, %v6988_v6  ;;  %v7349_v47 = vadd.f32 %v2096_v27, %v1779_v43  ;;  %v2272_v44 = vsel %vm2237_vm4, %v2269_v46, %v2271_v22  ;;  %v5842_v46 = vld [vmem:[%s5987_s30 + $0x98] sm:$0xff]  }
 0x243   : > { %v5142_v31 = vpop.f32.mrf.mxu1  ;;  %v5238_v21 = vpop.f32.mrf.mxu0 }
 0x244   : > { %3790 = vperm.xlu0 %5723, %v3743_v28   ;;  %v3744_v31 = vld [vmem:[%s8005_s2 + $0x10] sm:$0xff]  ;;  %v3746_v21 = vld [vmem:[%s8005_s2 + $0x20] sm:$0xff] }
 0x245   : > { %v1688_v59 = vpop.f32.mrf.mxu1  ;;  %v2101_v3 = vpop.f32.mrf.mxu0  ;;  %5356 = vmatmul.mubr.bf16.gmra.mxu1 %v2270_v26  ;;  %5452 = vmatmul.mubr.bf16.gmra.mxu0 %v2270_v26 }
 0x246   : > { %v1782_v6 = vadd.f32 %v1688_v59, %v6996_v29  ;;  %v7356_v43 = vadd.f32 %v2101_v3, %v1780_v45  ;;  %5359 = vmatprep.mubr.msk.bf16.mxu1 %vm5915_vm0, %v8105_v18  ;;  %5455 = vmatprep.mubr.msk.bf16.mxu0 %vm5915_vm0, %v8105_v18 }
 0x247   : > { %v5145_v58 = vpop.f32.mrf.mxu1  ;;  %v5241_v27 = vpop.f32.mrf.mxu0  ;;  %3795 = vperm.xlu1 %5724, %v3744_v31  }
 0x248   : > { %3805 = vperm.xlu0 %5723, %v3746_v21   ;;  %v2273_v58 = vrot.slane %v5842_v46, 2  ;;  %v3745_v27 = vld [vmem:[%s8005_s2 + $0x18] sm:$0xff] }
 0x249   : > { %v1691_v26 = vpop.f32.mrf.mxu1  ;;  %v2104_v32 = vpop.f32.mrf.mxu0 }
 0x24a   : > { %v1783_v29 = vadd.f32 %v1691_v26, %v7006_v14  ;;  %v7367_v45 = vadd.f32 %v2104_v32, %v1781_v48  ;;  %v3748_v26 = vld [vmem:[%s8005_s2 + $0x30] sm:$0xff] }
 0x24b   : > { %v5146_v59 = vpop.f32.mrf.mxu1  ;;  %v5242_v3 = vpop.f32.mrf.mxu0  ;;  %3800 = vperm.xlu1 %5724, %v3745_v27  }
 0x24c   : > { %3815 = vperm.xlu0 %5723, %v3748_v26   ;;  %v2274_v59 = vsel %vm2237_vm4, %v2271_v22, %v2273_v58  ;;  %v3747_v3 = vld [vmem:[%s8005_s2 + $0x28] sm:$0xff] }
 0x24d   : > { %v1696_v1 = vpop.f32.mrf.mxu1  ;;  %v2109_v28 = vpop.f32.mrf.mxu0  ;;  %5360 = vmatmul.mubr.bf16.gmra.mxu1 %v2272_v44  ;;  %5456 = vmatmul.mubr.bf16.gmra.mxu0 %v2272_v44 }
 0x24e   : > { %v1784_v14 = vadd.f32 %v1696_v1, %v7014_v39  ;;  %v7377_v48 = vadd.f32 %v2109_v28, %v1782_v6  ;;  %5363 = vmatprep.mubr.msk.bf16.mxu1 %vm5915_vm0, %v8105_v18  ;;  %5459 = vmatprep.mubr.msk.bf16.mxu0 %vm5915_vm0, %v8105_v18  ;;  %v3750_v1 = vld [vmem:[%s8005_s2 + $0x40] sm:$0xff] }
 0x24f   : > { %v5149_v32 = vpop.f32.mrf.mxu1  ;;  %v5245_v39 = vpop.f32.mrf.mxu0  ;;  %3810 = vperm.xlu1 %5724, %v3747_v3  }
 0x250   : > { %3825 = vperm.xlu0 %5723, %v3750_v1   ;;  %v3749_v32 = vld [vmem:[%s8005_s2 + $0x38] sm:$0xff]  ;;  %v3752_v39 = vld [vmem:[%s8005_s2 + $0x50] sm:$0xff] }
 0x251   : > { %v1699_v6 = vpop.f32.mrf.mxu1  ;;  %v2112_v44 = vpop.f32.mrf.mxu0 }
 0x252   : > { %v1785_v31 = vadd.f32 %v1699_v6, %v7032_v30  ;;  %v7391_v21 = vadd.f32 %v2112_v44, %v1783_v29  ;;  %v2275_v29 = vrot.slane %v7004_v51, 2 }
 0x253   : > { %v5150_v28 = vpop.f32.mrf.mxu1  ;;  %v5246_v46 = vpop.f32.mrf.mxu0  ;;  %3820 = vperm.xlu1 %5724, %v3749_v32  }
 0x254   : > { %3835 = vperm.xlu0 %5723, %v3752_v39   ;;  %v2276_v28 = vsel %vm2237_vm4, %v2273_v58, %v2275_v29 }
 0x255   : > { %v1704_v27 = vpop.f32.mrf.mxu1  ;;  %v2117_v26 = vpop.f32.mrf.mxu0  ;;  %5364 = vmatmul.mubr.bf16.gmra.mxu1 %v2274_v59  ;;  %5460 = vmatmul.mubr.bf16.gmra.mxu0 %v2274_v59 }
 0x256   : > { %v1786_v30 = vadd.f32 %v1704_v27, %v7041_v9  ;;  %v7401_v22 = vadd.f32 %v2117_v26, %v1784_v14  ;;  %5367 = vmatprep.mubr.msk.bf16.mxu1 %vm5915_vm0, %v8105_v18  ;;  %5463 = vmatprep.mubr.msk.bf16.mxu0 %vm5915_vm0, %v8105_v18  ;;  %v266_v14 = vld [vmem:[%s5987_s30 + $0xac] sm:$0xf]  ;;  %v3754_v26 = vld [vmem:[%s8005_s2 + $0x60] sm:$0xff] }
 0x257   : > { %v5153_v6 = vpop.f32.mrf.mxu1  ;;  %v5249_v9 = vpop.f32.mrf.mxu0  ;;  %v7420_v46 = vcombine.low %v7021_v55, %v266_v14  ;;  %v3751_v27 = vld [vmem:[%s8005_s2 + $0x48] sm:$0xff]  ;;  %v7438_v14 = vld [vmem:[%s5987_s30 + $0xb0] sm:$0xf] }
 0x258   : > { %3830 = vperm.xlu1 %5724, %v3751_v27   ;;  %3845 = vperm.xlu0 %5723, %v3754_v26   ;;  %v2277_v6 = vrot.slane %v7030_v17, 2  ;;  %8183 = vst [vmem:[#allocation50_spill] sm:$0xff] %v7438_v14  ;;  %v4453_v17 = vcombine.low %v7438_v14, %v7438_v14 }
 0x259   : > { %v1707_v44 = vpop.f32.mrf.mxu1  ;;  %v2120_v59 = vpop.f32.mrf.mxu0  ;;  %v2612_v9 = vrot.slane %v7420_v46, 2 }
 0x25a   : > { %v1787_v3 = vadd.f32 %v1707_v44, %v7051_v2  ;;  %v7416_v1 = vadd.f32 %v2120_v59, %v1785_v31  ;;  %v3753_v44 = vld [vmem:[%s8005_s2 + $0x58] sm:$0xff] }
 0x25b   : > { %v5154_v32 = vpop.f32.mrf.mxu1  ;;  %v5250_v39 = vpop.f32.mrf.mxu0 }
 0x25c   : > { %8181 = vst [vmem:[#allocation49_spill] sm:$0xff] %v7416_v1  ;;  %3840 = vperm.xlu1 %5724, %v3753_v44   ;;  %v2278_v39 = vsel %vm2237_vm4, %v2275_v29, %v2277_v6  ;;  %v3758_v44 = vld [vmem:[%s8005_s2 + $0x80] sm:$0xff] }
 0x25d   : > { %v1712_v2 = vpop.f32.mrf.mxu1  ;;  %v2125_v31 = vpop.f32.mrf.mxu0  ;;  %5368 = vmatmul.mubr.bf16.gmra.mxu1 %v2276_v28  ;;  %5464 = vmatmul.mubr.bf16.gmra.mxu0 %v2276_v28  ;;  %v8189_v1 = vld [vmem:[#allocation15_spill] sm:$0xff] }
 0x25e   : > { %v1788_v55 = vadd.f32 %v1712_v2, %v7055_v36  ;;  %v7429_v58 = vadd.f32 %v2125_v31, %v1786_v30  ;;  %5371 = vmatprep.mubr.msk.bf16.mxu1 %vm5915_vm0, %v8105_v18  ;;  %5467 = vmatprep.mubr.msk.bf16.mxu0 %vm5915_vm0, %v8105_v18  ;;  %v3756_v36 = vld [vmem:[%s8005_s2 + $0x70] sm:$0xff]  ;;  %v2613_v2 = vsel %vm2237_vm4, %v2275_v29, %v2612_v9  ;;  %v3755_v31 = vld [vmem:[%s8005_s2 + $0x68] sm:$0xff]  ;;  %v2933_v14 = vrot.slane %v8189_v1, 3 }
 0x25f   : > { %v5157_v30 = vpop.f32.mrf.mxu1  ;;  %v5253_v59 = vpop.f32.mrf.mxu0  ;;  %3855 = vperm.xlu0 %5723, %v3756_v36  }
 0x260   : > { %8182 = vst [vmem:[#allocation58_spill] sm:$0xff] %v7429_v58  ;;  %3850 = vperm.xlu1 %5724, %v3755_v31  }
 0x261   : > { %v1715_v28 = vpop.f32.mrf.mxu1  ;;  %v2128_v27 = vpop.f32.mrf.mxu0 }
 0x262   : > { %v1789_v26 = vadd.f32 %v1715_v28, %v7062_v50  ;;  %v7449_v32 = vadd.f32 %v2128_v27, %v1787_v3  ;;  %v2614_v3 = vrot.slane %v4453_v17, 2  ;;  %v3757_v27 = vld [vmem:[%s8005_s2 + $0x78] sm:$0xff] }
 0x263   : > { %v5158_v36 = vpop.f32.mrf.mxu1  ;;  %v5254_v30 = vpop.f32.mrf.mxu0  ;;  %3865 = vperm.xlu0 %5723, %v3758_v44   ;;  %v8186_v44 = vld [vmem:[#allocation14_spill] sm:$0xff] }
 0x264   : > { %8184 = vst [vmem:[#allocation56_spill] sm:$0xff] %v7449_v32  ;;  %3860 = vperm.xlu1 %5724, %v3757_v27   ;;  %v2615_v31 = vsel %vm2237_vm4, %v2612_v9, %v2614_v3  ;;  %v2929_v36 = vrot.slane %v8186_v44, 2  ;;  %v8187_v30 = vld [vmem:[#allocation11_spill] sm:$0xff]  ;;  %v8188_v32 = vld [vmem:[#allocation20_spill] sm:$0xff] }
 0x265   : > { %v1720_v59 = vpop.f32.mrf.mxu1  ;;  %v2133_v50 = vpop.f32.mrf.mxu0  ;;  %5372 = vmatmul.mubr.bf16.gmra.mxu1 %v2278_v39  ;;  %5468 = vmatmul.mubr.bf16.gmra.mxu0 %v2613_v2  ;;  %v3760_v39 = vld [vmem:[%s8005_s2 + $0x90] sm:$0xff]  ;;  %v2932_v58 = vrot.slane %v8188_v32, 2  ;;  %v3759_v27 = vld [vmem:[%s8005_s2 + $0x88] sm:$0xff]  ;;  %v3762_v9 = vld [vmem:[%s8005_s2 + $0xa0] sm:$0xff] }
 0x266   : > { %v1790_v28 = vadd.f32 %v1720_v59, %v7066_v16  ;;  %v7460_v29 = vadd.f32 %v2133_v50, %v1788_v55  ;;  %5375 = vmatprep.mubr.msk.bf16.mxu1 %vm5915_vm0, %v8105_v18  ;;  %5471 = vmatprep.mubr.msk.bf16.mxu0 %vm5915_vm0, %v8105_v18  ;;  %v2930_v59 = vrot.slane %v8187_v30, 3 }
 0x267   : > { %v5161_v2 = vpop.f32.mrf.mxu1  ;;  %v5257_v17 = vpop.f32.mrf.mxu0  ;;  %3875 = vperm.xlu0 %5723, %v3760_v39  }
 0x268   : > { %8185 = vst [vmem:[#allocation52_spill] sm:$0xff] %v7460_v29  ;;  %3870 = vperm.xlu1 %5724, %v3759_v27  }
 0x269   : > { %v1723_v16 = vpop.f32.mrf.mxu1  ;;  %v2136_v55 = vpop.f32.mrf.mxu0 }
 0x26a   : > { %v1791_v50 = vadd.f32 %v1723_v16, %v7078_v37  ;;  %v7476_v29 = vadd.f32 %v2136_v55, %v1789_v26  ;;  %v2931_v26 = vor.u32 %v2930_v59, %v2929_v36  ;;  %v2934_v16 = vor.u32 %v2933_v14, %v2932_v58  ;;  %v3761_v55 = vld [vmem:[%s8005_s2 + $0x98] sm:$0xff] }
 0x26b   : > { %v5162_v39 = vpop.f32.mrf.mxu1  ;;  %v5258_v2 = vpop.f32.mrf.mxu0  ;;  %3885 = vperm.xlu0 %5723, %v3762_v9   ;;  %v8190_v36 = vld [vmem:[#allocation22_spill] sm:$0xff] }
 0x26c   : > { %3880 = vperm.xlu1 %5724, %v3761_v55   ;;  %v2936_v30 = vrot.slane %v8190_v36, 2  ;;  %v8191_v59 = vld [vmem:[#allocation18_spill] sm:$0xff]  ;;  %v2935_v9 = vsel %vm2928_vm5, %v2931_v26, %v2934_v16  ;;  %v3763_v39 = vld [vmem:[%s8005_s2 + $0xa8] sm:$0xff]  ;;  %v3766_v2 = vld [vmem:[%s8005_s2 + $0xc0] sm:$0xff] }
 0x26d   : > { %v1728_v17 = vpop.f32.mrf.mxu1  ;;  %v2141_v37 = vpop.f32.mrf.mxu0  ;;  %5376 = vmatmul.mubr.bf16.gmra.mxu1 %v2277_v6  ;;  %5472 = vmatmul.mubr.bf16.gmra.mxu0 %v2615_v31  ;;  %v3764_v6 = vld [vmem:[%s8005_s2 + $0xb0] sm:$0xff]  ;;  %v2937_v27 = vrot.slane %v8191_v59, 3 }
 0x26e   : > { %v1792_v32 = vadd.f32 %v1728_v17, %v7085_v24  ;;  %v7487_v1 = vadd.f32 %v2141_v37, %v1790_v28  ;;  %5475 = vmatprep.mubr.msk.bf16.mxu0 %vm5915_vm0, %v8105_v18  ;;  %5495 = vmatprep.mubr.msk.bf16.mxu1 %vm5915_vm0, %v8105_v18 }
 0x26f   : > { %v5165_v31 = vpop.f32.mrf.mxu1  ;;  %v5261_v44 = vpop.f32.mrf.mxu0  ;;  %3895 = vperm.xlu0 %5723, %v3764_v6  }
 0x270   : > { %3890 = vperm.xlu1 %5724, %v3763_v39   ;;  %v3350_v31 = vrot.slane %v7074_v5, 3  ;;  %v3351_v44 = vrot.slane %v7092_v13, 3  ;;  %v8193_v5 = vld [vmem:[#allocation23_spill] sm:$0xff] }
 0x271   : > { %v1731_v24 = vpop.f32.mrf.mxu1  ;;  %v2144_v28 = vpop.f32.mrf.mxu0 }
 0x272   : > { %v1793_v58 = vadd.f32 %v1731_v24, %v7100_v23  ;;  %v7502_v14 = vadd.f32 %v2144_v28, %v1791_v50  ;;  %v2938_v23 = vor.u32 %v2937_v27, %v2936_v30  ;;  %v8192_v30 = vld [vmem:[#allocation29_spill] sm:$0xff]  ;;  %v2941_v27 = vrot.slane %v8193_v5, 3 }
 0x273   : > { %v5166_v17 = vpop.f32.mrf.mxu1  ;;  %v5262_v37 = vpop.f32.mrf.mxu0  ;;  %3905 = vperm.xlu0 %5723, %v3766_v2   ;;  %v2940_v59 = vrot.slane %v8192_v30, 2  ;;  %v3352_v2 = vsel %vm3349_vm6, %v3350_v31, %v3351_v44 }
 0x274   : > { %v2939_v39 = vsel %vm2928_vm5, %v2934_v16, %v2938_v23  ;;  %v3767_v17 = vld [vmem:[%s8005_s2 + $0xc8] sm:$0xff]  ;;  %v3770_v37 = vld [vmem:[%s8005_s2 + $0xe0] sm:$0xff]  ;;  %v3353_v16 = vrot.slane %v7116_v38, 3 }
 0x275   : > { %v1736_v55 = vpop.f32.mrf.mxu1  ;;  %v2149_v6 = vpop.f32.mrf.mxu0  ;;  %5476 = vmatmul.mubr.bf16.gmra.mxu0 %v2614_v3  ;;  %5496 = vmatmul.mubr.bf16.vlgmr.msra.gmra.mxu1 %v2935_v9  ;;  %v3765_v3 = vld [vmem:[%s8005_s2 + $0xb8] sm:$0xff] }
 0x276   : > { %v1794_v50 = vadd.f32 %v1736_v55, %v7111_v49  ;;  %v7512_v26 = vadd.f32 %v2149_v6, %v1792_v32  ;;  %5499 = vmatprep.mubr.msk.bf16.mxu1 %vm5915_vm0, %v8105_v18  ;;  %5595 = vmatprep.mubr.msk.bf16.mxu0 %vm5915_vm0, %v8105_v18  ;;  %v3768_v49 = vld [vmem:[%s8005_s2 + $0xd0] sm:$0xff]  ;;  %v3354_v30 = vsel %vm3349_vm6, %v3351_v44, %v3353_v16 }
 0x277   : > { %v5169_v32 = vpop.f32.mrf.mxu1  ;;  %v5265_v24 = vpop.f32.mrf.mxu0  ;;  %3900 = vperm.xlu1 %5724, %v3765_v3   ;;  %3915 = vperm.xlu0 %5723, %v3768_v49  }
 0x278   : > { %v3769_v32 = vld [vmem:[%s8005_s2 + $0xd8] sm:$0xff]  ;;  %v3772_v24 = vld [vmem:[%s8005_s2 + $0xf0] sm:$0xff] }
 0x279   : > { %v1739_v28 = vpop.f32.mrf.mxu1  ;;  %v2152_v36 = vpop.f32.mrf.mxu0 }
 0x27a   : > { %v1795_v13 = vadd.f32 %v1739_v28, %v7130_v25  ;;  %v7529_v9 = vadd.f32 %v2152_v36, %v1793_v58  ;;  %v2942_v58 = vor.u32 %v2941_v27, %v2940_v59  ;;  %v2944_v27 = vrot.slane %v6243_v19, 2 }
 0x27b   : > { %v5170_v55 = vpop.f32.mrf.mxu1  ;;  %v5266_v6 = vpop.f32.mrf.mxu0  ;;  %3910 = vperm.xlu1 %5724, %v3767_v17   ;;  %3925 = vperm.xlu0 %5723, %v3770_v37   ;;  %v3774_v17 = vld [vmem:[%s8005_s2 + $0x100] sm:$0xff] }
 0x27c   : > { %v2943_v36 = vsel %vm2928_vm5, %v2938_v23, %v2942_v58  ;;  %v3355_v55 = vrot.slane %v7148_v53, 3  ;;  %v3773_v6 = vld [vmem:[%s8005_s2 + $0xf8] sm:$0xff] }
 0x27d   : > { %v1744_v3 = vpop.f32.mrf.mxu1  ;;  %v2157_v25 = vpop.f32.mrf.mxu0  ;;  %5500 = vmatmul.mubr.bf16.gmra.mxu1 %v2939_v39  ;;  %5596 = vmatmul.mubr.bf16.vlgmr.msra.gmra.mxu0 %v3352_v2  ;;  %v2945_v39 = vrot.slane %v6191_v33, 3  ;;  %v3771_v2 = vld [vmem:[%s8005_s2 + $0xe8] sm:$0xff] }
 0x27e   : > { %v1796_v31 = vadd.f32 %v1744_v3, %v7141_v42  ;;  %v7541_v49 = vadd.f32 %v2157_v25, %v1794_v50  ;;  %5503 = vmatprep.mubr.msk.bf16.mxu1 %vm5915_vm0, %v8105_v18  ;;  %5599 = vmatprep.mubr.msk.bf16.mxu0 %vm5915_vm0, %v8105_v18  ;;  %v3776_v3 = vld [vmem:[%s8005_s2 + $0x110] sm:$0xff] }
 0x27f   : > { %v5173_v28 = vpop.f32.mrf.mxu1  ;;  %v5269_v38 = vpop.f32.mrf.mxu0  ;;  %3920 = vperm.xlu1 %5724, %v3769_v32   ;;  %3935 = vperm.xlu0 %5723, %v3772_v24   ;;  %v2946_v33 = vor.u32 %v2945_v39, %v2944_v27  ;;  %v8194_v24 = vld [vmem:[#allocation34_spill] sm:$0xff]  ;;  %v3778_v27 = vld [vmem:[%s8005_s2 + $0x120] sm:$0xff] }
 0x280   : > { %v2948_v28 = vrot.slane %v8194_v24, 2  ;;  %v8195_v38 = vld [vmem:[#allocation32_spill] sm:$0xff] }
 0x281   : > { %v1747_v42 = vpop.f32.mrf.mxu1  ;;  %v2160_v50 = vpop.f32.mrf.mxu0  ;;  %v2947_v53 = vsel %vm2928_vm5, %v2942_v58, %v2946_v33 }
 0x282   : > { %v1797_v59 = vadd.f32 %v1747_v42, %v7161_v35  ;;  %v7556_v5 = vadd.f32 %v2160_v50, %v1795_v13  ;;  %v2949_v42 = vrot.slane %v8195_v38, 3  ;;  %v8198_v38 = vld [vmem:[#allocation38_spill] sm:$0xff] }
 0x283   : > { %v5174_v37 = vpop.f32.mrf.mxu1  ;;  %v5270_v23 = vpop.f32.mrf.mxu0  ;;  %3930 = vperm.xlu1 %5724, %v3771_v2   ;;  %3945 = vperm.xlu0 %5723, %v3774_v17  }
 0x285   : > { %v1752_v44 = vpop.f32.mrf.mxu1  ;;  %v2165_v35 = vpop.f32.mrf.mxu0  ;;  %5504 = vmatmul.mubr.bf16.gmra.mxu1 %v2943_v36  ;;  %5600 = vmatmul.mubr.bf16.gmra.mxu0 %v3354_v30  ;;  %v3356_v36 = vsel %vm3349_vm6, %v3353_v16, %v3355_v55  ;;  %v3775_v30 = vld [vmem:[%s8005_s2 + $0x108] sm:$0xff] }
 0x286   : > { %v1798_v19 = vadd.f32 %v1752_v44, %v7172_v4  ;;  %v7567_v13 = vadd.f32 %v2165_v35, %v1796_v31  ;;  %5507 = vmatprep.mubr.msk.bf16.mxu1 %vm5915_vm0, %v8105_v18  ;;  %5603 = vmatprep.mubr.msk.bf16.mxu0 %vm5915_vm0, %v8105_v18  ;;  %v8196_v16 = vld [vmem:[#allocation45_spill] sm:$0xff]  ;;  %v8197_v44 = vld [vmem:[#allocation42_spill] sm:$0xff] }
 0x287   : > { %v5177_v4 = vpop.f32.mrf.mxu1  ;;  %v5273_v25 = vpop.f32.mrf.mxu0  ;;  %3940 = vperm.xlu1 %5724, %v3773_v6   ;;  %3955 = vperm.xlu0 %5723, %v3776_v3   ;;  %v3357_v35 = vrot.slane %v8197_v44, 3  ;;  %v3777_v6 = vld [vmem:[%s8005_s2 + $0x118] sm:$0xff]  ;;  %v3780_v3 = vld [vmem:[%s8005_s2 + $0x130] sm:$0xff]  ;;  %v8201_v44 = vld [vmem:[#allocation48_spill] sm:$0xff] }
 0x289   : > { %v1755_v31 = vpop.f32.mrf.mxu1  ;;  %v2168_v32 = vpop.f32.mrf.mxu0 }
 0x28a   : > { %v7582_v50 = vadd.f32 %v2168_v32, %v1797_v59  ;;  %v2950_v59 = vor.u32 %v2949_v42, %v2948_v28  ;;  %v3358_v28 = vsel %vm3349_vm6, %v3355_v55, %v3357_v35  ;;  %v2952_v42 = vrot.slane %v8198_v38, 2  ;;  %v8200_v55 = vld [vmem:[#allocation43_spill] sm:$0xff] }
 0x28b   : > { %v5178_v39 = vpop.f32.mrf.mxu1  ;;  %v5274_v2 = vpop.f32.mrf.mxu0  ;;  %3950 = vperm.xlu1 %5724, %v3775_v30   ;;  %3965 = vperm.xlu0 %5723, %v3778_v27   ;;  %v3779_v30 = vld [vmem:[%s8005_s2 + $0x128] sm:$0xff]  ;;  %v3782_v27 = vld [vmem:[%s8005_s2 + $0x140] sm:$0xf] }
 0x28c   : > { %v2951_v32 = vsel %vm2928_vm5, %v2946_v33, %v2950_v59 }
 0x28d   : > { %v2173_v17 = vpop.f32.mrf.mxu0  ;;  %v2382_v37 = vpop.f32.mrf.mxu1  ;;  %5508 = vmatmul.mubr.bf16.gmra.mxu1 %v2947_v53  ;;  %5604 = vmatmul.mubr.bf16.gmra.mxu0 %v3356_v36  ;;  %v8199_v53 = vld [vmem:[#allocation35_spill] sm:$0xff] }
 0x28e   : > { %v7592_v58 = vadd.f32 %v2173_v17, %v1798_v19  ;;  %v2548_v23 = vadd.f32 %v2382_v37, %v8196_v16  ;;  %5511 = vmatprep.mubr.msk.bf16.mxu1 %vm5915_vm0, %v8105_v18  ;;  %5607 = vmatprep.mubr.msk.bf16.mxu0 %vm5915_vm0, %v8105_v18  ;;  %v2953_v36 = vrot.slane %v8199_v53, 3 }
 0x28f   : > { %v5277_v19 = vpop.f32.mrf.mxu0  ;;  %v5297_v4 = vpop.f32.mrf.mxu1  ;;  %3960 = vperm.xlu1 %5724, %v3777_v6   ;;  %3975 = vperm.xlu0 %5723, %v3780_v3   ;;  %v3359_v6 = vrot.slane %v8201_v44, 3  ;;  %v3781_v3 = vld [vmem:[%s8005_s2 + $0x138] sm:$0xff] }
 0x290   : > { %v2954_v16 = vor.u32 %v2953_v36, %v2952_v42 }
 0x291   : > { %v2176_v25 = vpop.f32.mrf.mxu0  ;;  %v2385_v31 = vpop.f32.mrf.mxu1  ;;  %v3360_v36 = vsel %vm3349_vm6, %v3357_v35, %v3359_v6 }
 0x292   : > { %v2549_v24 = vadd.f32 %v2385_v31, %v7214_v20  ;;  %v2955_v42 = vsel %vm2928_vm5, %v2950_v59, %v2954_v16 }
 0x293   : > { %v5278_v39 = vpop.f32.mrf.mxu0  ;;  %v5298_v2 = vpop.f32.mrf.mxu1  ;;  %3970 = vperm.xlu1 %5724, %v3779_v30   ;;  %3985 = vperm.xlu0 %5723, %v3782_v27  }
 0x295   : > { %v2390_v33 = vpop.f32.mrf.mxu1  ;;  %v2701_v20 = vpop.f32.mrf.mxu0  ;;  %5512 = vmatmul.mubr.bf16.gmra.mxu1 %v2951_v32  ;;  %5608 = vmatmul.mubr.bf16.gmra.mxu0 %v3358_v28  ;;  %v8203_v28 = vld [vmem:[#allocation40_spill] sm:$0xff] }
 0x296   : > { %v2550_v17 = vadd.f32 %v2390_v33, %v8200_v55  ;;  %v7618_v37 = vadd.f32 %v2701_v20, %v2548_v23  ;;  %5515 = vmatprep.mubr.msk.bf16.mxu1 %vm5915_vm0, %v8105_v18  ;;  %5611 = vmatprep.mubr.msk.bf16.mxu0 %vm5915_vm0, %v8105_v18  ;;  %v8202_v23 = vld [vmem:[#allocation41_spill] sm:$0xff]  ;;  %v2957_v38 = vrot.slane %v8203_v28, 3  ;;  %v8204_v55 = vld [vmem:[#allocation51_spill] sm:$0xff] }
 0x297   : > { %v5301_v19 = vpop.f32.mrf.mxu1  ;;  %v5397_v4 = vpop.f32.mrf.mxu0  ;;  %3980 = vperm.xlu1 %5724, %v3781_v3   ;;  %v2956_v32 = vrot.slane %v8202_v23, 2  ;;  %v3361_v44 = vrot.slane %v8204_v55, 3 }
 0x299   : > { %v2393_v25 = vpop.f32.mrf.mxu1  ;;  %v2704_v31 = vpop.f32.mrf.mxu0  ;;  %v2958_v20 = vor.u32 %v2957_v38, %v2956_v32  ;;  %v8206_v32 = vld [vmem:[#allocation27_spill] sm:$0xff] }
 0x29a   : > { %v2551_v53 = vadd.f32 %v2393_v25, %v7229_v40  ;;  %v7631_v30 = vadd.f32 %v2704_v31, %v2549_v24  ;;  %v3362_v25 = vsel %vm3349_vm6, %v3359_v6, %v3361_v44  ;;  %v2961_v28 = vrot.slane %v8206_v32, 3 }
 0x29b   : > { %v5302_v27 = vpop.f32.mrf.mxu1  ;;  %v5398_v39 = vpop.f32.mrf.mxu0  ;;  %v2959_v4 = vsel %vm2928_vm5, %v2954_v16, %v2958_v20  ;;  %v8207_v16 = vld [vmem:[#allocation44_spill] sm:$0xff] }
 0x29c   : > { %v3363_v6 = vrot.slane %v8207_v16, 3 }
 0x29d   : > { %v2398_v2 = vpop.f32.mrf.mxu1  ;;  %v2709_v33 = vpop.f32.mrf.mxu0  ;;  %5516 = vmatmul.mubr.bf16.gmra.mxu1 %v2955_v42  ;;  %5612 = vmatmul.mubr.bf16.gmra.mxu0 %v3360_v36 }
 0x29e   : > { %v2552_v3 = vadd.f32 %v2398_v2, %v7233_v0  ;;  %v7637_v19 = vadd.f32 %v2709_v33, %v2550_v17  ;;  %5519 = vmatprep.mubr.msk.bf16.mxu1 %vm5915_vm0, %v8105_v18  ;;  %5615 = vmatprep.mubr.msk.bf16.mxu0 %vm5915_vm0, %v8105_v18  ;;  %v8205_v0 = vld [vmem:[#allocation28_spill] sm:$0xff] }
 0x29f   : > { %v5305_v40 = vpop.f32.mrf.mxu1  ;;  %v5401_v59 = vpop.f32.mrf.mxu0  ;;  %v2960_v17 = vrot.slane %v8205_v0, 2  ;;  %v3364_v0 = vsel %vm3349_vm6, %v3361_v44, %v3363_v6 }
 0x2a0   : > { %v8208_v59 = vld [vmem:[#allocation9_spill] sm:$0xff] }
 0x2a1   : > { %v2401_v35 = vpop.f32.mrf.mxu1  ;;  %v2712_v24 = vpop.f32.mrf.mxu0 }
 0x2a2   : > { %v2553_v31 = vadd.f32 %v2401_v35, %v7244_v54  ;;  %v7646_v23 = vadd.f32 %v2712_v24, %v2551_v53  ;;  %v2962_v54 = vor.u32 %v2961_v28, %v2960_v17  ;;  %v2964_v35 = vrot.slane %v8208_v59, 2  ;;  %v8209_v24 = vld [vmem:[#allocation8_spill] sm:$0xff] }
 0x2a3   : > { %v5306_v38 = vpop.f32.mrf.mxu1  ;;  %v5402_v42 = vpop.f32.mrf.mxu0 }
 0x2a5   : > { %v2406_v36 = vpop.f32.mrf.mxu1  ;;  %v2717_v27 = vpop.f32.mrf.mxu0  ;;  %5520 = vmatmul.mubr.bf16.gmra.mxu1 %v2959_v4  ;;  %5616 = vmatmul.mubr.bf16.gmra.mxu0 %v3362_v25  ;;  %v2965_v4 = vrot.slane %v8209_v24, 3  ;;  %v2963_v25 = vsel %vm2928_vm5, %v2958_v20, %v2962_v54 }
 0x2a6   : > { %v2554_v39 = vadd.f32 %v2406_v36, %v7248_v8  ;;  %v7651_v2 = vadd.f32 %v2717_v27, %v2552_v3  ;;  %5523 = vmatprep.mubr.msk.bf16.mxu1 %vm5915_vm0, %v8105_v18  ;;  %5619 = vmatprep.mubr.msk.bf16.mxu0 %vm5915_vm0, %v8105_v18  ;;  %v8210_v36 = vld [vmem:[#allocation46_spill] sm:$0xff] }
 0x2a7   : > { %v5309_v53 = vpop.f32.mrf.mxu1  ;;  %v5405_v33 = vpop.f32.mrf.mxu0  ;;  %v2966_v42 = vor.u32 %v2965_v4, %v2964_v35  ;;  %v3365_v27 = vrot.slane %v8210_v36, 3  ;;  %v8212_v35 = vld [vmem:[#allocation10_spill] sm:$0xff] }
 0x2a8   : > { %v2969_v24 = vrot.slane %v8212_v35, 3 }
 0x2a9   : > { %v2409_v55 = vpop.f32.mrf.mxu1  ;;  %v2720_v40 = vpop.f32.mrf.mxu0  ;;  %v2967_v33 = vsel %vm2928_vm5, %v2962_v54, %v2966_v42  ;;  %v8213_v54 = vld [vmem:[#allocation54_spill] sm:$0xff] }
 0x2aa   : > { %v2555_v8 = vadd.f32 %v2409_v55, %v7259_v63  ;;  %v7661_v3 = vadd.f32 %v2720_v40, %v2553_v31  ;;  %v3366_v55 = vsel %vm3349_vm6, %v3363_v6, %v3365_v27  ;;  %v3367_v6 = vrot.slane %v8213_v54, 3 }
 0x2ab   : > { %v5310_v32 = vpop.f32.mrf.mxu1  ;;  %v5406_v17 = vpop.f32.mrf.mxu0 }
 0x2ad   : > { %v2414_v28 = vpop.f32.mrf.mxu1  ;;  %v2725_v38 = vpop.f32.mrf.mxu0  ;;  %5524 = vmatmul.mubr.bf16.gmra.mxu1 %v2963_v25  ;;  %5620 = vmatmul.mubr.bf16.gmra.mxu0 %v3364_v0 }
 0x2ae   : > { %v2556_v16 = vadd.f32 %v2414_v28, %v7263_v34  ;;  %v7667_v53 = vadd.f32 %v2725_v38, %v2554_v39  ;;  %5527 = vmatprep.mubr.msk.bf16.mxu1 %vm5915_vm0, %v8105_v18  ;;  %5623 = vmatprep.mubr.msk.bf16.mxu0 %vm5915_vm0, %v8105_v18  ;;  %v8211_v34 = vld [vmem:[#allocation12_spill] sm:$0xff] }
 0x2af   : > { %v5313_v63 = vpop.f32.mrf.mxu1  ;;  %v5409_v20 = vpop.f32.mrf.mxu0  ;;  %v2968_v39 = vrot.slane %v8211_v34, 2  ;;  %v3368_v34 = vsel %vm3349_vm6, %v3365_v27, %v3367_v6 }
 0x2b0   : > { %v8214_v20 = vld [vmem:[#allocation17_spill] sm:$0xff] }
 0x2b1   : > { %v2417_v44 = vpop.f32.mrf.mxu1  ;;  %v2728_v31 = vpop.f32.mrf.mxu0 }
 0x2b2   : > { %v2557_v40 = vadd.f32 %v2417_v44, %v7274_v10  ;;  %v7676_v59 = vadd.f32 %v2728_v31, %v2555_v8  ;;  %v2970_v10 = vor.u32 %v2969_v24, %v2968_v39  ;;  %v2972_v44 = vrot.slane %v8214_v20, 2  ;;  %v8215_v31 = vld [vmem:[#allocation13_spill] sm:$0xff] }
 0x2b3   : > { %v5314_v4 = vpop.f32.mrf.mxu1  ;;  %v5410_v25 = vpop.f32.mrf.mxu0 }
 0x2b5   : > { %v2422_v0 = vpop.f32.mrf.mxu1  ;;  %v2733_v32 = vpop.f32.mrf.mxu0  ;;  %5528 = vmatmul.mubr.bf16.gmra.mxu1 %v2967_v33  ;;  %5624 = vmatmul.mubr.bf16.gmra.mxu0 %v3366_v55  ;;  %v2973_v33 = vrot.slane %v8215_v31, 3  ;;  %v2971_v55 = vsel %vm2928_vm5, %v2966_v42, %v2970_v10 }
 0x2b6   : > { %v2558_v17 = vadd.f32 %v2422_v0, %v7278_v11  ;;  %v7681_v28 = vadd.f32 %v2733_v32, %v2556_v16  ;;  %5531 = vmatprep.mubr.msk.bf16.mxu1 %vm5915_vm0, %v8105_v18  ;;  %5627 = vmatprep.mubr.msk.bf16.mxu0 %vm5915_vm0, %v8105_v18  ;;  %v8216_v0 = vld [vmem:[#allocation47_spill] sm:$0xff] }
 0x2b7   : > { %v5317_v8 = vpop.f32.mrf.mxu1  ;;  %v5413_v38 = vpop.f32.mrf.mxu0  ;;  %v2974_v25 = vor.u32 %v2973_v33, %v2972_v44  ;;  %v3369_v32 = vrot.slane %v8216_v0, 3  ;;  %v8218_v44 = vld [vmem:[#allocation16_spill] sm:$0xff] }
 0x2b8   : > { %v2977_v31 = vrot.slane %v8218_v44, 3 }
 0x2b9   : > { %v2425_v36 = vpop.f32.mrf.mxu1  ;;  %v2736_v63 = vpop.f32.mrf.mxu0  ;;  %v2975_v38 = vsel %vm2928_vm5, %v2970_v10, %v2974_v25 }
 0x2ba   : > { %v2559_v11 = vadd.f32 %v2425_v36, %v7289_v41  ;;  %v7691_v16 = vadd.f32 %v2736_v63, %v2557_v40  ;;  %v3370_v36 = vsel %vm3349_vm6, %v3367_v6, %v3369_v32  ;;  %v5843_v6 = vld [vmem:[%s5987_s30 + $0x68] sm:$0xff]  }
 0x2bb   : > { %v5318_v35 = vpop.f32.mrf.mxu1  ;;  %v5414_v39 = vpop.f32.mrf.mxu0 }
 0x2bd   : > { %v2430_v24 = vpop.f32.mrf.mxu1  ;;  %v2741_v4 = vpop.f32.mrf.mxu0  ;;  %5532 = vmatmul.mubr.bf16.gmra.mxu1 %v2971_v55  ;;  %5628 = vmatmul.mubr.bf16.gmra.mxu0 %v3368_v34 }
 0x2be   : > { %v2560_v54 = vadd.f32 %v2430_v24, %v7293_v60  ;;  %v7697_v8 = vadd.f32 %v2741_v4, %v2558_v17  ;;  %5535 = vmatprep.mubr.msk.bf16.mxu1 %vm5915_vm0, %v8105_v18  ;;  %5631 = vmatprep.mubr.msk.bf16.mxu0 %vm5915_vm0, %v8105_v18  ;;  %v8217_v17 = vld [vmem:[#allocation21_spill] sm:$0xff] }
 0x2bf   : > { %v5321_v41 = vpop.f32.mrf.mxu1  ;;  %v5417_v42 = vpop.f32.mrf.mxu0  ;;  %v2976_v20 = vrot.slane %v8217_v17, 2 }
 0x2c0   : > { %v8219_v42 = vld [vmem:[#allocation24_spill] sm:$0xff] }
 0x2c1   : > { %v2433_v27 = vpop.f32.mrf.mxu1  ;;  %v2744_v40 = vpop.f32.mrf.mxu0 }
 0x2c2   : > { %v2561_v63 = vadd.f32 %v2433_v27, %v7301_v12  ;;  %v7706_v60 = vadd.f32 %v2744_v40, %v2559_v11  ;;  %v2978_v12 = vor.u32 %v2977_v31, %v2976_v20  ;;  %v3371_v11 = vrot.slane %v5843_v6, 3  ;;  %v8220_v40 = vld [vmem:[#allocation19_spill] sm:$0xff] }
 0x2c3   : > { %v5322_v33 = vpop.f32.mrf.mxu1  ;;  %v5418_v55 = vpop.f32.mrf.mxu0  ;;  %v2980_v27 = vrot.slane %v8219_v42, 2 }
 0x2c4   : > { %v3372_v17 = vsel %vm3349_vm6, %v3369_v32, %v3371_v11 }
 0x2c5   : > { %v2438_v34 = vpop.f32.mrf.mxu1  ;;  %v2749_v35 = vpop.f32.mrf.mxu0  ;;  %5536 = vmatmul.mubr.bf16.gmra.mxu1 %v2975_v38  ;;  %5632 = vmatmul.mubr.bf16.gmra.mxu0 %v3370_v36  ;;  %v2979_v36 = vsel %vm2928_vm5, %v2974_v25, %v2978_v12 }
 0x2c6   : > { %v2562_v39 = vadd.f32 %v2438_v34, %v7305_v61  ;;  %v7711_v10 = vadd.f32 %v2749_v35, %v2560_v54  ;;  %5539 = vmatprep.mubr.msk.bf16.mxu1 %vm5915_vm0, %v8105_v18  ;;  %5635 = vmatprep.mubr.msk.bf16.mxu0 %vm5915_vm0, %v8105_v18  ;;  %v2981_v61 = vrot.slane %v8220_v40, 3  ;;  %v5844_v34 = vld [vmem:[%s5987_s30 + $0x70] sm:$0xff]  }
 0x2c7   : > { %v5325_v24 = vpop.f32.mrf.mxu1  ;;  %v5421_v4 = vpop.f32.mrf.mxu0  ;;  %v3373_v35 = vrot.slane %v5844_v34, 3 }
 0x2c8   : > { %v2982_v55 = vor.u32 %v2981_v61, %v2980_v27  ;;  %v8222_v27 = vld [vmem:[#allocation25_spill] sm:$0xff] }
 0x2c9   : > { %v2441_v0 = vpop.f32.mrf.mxu1  ;;  %v2752_v41 = vpop.f32.mrf.mxu0  ;;  %v2985_v40 = vrot.slane %v8222_v27, 3 }
 0x2ca   : > { %v2563_v54 = vadd.f32 %v2441_v0, %v7313_v62  ;;  %v7721_v38 = vadd.f32 %v2752_v41, %v2561_v63  ;;  %v2983_v4 = vsel %vm2928_vm5, %v2978_v12, %v2982_v55  ;;  %v3374_v0 = vsel %vm3349_vm6, %v3371_v11, %v3373_v35  ;;  %v5845_v11 = vld [vmem:[%s5987_s30 + $0x78] sm:$0xff]  }
 0x2cb   : > { %v5326_v20 = vpop.f32.mrf.mxu1  ;;  %v5422_v44 = vpop.f32.mrf.mxu0 }
 0x2cd   : > { %v2446_v31 = vpop.f32.mrf.mxu1  ;;  %v2757_v33 = vpop.f32.mrf.mxu0  ;;  %5540 = vmatmul.mubr.bf16.gmra.mxu1 %v2979_v36  ;;  %5636 = vmatmul.mubr.bf16.gmra.mxu0 %v3372_v17 }
 0x2ce   : > { %v2564_v6 = vadd.f32 %v2446_v31, %v7317_v57  ;;  %v7727_v24 = vadd.f32 %v2757_v33, %v2562_v39  ;;  %5543 = vmatprep.mubr.msk.bf16.mxu1 %vm5915_vm0, %v8105_v18  ;;  %5639 = vmatprep.mubr.msk.bf16.mxu0 %vm5915_vm0, %v8105_v18  ;;  %v8221_v39 = vld [vmem:[#allocation30_spill] sm:$0xff] }
 0x2cf   : > { %v5329_v62 = vpop.f32.mrf.mxu1  ;;  %v5425_v25 = vpop.f32.mrf.mxu0  ;;  %v2984_v42 = vrot.slane %v8221_v39, 2 }
 0x2d0   : > { %v8223_v25 = vld [vmem:[#allocation31_spill] sm:$0xff] }
 0x2d1   : > { %v2449_v32 = vpop.f32.mrf.mxu1  ;;  %v2760_v63 = vpop.f32.mrf.mxu0 }
 0x2d2   : > { %v2565_v41 = vadd.f32 %v2449_v32, %v7325_v15  ;;  %v7736_v57 = vadd.f32 %v2760_v63, %v2563_v54  ;;  %v2986_v15 = vor.u32 %v2985_v40, %v2984_v42  ;;  %v3375_v54 = vrot.slane %v5845_v11, 3  ;;  %v8224_v63 = vld [vmem:[#allocation26_spill] sm:$0xff] }
 0x2d3   : > { %v5330_v61 = vpop.f32.mrf.mxu1  ;;  %v5426_v36 = vpop.f32.mrf.mxu0  ;;  %v2988_v32 = vrot.slane %v8223_v25, 2 }
 0x2d4   : > { %v3376_v39 = vsel %vm3349_vm6, %v3373_v35, %v3375_v54 }
 0x2d5   : > { %v2454_v17 = vpop.f32.mrf.mxu1  ;;  %v2765_v20 = vpop.f32.mrf.mxu0  ;;  %5544 = vmatmul.mubr.bf16.gmra.mxu1 %v2983_v4  ;;  %5640 = vmatmul.mubr.bf16.gmra.mxu0 %v3374_v0  ;;  %v2987_v0 = vsel %vm2928_vm5, %v2982_v55, %v2986_v15 }
 0x2d6   : > { %v2566_v44 = vadd.f32 %v2454_v17, %v7329_v52  ;;  %v7741_v12 = vadd.f32 %v2765_v20, %v2564_v6  ;;  %5547 = vmatprep.mubr.msk.bf16.mxu1 %vm5915_vm0, %v8105_v18  ;;  %5643 = vmatprep.mubr.msk.bf16.mxu0 %vm5915_vm0, %v8105_v18  ;;  %v2989_v52 = vrot.slane %v8224_v63, 3  ;;  %v5846_v17 = vld [vmem:[%s5987_s30 + $0x80] sm:$0xff]  }
 0x2d7   : > { %v5333_v31 = vpop.f32.mrf.mxu1  ;;  %v5429_v33 = vpop.f32.mrf.mxu0  ;;  %v3377_v20 = vrot.slane %v5846_v17, 3 }
 0x2d8   : > { %v2990_v36 = vor.u32 %v2989_v52, %v2988_v32  ;;  %v8226_v32 = vld [vmem:[#allocation33_spill] sm:$0xff] }
 0x2d9   : > { %v2457_v34 = vpop.f32.mrf.mxu1  ;;  %v2768_v62 = vpop.f32.mrf.mxu0  ;;  %v2993_v63 = vrot.slane %v8226_v32, 3 }
 0x2da   : > { %v2567_v6 = vadd.f32 %v2457_v34, %v7337_v56  ;;  %v7751_v4 = vadd.f32 %v2768_v62, %v2565_v41  ;;  %v2991_v33 = vsel %vm2928_vm5, %v2986_v15, %v2990_v36  ;;  %v3378_v34 = vsel %vm3349_vm6, %v3375_v54, %v3377_v20  ;;  %v5847_v54 = vld [vmem:[%s5987_s30 + $0x88] sm:$0xff]  }
 0x2db   : > { %v5334_v42 = vpop.f32.mrf.mxu1  ;;  %v5430_v27 = vpop.f32.mrf.mxu0 }
 0x2dd   : > { %v2462_v40 = vpop.f32.mrf.mxu1  ;;  %v2773_v61 = vpop.f32.mrf.mxu0  ;;  %5548 = vmatmul.mubr.bf16.gmra.mxu1 %v2987_v0  ;;  %5644 = vmatmul.mubr.bf16.gmra.mxu0 %v3376_v39 }
 0x2de   : > { %v2568_v11 = vadd.f32 %v2462_v40, %v7341_v7  ;;  %v7757_v31 = vadd.f32 %v2773_v61, %v2566_v44  ;;  %5551 = vmatprep.mubr.msk.bf16.mxu1 %vm5915_vm0, %v8105_v18  ;;  %5647 = vmatprep.mubr.msk.bf16.mxu0 %vm5915_vm0, %v8105_v18  ;;  %v8225_v44 = vld [vmem:[#allocation36_spill] sm:$0xff] }
 0x2df   : > { %v5337_v56 = vpop.f32.mrf.mxu1  ;;  %v5433_v55 = vpop.f32.mrf.mxu0  ;;  %v2992_v25 = vrot.slane %v8225_v44, 2 }
 0x2e0   : > { %v8227_v55 = vld [vmem:[#allocation39_spill] sm:$0xff] }
 0x2e1   : > { %v2465_v35 = vpop.f32.mrf.mxu1  ;;  %v2776_v41 = vpop.f32.mrf.mxu0 }
 0x2e2   : > { %v2569_v62 = vadd.f32 %v2465_v35, %v7349_v47  ;;  %v7766_v7 = vadd.f32 %v2776_v41, %v2567_v6  ;;  %v2994_v47 = vor.u32 %v2993_v63, %v2992_v25  ;;  %v3379_v6 = vrot.slane %v5847_v54, 3  ;;  %v8228_v41 = vld [vmem:[#allocation37_spill] sm:$0xff] }
 0x2e3   : > { %v5338_v52 = vpop.f32.mrf.mxu1  ;;  %v5434_v0 = vpop.f32.mrf.mxu0  ;;  %v2996_v35 = vrot.slane %v8227_v55, 2 }
 0x2e4   : > { %v3380_v44 = vsel %vm3349_vm6, %v3377_v20, %v3379_v6 }
 0x2e5   : > { %v2470_v39 = vpop.f32.mrf.mxu1  ;;  %v2781_v42 = vpop.f32.mrf.mxu0  ;;  %5552 = vmatmul.mubr.bf16.gmra.mxu1 %v2991_v33  ;;  %5648 = vmatmul.mubr.bf16.gmra.mxu0 %v3378_v34  ;;  %v2995_v34 = vsel %vm2928_vm5, %v2990_v36, %v2994_v47 }
 0x2e6   : > { %v2570_v27 = vadd.f32 %v2470_v39, %v7356_v43  ;;  %v7771_v15 = vadd.f32 %v2781_v42, %v2568_v11  ;;  %5555 = vmatprep.mubr.msk.bf16.mxu1 %vm5915_vm0, %v8105_v18  ;;  %5651 = vmatprep.mubr.msk.bf16.mxu0 %vm5915_vm0, %v8105_v18  ;;  %v2997_v43 = vrot.slane %v8228_v41, 3  ;;  %v5848_v39 = vld [vmem:[%s5987_s30 + $0x90] sm:$0xff]  }
 0x2e7   : > { %v5341_v40 = vpop.f32.mrf.mxu1  ;;  %v5437_v61 = vpop.f32.mrf.mxu0  ;;  %v3381_v42 = vrot.slane %v5848_v39, 3 }
 0x2e8   : > { %v2998_v0 = vor.u32 %v2997_v43, %v2996_v35  ;;  %v8230_v35 = vshll.u32 %v7004_v51, 16 }
 0x2e9   : > { %v2473_v17 = vpop.f32.mrf.mxu1  ;;  %v2784_v56 = vpop.f32.mrf.mxu0 }
 0x2ea   : > { %v2571_v11 = vadd.f32 %v2473_v17, %v7367_v45  ;;  %v7781_v33 = vadd.f32 %v2784_v56, %v2569_v62  ;;  %v2999_v61 = vsel %vm2928_vm5, %v2994_v47, %v2998_v0  ;;  %v3382_v17 = vsel %vm3349_vm6, %v3379_v6, %v3381_v42 }
 0x2eb   : > { %v5342_v25 = vpop.f32.mrf.mxu1  ;;  %v5438_v32 = vpop.f32.mrf.mxu0  ;;  %v3001_v41 = vrot.slane %v8230_v35, 3  ;;  %v3005_v47 = vshrl.u32 %v7420_v46, 16  ;;  %v3008_v6 = vshll.u32 %v7420_v46, 16 }
 0x2ed   : > { %v2478_v63 = vpop.f32.mrf.mxu1  ;;  %v2789_v52 = vpop.f32.mrf.mxu0  ;;  %5556 = vmatmul.mubr.bf16.gmra.mxu1 %v2995_v34  ;;  %5652 = vmatmul.mubr.bf16.gmra.mxu0 %v3380_v44 }
 0x2ee   : > { %v2572_v54 = vadd.f32 %v2478_v63, %v7377_v48  ;;  %v7787_v40 = vadd.f32 %v2789_v52, %v2570_v27  ;;  %5559 = vmatprep.mubr.msk.bf16.mxu1 %vm5915_vm0, %v8105_v18  ;;  %5655 = vmatprep.mubr.msk.bf16.mxu0 %vm5915_vm0, %v8105_v18  ;;  %v8229_v27 = vshrl.u32 %v7004_v51, 16  ;;  %v5849_v52 = vld [vmem:[%s5987_s30 + $0x98] sm:$0xff]  }
 0x2ef   : > { %v5345_v45 = vpop.f32.mrf.mxu1  ;;  %v5441_v36 = vpop.f32.mrf.mxu0  ;;  %v3383_v39 = vrot.slane %v5849_v52, 3 }
 0x2f0   : > { %v3000_v55 = vrot.slane %v8229_v27, 2  ;;  %v3007_v27 = vrot.slane %v3005_v47, 2 }
 0x2f1   : > { %v2481_v20 = vpop.f32.mrf.mxu1  ;;  %v2792_v62 = vpop.f32.mrf.mxu0 }
 0x2f2   : > { %v2573_v56 = vadd.f32 %v2481_v20, %v7391_v21  ;;  %v7796_v48 = vadd.f32 %v2792_v62, %v2571_v11  ;;  %v268_v21 = vld [vmem:[%s5987_s30 + $0xb4] sm:$0x1]  ;;  %v3002_v63 = vor.u32 %v3001_v41, %v3000_v55  ;;  %s5696_s30 = smul.u32 328, %s5976_s24 }
 0x2f3   : > { %v5346_v43 = vpop.f32.mrf.mxu1  ;;  %v5442_v34 = vpop.f32.mrf.mxu0  ;;  %v8231_v20 = vld [vmem:[#allocation50_spill] sm:$0xff] }
 0x2f4   : > { %v7814_v62 = vcombine.low %v8231_v20, %v268_v21  ;;  %v3003_v34 = vsel %vm2928_vm5, %v2998_v0, %v3002_v63  ;;  %s7893_s20 = scalar_lea.vmem %s8006_s3, %s5696_s30 }
 0x2f5   : > { %v2486_v44 = vpop.f32.mrf.mxu1  ;;  %v2797_v25 = vpop.f32.mrf.mxu0  ;;  %5560 = vmatmul.mubr.bf16.gmra.mxu1 %v2999_v61  ;;  %5656 = vmatmul.mubr.bf16.gmra.mxu0 %v3382_v17 }
 0x2f6   : > { %v2574_v11 = vadd.f32 %v2486_v44, %v7401_v22  ;;  %v7806_v32 = vadd.f32 %v2797_v25, %v2572_v54  ;;  %5563 = vmatprep.mubr.msk.bf16.mxu1 %vm5915_vm0, %v8105_v18  ;;  %5659 = vmatprep.mubr.msk.bf16.mxu0 %vm5915_vm0, %v8105_v18  ;;  %v3010_v22 = vrot.slane %v3008_v6, 3  ;;  %v8232_v54 = vld [vmem:[#allocation49_spill] sm:$0xff]  ;;  %v3384_v44 = vsel %vm3349_vm6, %v3381_v42, %v3383_v39 }
 0x2f7   : > { %v5349_v45 = vpop.f32.mrf.mxu1  ;;  %v5445_v36 = vpop.f32.mrf.mxu0  ;;  %v3014_v0 = vshrl.u32 %v7814_v62, 16  ;;  %v3017_v42 = vshll.u32 %v7814_v62, 16 }
 0x2f8   : > { %v3011_v21 = vor.u32 %v3010_v22, %v3007_v27  ;;  %v3385_v45 = vrot.slane %v7004_v51, 3  ;;  %v8233_v36 = vld [vmem:[#allocation58_spill] sm:$0xff] }
 0x2f9   : > { %v2489_v61 = vpop.f32.mrf.mxu1  ;;  %v2800_v17 = vpop.f32.mrf.mxu0 }
 0x2fa   : > { %v2575_v35 = vadd.f32 %v2489_v61, %v8232_v54  ;;  %v7817_v43 = vadd.f32 %v2800_v17, %v2573_v56  ;;  %v3012_v51 = vsel %vm2928_vm5, %v3002_v63, %v3011_v21  ;;  %v3386_v27 = vsel %vm3349_vm6, %v3383_v39, %v3385_v45 }
 0x2fb   : > { %v5350_v55 = vpop.f32.mrf.mxu1  ;;  %v5446_v41 = vpop.f32.mrf.mxu0  ;;  %v3387_v39 = vrot.slane %v7420_v46, 3 }
 0x2fd   : > { %v2494_v25 = vpop.f32.mrf.mxu1  ;;  %v2805_v52 = vpop.f32.mrf.mxu0  ;;  %5564 = vmatmul.mubr.bf16.gmra.mxu1 %v3003_v34  ;;  %5660 = vmatmul.mubr.bf16.gmra.mxu0 %v3384_v44  ;;  %v3016_v34 = vrot.slane %v3014_v0, 2  ;;  %v3019_v44 = vrot.slane %v3017_v42, 3 }
 0x2fe   : > { %v2576_v47 = vadd.f32 %v2494_v25, %v8233_v36  ;;  %v7823_v6 = vadd.f32 %v2805_v52, %v2574_v11  ;;  %5567 = vmatprep.mubr.msk.bf16.mxu1 %vm5915_vm0, %v8105_v18  ;;  %5663 = vmatprep.mubr.msk.bf16.mxu0 %vm5915_vm0, %v8105_v18  ;;  %v8234_v11 = vld [vmem:[#allocation56_spill] sm:$0xff] }
 0x2ff   : > { %v5353_v56 = vpop.f32.mrf.mxu1  ;;  %v5449_v20 = vpop.f32.mrf.mxu0  ;;  %v8235_v36 = vld [vmem:[#allocation52_spill] sm:$0xff]  ;;  %v3020_v63 = vor.u32 %v3019_v44, %v3016_v34 }
 0x301   : > { %v2497_v61 = vpop.f32.mrf.mxu1  ;;  %v2808_v17 = vpop.f32.mrf.mxu0 }
 0x302   : > { %v2577_v22 = vadd.f32 %v2497_v61, %v8234_v11  ;;  %v7834_v54 = vadd.f32 %v2808_v17, %v2575_v35 }
 0x303   : > { %v5354_v55 = vpop.f32.mrf.mxu1  ;;  %v5450_v41 = vpop.f32.mrf.mxu0 }
 0x305   : > { %v2502_v25 = vpop.f32.mrf.mxu1  ;;  %v2813_v52 = vpop.f32.mrf.mxu0  ;;  %5568 = vmatmul.mubr.bf16.gmra.mxu1 %v3012_v51  ;;  %5664 = vmatmul.mubr.bf16.gmra.mxu0 %v3386_v27  ;;  %v3388_v27 = vsel %vm3349_vm6, %v3385_v45, %v3387_v39 }
 0x306   : > { %v2578_v56 = vadd.f32 %v2502_v25, %v8235_v36  ;;  %v7837_v20 = vadd.f32 %v2813_v52, %v2576_v47  ;;  %5571 = vmatprep.mubr.msk.bf16.mxu1 %vm5915_vm0, %v8105_v18  ;;  %5667 = vmatprep.mubr.msk.bf16.mxu0 %vm5915_vm0, %v8105_v18  ;;  %v3021_v47 = vsel %vm2928_vm5, %v3011_v21, %v3020_v63 }
 0x307   : > { %v5357_v35 = vpop.f32.mrf.mxu1  ;;  %v5453_v0 = vpop.f32.mrf.mxu0 }
 0x309   : > { %v2505_v42 = vpop.f32.mrf.mxu1  ;;  %v2816_v61 = vpop.f32.mrf.mxu0 }
 0x30a   : > { %v2579_v17 = vadd.f32 %v2505_v42, %v7476_v29  ;;  %v7845_v51 = vadd.f32 %v2816_v61, %v2577_v22  ;;  %v3389_v29 = vrot.slane %v7814_v62, 3 }
 0x30b   : > { %v5358_v11 = vpop.f32.mrf.mxu1  ;;  %v5454_v55 = vpop.f32.mrf.mxu0 }
 0x30d   : > { %v2510_v41 = vpop.f32.mrf.mxu1  ;;  %v2821_v25 = vpop.f32.mrf.mxu0  ;;  %5572 = vmatmul.mubr.bf16.gmra.mxu1 %v3021_v47  ;;  %5668 = vmatmul.mubr.bf16.gmra.mxu0 %v3388_v27 }
 0x30e   : > { %v2580_v46 = vadd.f32 %v2510_v41, %v7487_v1  ;;  %v7850_v34 = vadd.f32 %v2821_v25, %v2578_v56  ;;  %5575 = vmatprep.mubr.msk.bf16.mxu1 %vm5915_vm0, %v8105_v18  ;;  %5671 = vmatprep.mubr.msk.bf16.mxu0 %vm5915_vm0, %v8105_v18  ;;  %v3390_v1 = vsel %vm3349_vm6, %v3387_v39, %v3389_v29 }
 0x30f   : > { %v5361_v21 = vpop.f32.mrf.mxu1  ;;  %v5457_v45 = vpop.f32.mrf.mxu0 }
 0x311   : > { %v2513_v22 = vpop.f32.mrf.mxu1  ;;  %v2824_v44 = vpop.f32.mrf.mxu0 }
 0x312   : > { %v2581_v52 = vadd.f32 %v2513_v22, %v7502_v14  ;;  %v7858_v36 = vadd.f32 %v2824_v44, %v2579_v17 }
 0x313   : > { %v5362_v56 = vpop.f32.mrf.mxu1  ;;  %v5458_v35 = vpop.f32.mrf.mxu0 }
 0x315   : > { %v2518_v0 = vpop.f32.mrf.mxu1  ;;  %v2829_v42 = vpop.f32.mrf.mxu0  ;;  %5576 = vmatmul.mubr.bf16.gmra.mxu1 %v3020_v63  ;;  %5672 = vmatmul.mubr.bf16.gmra.mxu0 %v3390_v1 }
 0x316   : > { %v2582_v61 = vadd.f32 %v2518_v0, %v7512_v26  ;;  %v7862_v47 = vadd.f32 %v2829_v42, %v2580_v46  ;;  %5675 = vmatprep.mubr.msk.bf16.mxu0 %vm5915_vm0, %v8105_v18 }
 0x317   : > { %v5365_v62 = vpop.f32.mrf.mxu1  ;;  %v5461_v27 = vpop.f32.mrf.mxu0 }
 0x319   : > { %v2521_v14 = vpop.f32.mrf.mxu1  ;;  %v2832_v17 = vpop.f32.mrf.mxu0 }
 0x31a   : > { %v2583_v11 = vadd.f32 %v2521_v14, %v7529_v9  ;;  %v7867_v39 = vadd.f32 %v2832_v17, %v2581_v52 }
 0x31b   : > { %v5366_v55 = vpop.f32.mrf.mxu1  ;;  %v5462_v41 = vpop.f32.mrf.mxu0 }
 0x31d   : > { %v2526_v25 = vpop.f32.mrf.mxu1  ;;  %v2837_v63 = vpop.f32.mrf.mxu0  ;;  %5676 = vmatmul.mubr.bf16.gmra.mxu0 %v3389_v29 }
 0x31e   : > { %v2584_v26 = vadd.f32 %v2526_v25, %v7541_v49  ;;  %v7870_v46 = vadd.f32 %v2837_v63, %v2582_v61 }
 0x31f   : > { %v5369_v21 = vpop.f32.mrf.mxu1  ;;  %v5465_v45 = vpop.f32.mrf.mxu0 }
 0x321   : > { %v2529_v18 = vpop.f32.mrf.mxu1  ;;  %v2840_v22 = vpop.f32.mrf.mxu0 }
 0x322   : > { %v2585_v44 = vadd.f32 %v2529_v18, %v7556_v5  ;;  %v7873_v1 = vadd.f32 %v2840_v22, %v2583_v11 }
 0x323   : > { %v5370_v9 = vpop.f32.mrf.mxu1  ;;  %v5466_v52 = vpop.f32.mrf.mxu0 }
 0x325   : > { %v2534_v56 = vpop.f32.mrf.mxu1  ;;  %v2845_v35 = vpop.f32.mrf.mxu0 }
 0x326   : > { %v2586_v0 = vadd.f32 %v2534_v56, %v7567_v13  ;;  %v7876_v42 = vadd.f32 %v2845_v35, %v2584_v26 }
 0x327   : > { %v5373_v29 = vpop.f32.mrf.mxu1  ;;  %v5469_v49 = vpop.f32.mrf.mxu0 }
 0x329   : > { %v2537_v61 = vpop.f32.mrf.mxu1  ;;  %v2848_v62 = vpop.f32.mrf.mxu0 }
 0x32a   : > { %v2587_v27 = vadd.f32 %v2537_v61, %v7582_v50  ;;  %v7879_v14 = vadd.f32 %v2848_v62, %v2585_v44 }
 0x32b   : > { %v5374_v17 = vpop.f32.mrf.mxu1  ;;  %v5470_v5 = vpop.f32.mrf.mxu0 }
 0x32d   : > { %v2542_v11 = vpop.f32.mrf.mxu1  ;;  %v2853_v55 = vpop.f32.mrf.mxu0 }
 0x32e   : > { %v2588_v41 = vadd.f32 %v2542_v11, %v7592_v58  ;;  %v7882_v25 = vadd.f32 %v2853_v55, %v2586_v0  ;;  %v3786_v58 = vpop.permute.xlu0 %3785 }
 0x32f   : > { %v5377_v13 = vpop.f32.mrf.mxu1  ;;  %v5473_v63 = vpop.f32.mrf.mxu0 }
 0x331   : > { %v2545_v26 = vpop.f32.mrf.mxu1  ;;  %v2856_v21 = vpop.f32.mrf.mxu0 }
 0x332   : > { %v7884_v45 = vadd.f32 %v2856_v21, %v2587_v27  ;;  %v3796_v21 = vpop.permute.xlu1 %3795 }
 0x333   : > { %v5378_v18 = vpop.f32.mrf.mxu1  ;;  %v5474_v22 = vpop.f32.mrf.mxu0 }
 0x335   : > { %v2861_v50 = vpop.f32.mrf.mxu0  ;;  %v3125_v44 = vpop.f32.mrf.mxu1 }
 0x336   : > { %v7886_v9 = vadd.f32 %v2861_v50, %v2588_v41  ;;  %v3291_v61 = vadd.f32 %v3125_v44, %v7618_v37  ;;  %v3791_v41 = vpop.permute.xlu0 %3790 }
 0x337   : > { %v5477_v52 = vpop.f32.mrf.mxu0  ;;  %v5497_v56 = vpop.f32.mrf.mxu1 }
 0x339   : > { %v2864_v35 = vpop.f32.mrf.mxu0  ;;  %v3128_v29 = vpop.f32.mrf.mxu1 }
 0x33a   : > { %v3292_v55 = vadd.f32 %v3128_v29, %v7631_v30 }
 0x33b   : > { %v5478_v0 = vpop.f32.mrf.mxu0  ;;  %v5498_v49 = vpop.f32.mrf.mxu1 }
 0x33d   : > { %v3133_v62 = vpop.f32.mrf.mxu1  ;;  %v3494_v27 = vpop.f32.mrf.mxu0 }
 0x33e   : > { %v3660_v17 = vadd.f32 %v3494_v27, %v3291_v61  ;;  %v3293_v50 = vadd.f32 %v3133_v62, %v7637_v19 }
 0x33f   : > { %v5501_v5 = vpop.f32.mrf.mxu1  ;;  %v5597_v11 = vpop.f32.mrf.mxu0 }
 0x340   : > { %3701 = vst [vmem:[%s7893_s20] sm:$0xff] %v3660_v17  ;;  %v3988_v26 = vmul.f32 %v3786_v58, %v3660_v17  ;;  %v3801_v11 = vpop.permute.xlu1 %3800 }
 0x341   : > { %v3136_v13 = vpop.f32.mrf.mxu1  ;;  %v3497_v63 = vpop.f32.mrf.mxu0 }
 0x342   : > { %v3661_v37 = vadd.f32 %v3497_v63, %v3292_v55  ;;  %v4077_v35 = vmul.f32 %v3988_v26, %v3660_v17  ;;  %v3294_v58 = vadd.f32 %v3136_v13, %v7646_v23  ;;  %v3806_v23 = vpop.permute.xlu0 %3805 }
 0x343   : > { %v5502_v18 = vpop.f32.mrf.mxu1  ;;  %v5598_v22 = vpop.f32.mrf.mxu0 }
 0x344   : > { %3702 = vst [vmem:[%s7893_s20 + $0x8] sm:$0xff] %v3661_v37  ;;  %v3989_v44 = vmul.f32 %v3791_v41, %v3661_v37 }
 0x345   : > { %v3141_v52 = vpop.f32.mrf.mxu1  ;;  %v3502_v56 = vpop.f32.mrf.mxu0 }
 0x346   : > { %v4029_v0 = vadd.f32 %v3989_v44, %v3988_v26  ;;  %v4078_v49 = vmul.f32 %v3989_v44, %v3661_v37  ;;  %v3662_v30 = vadd.f32 %v3502_v56, %v3293_v50  ;;  %v3295_v26 = vadd.f32 %v3141_v52, %v7651_v2 }
 0x347   : > { %v5505_v29 = vpop.f32.mrf.mxu1  ;;  %v5601_v61 = vpop.f32.mrf.mxu0 }
 0x348   : > { %v4118_v27 = vadd.f32 %v4078_v49, %v4077_v35  ;;  %3703 = vst [vmem:[%s7893_s20 + $0x10] sm:$0xff] %v3662_v30  ;;  %v3990_v5 = vmul.f32 %v3796_v21, %v3662_v30 }
 0x349   : > { %v3144_v55 = vpop.f32.mrf.mxu1  ;;  %v3505_v63 = vpop.f32.mrf.mxu0 }
 0x34a   : > { %v4030_v19 = vadd.f32 %v4029_v0, %v3990_v5  ;;  %v4079_v62 = vmul.f32 %v3990_v5, %v3662_v30  ;;  %v3663_v41 = vadd.f32 %v3505_v63, %v3294_v58  ;;  %v3296_v0 = vadd.f32 %v3144_v55, %v7661_v3  ;;  %v3816_v3 = vpop.permute.xlu0 %3815 }
 0x34b   : > { %v5506_v18 = vpop.f32.mrf.mxu1  ;;  %v5602_v17 = vpop.f32.mrf.mxu0 }
 0x34c   : > { %v4119_v37 = vadd.f32 %v4118_v27, %v4079_v62  ;;  %3704 = vst [vmem:[%s7893_s20 + $0x18] sm:$0xff] %v3663_v41  ;;  %v3991_v22 = vmul.f32 %v3801_v11, %v3663_v41  ;;  %v3811_v27 = vpop.permute.xlu1 %3810 }
 0x34d   : > { %v3149_v50 = vpop.f32.mrf.mxu1  ;;  %v3510_v44 = vpop.f32.mrf.mxu0 }
 0x34e   : > { %v4031_v13 = vadd.f32 %v4030_v19, %v3991_v22  ;;  %v4080_v56 = vmul.f32 %v3991_v22, %v3663_v41  ;;  %v3664_v21 = vadd.f32 %v3510_v44, %v3295_v26  ;;  %v3297_v19 = vadd.f32 %v3149_v50, %v7667_v53 }
 0x34f   : > { %v5509_v35 = vpop.f32.mrf.mxu1  ;;  %v5605_v49 = vpop.f32.mrf.mxu0 }
 0x350   : > { %v4120_v30 = vadd.f32 %v4119_v37, %v4080_v56  ;;  %3705 = vst [vmem:[%s7893_s20 + $0x20] sm:$0xff] %v3664_v21  ;;  %v3992_v29 = vmul.f32 %v3806_v23, %v3664_v21  ;;  %v3821_v53 = vpop.permute.xlu1 %3820 }
 0x351   : > { %v3152_v61 = vpop.f32.mrf.mxu1  ;;  %v3513_v58 = vpop.f32.mrf.mxu0 }
 0x352   : > { %v4032_v2 = vadd.f32 %v4031_v13, %v3992_v29  ;;  %v4081_v52 = vmul.f32 %v3992_v29, %v3664_v21  ;;  %v3665_v5 = vadd.f32 %v3513_v58, %v3296_v0  ;;  %v3298_v23 = vadd.f32 %v3152_v61, %v7676_v59  ;;  %v3826_v59 = vpop.permute.xlu0 %3825 }
 0x353   : > { %v5510_v11 = vpop.f32.mrf.mxu1  ;;  %v5606_v63 = vpop.f32.mrf.mxu0 }
 0x354   : > { %v4121_v62 = vadd.f32 %v4120_v30, %v4081_v52  ;;  %3706 = vst [vmem:[%s7893_s20 + $0x28] sm:$0xff] %v3665_v5  ;;  %v3993_v41 = vmul.f32 %v3811_v27, %v3665_v5 }
 0x355   : > { %v3157_v18 = vpop.f32.mrf.mxu1  ;;  %v3518_v17 = vpop.f32.mrf.mxu0 }
 0x356   : > { %v4033_v55 = vadd.f32 %v4032_v2, %v3993_v41  ;;  %v4082_v26 = vmul.f32 %v3993_v41, %v3665_v5  ;;  %v3666_v37 = vadd.f32 %v3518_v17, %v3297_v19  ;;  %v3299_v58 = vadd.f32 %v3157_v18, %v7681_v28  ;;  %v3831_v28 = vpop.permute.xlu1 %3830 }
 0x357   : > { %v5513_v22 = vpop.f32.mrf.mxu1  ;;  %v5609_v44 = vpop.f32.mrf.mxu0 }
 0x358   : > { %v4122_v13 = vadd.f32 %v4121_v62, %v4082_v26  ;;  %3707 = vst [vmem:[%s7893_s20 + $0x30] sm:$0xff] %v3666_v37  ;;  %v3994_v56 = vmul.f32 %v3816_v3, %v3666_v37 }
 0x359   : > { %v3160_v21 = vpop.f32.mrf.mxu1  ;;  %v3521_v35 = vpop.f32.mrf.mxu0 }
 0x35a   : > { %v4034_v50 = vadd.f32 %v4033_v55, %v3994_v56  ;;  %v4083_v49 = vmul.f32 %v3994_v56, %v3666_v37  ;;  %v3667_v0 = vadd.f32 %v3521_v35, %v3298_v23  ;;  %v3300_v41 = vadd.f32 %v3160_v21, %v7691_v16  ;;  %v3836_v16 = vpop.permute.xlu0 %3835 }
 0x35b   : > { %v5514_v30 = vpop.f32.mrf.mxu1  ;;  %v5610_v29 = vpop.f32.mrf.mxu0 }
 0x35c   : > { %v4123_v2 = vadd.f32 %v4122_v13, %v4083_v49  ;;  %3708 = vst [vmem:[%s7893_s20 + $0x38] sm:$0xff] %v3667_v0  ;;  %v3995_v52 = vmul.f32 %v3821_v53, %v3667_v0 }
 0x35d   : > { %v3165_v27 = vpop.f32.mrf.mxu1  ;;  %v3526_v5 = vpop.f32.mrf.mxu0 }
 0x35e   : > { %v4035_v61 = vadd.f32 %v4034_v50, %v3995_v52  ;;  %v4084_v11 = vmul.f32 %v3995_v52, %v3667_v0  ;;  %v3668_v63 = vadd.f32 %v3526_v5, %v3299_v58  ;;  %v3301_v13 = vadd.f32 %v3165_v27, %v7697_v8  ;;  %v3841_v8 = vpop.permute.xlu1 %3840 }
 0x35f   : > { %v5517_v19 = vpop.f32.mrf.mxu1  ;;  %v5613_v62 = vpop.f32.mrf.mxu0 }
 0x360   : > { %v4124_v17 = vadd.f32 %v4123_v2, %v4084_v11  ;;  %3709 = vst [vmem:[%s7893_s20 + $0x40] sm:$0xff] %v3668_v63  ;;  %v3996_v3 = vmul.f32 %v3826_v59, %v3668_v63 }
 0x361   : > { %v3168_v55 = vpop.f32.mrf.mxu1  ;;  %v3529_v26 = vpop.f32.mrf.mxu0 }
 0x362   : > { %v4036_v18 = vadd.f32 %v4035_v61, %v3996_v3  ;;  %v4085_v37 = vmul.f32 %v3996_v3, %v3668_v63  ;;  %v3669_v22 = vadd.f32 %v3529_v26, %v3300_v41  ;;  %v3302_v58 = vadd.f32 %v3168_v55, %v7706_v60  ;;  %v3846_v60 = vpop.permute.xlu0 %3845 }
 0x363   : > { %v5518_v44 = vpop.f32.mrf.mxu1  ;;  %v5614_v23 = vpop.f32.mrf.mxu0 }
 0x364   : > { %v4125_v56 = vadd.f32 %v4124_v17, %v4085_v37  ;;  %3710 = vst [vmem:[%s7893_s20 + $0x48] sm:$0xff] %v3669_v22  ;;  %v3997_v35 = vmul.f32 %v3831_v28, %v3669_v22 }
 0x365   : > { %v3173_v53 = vpop.f32.mrf.mxu1  ;;  %v3534_v50 = vpop.f32.mrf.mxu0 }
 0x366   : > { %v4037_v21 = vadd.f32 %v4036_v18, %v3997_v35  ;;  %v4086_v49 = vmul.f32 %v3997_v35, %v3669_v22  ;;  %v3670_v0 = vadd.f32 %v3534_v50, %v3301_v13  ;;  %v3303_v62 = vadd.f32 %v3173_v53, %v7711_v10  ;;  %v3851_v10 = vpop.permute.xlu1 %3850 }
 0x367   : > { %v5521_v30 = vpop.f32.mrf.mxu1  ;;  %v5617_v29 = vpop.f32.mrf.mxu0 }
 0x368   : > { %v4126_v2 = vadd.f32 %v4125_v56, %v4086_v49  ;;  %3711 = vst [vmem:[%s7893_s20 + $0x50] sm:$0xff] %v3670_v0  ;;  %v3998_v52 = vmul.f32 %v3836_v16, %v3670_v0 }
 0x369   : > { %v3176_v5 = vpop.f32.mrf.mxu1  ;;  %v3537_v59 = vpop.f32.mrf.mxu0 }
 0x36a   : > { %v4038_v27 = vadd.f32 %v4037_v21, %v3998_v52  ;;  %v4087_v61 = vmul.f32 %v3998_v52, %v3670_v0  ;;  %v3671_v11 = vadd.f32 %v3537_v59, %v3302_v58  ;;  %v3304_v44 = vadd.f32 %v3176_v5, %v7721_v38  ;;  %v3856_v38 = vpop.permute.xlu0 %3855 }
 0x36b   : > { %v5522_v63 = vpop.f32.mrf.mxu1  ;;  %v5618_v19 = vpop.f32.mrf.mxu0 }
 0x36c   : > { %v4127_v41 = vadd.f32 %v4126_v2, %v4087_v61  ;;  %3712 = vst [vmem:[%s7893_s20 + $0x58] sm:$0xff] %v3671_v11  ;;  %v3999_v17 = vmul.f32 %v3841_v8, %v3671_v11 }
 0x36d   : > { %v3181_v3 = vpop.f32.mrf.mxu1  ;;  %v3542_v26 = vpop.f32.mrf.mxu0 }
 0x36e   : > { %v4039_v55 = vadd.f32 %v4038_v27, %v3999_v17  ;;  %v4088_v28 = vmul.f32 %v3999_v17, %v3671_v11  ;;  %v3672_v18 = vadd.f32 %v3542_v26, %v3303_v62  ;;  %v3305_v0 = vadd.f32 %v3181_v3, %v7727_v24  ;;  %v3861_v24 = vpop.permute.xlu1 %3860 }
 0x36f   : > { %v5525_v37 = vpop.f32.mrf.mxu1  ;;  %v5621_v22 = vpop.f32.mrf.mxu0 }
 0x370   : > { %v4128_v23 = vadd.f32 %v4127_v41, %v4088_v28  ;;  %3713 = vst [vmem:[%s7893_s20 + $0x60] sm:$0xff] %v3672_v18  ;;  %v4000_v13 = vmul.f32 %v3846_v60, %v3672_v18 }
 0x371   : > { %v3184_v56 = vpop.f32.mrf.mxu1  ;;  %v3545_v35 = vpop.f32.mrf.mxu0 }
 0x372   : > { %v4040_v53 = vadd.f32 %v4039_v55, %v4000_v13  ;;  %v4089_v50 = vmul.f32 %v4000_v13, %v3672_v18  ;;  %v3673_v16 = vadd.f32 %v3545_v35, %v3304_v44  ;;  %v3306_v61 = vadd.f32 %v3184_v56, %v7736_v57  ;;  %v3866_v57 = vpop.permute.xlu0 %3865 }
 0x373   : > { %v5526_v21 = vpop.f32.mrf.mxu1  ;;  %v5622_v49 = vpop.f32.mrf.mxu0 }
 0x374   : > { %v4129_v30 = vadd.f32 %v4128_v23, %v4089_v50  ;;  %3714 = vst [vmem:[%s7893_s20 + $0x68] sm:$0xff] %v3673_v16  ;;  %v4001_v29 = vmul.f32 %v3851_v10, %v3673_v16 }
 0x375   : > { %v3189_v58 = vpop.f32.mrf.mxu1  ;;  %v3550_v2 = vpop.f32.mrf.mxu0 }
 0x376   : > { %v4041_v52 = vadd.f32 %v4040_v53, %v4001_v29  ;;  %v4090_v5 = vmul.f32 %v4001_v29, %v3673_v16  ;;  %v3674_v59 = vadd.f32 %v3550_v2, %v3305_v0  ;;  %v3307_v55 = vadd.f32 %v3189_v58, %v7741_v12  ;;  %v3871_v12 = vpop.permute.xlu1 %3870 }
 0x377   : > { %v5529_v8 = vpop.f32.mrf.mxu1  ;;  %v5625_v27 = vpop.f32.mrf.mxu0 }
 0x378   : > { %v4130_v11 = vadd.f32 %v4129_v30, %v4090_v5  ;;  %3715 = vst [vmem:[%s7893_s20 + $0x70] sm:$0xff] %v3674_v59  ;;  %v4002_v63 = vmul.f32 %v3856_v38, %v3674_v59 }
 0x379   : > { %v3192_v19 = vpop.f32.mrf.mxu1  ;;  %v3553_v62 = vpop.f32.mrf.mxu0 }
 0x37a   : > { %v4042_v41 = vadd.f32 %v4041_v52, %v4002_v63  ;;  %v4091_v17 = vmul.f32 %v4002_v63, %v3674_v59  ;;  %v3675_v3 = vadd.f32 %v3553_v62, %v3306_v61  ;;  %v3308_v10 = vadd.f32 %v3192_v19, %v7751_v4  ;;  %v3876_v4 = vpop.permute.xlu0 %3875 }
 0x37b   : > { %v5530_v26 = vpop.f32.mrf.mxu1  ;;  %v5626_v60 = vpop.f32.mrf.mxu0 }
 0x37c   : > { %v4131_v28 = vadd.f32 %v4130_v11, %v4091_v17  ;;  %3716 = vst [vmem:[%s7893_s20 + $0x78] sm:$0xff] %v3675_v3  ;;  %v4003_v18 = vmul.f32 %v3861_v24, %v3675_v3 }
 0x37d   : > { %v3197_v37 = vpop.f32.mrf.mxu1  ;;  %v3558_v22 = vpop.f32.mrf.mxu0 }
 0x37e   : > { %v4043_v44 = vadd.f32 %v4042_v41, %v4003_v18  ;;  %v4092_v23 = vmul.f32 %v4003_v18, %v3675_v3  ;;  %v3676_v13 = vadd.f32 %v3558_v22, %v3307_v55  ;;  %v3309_v2 = vadd.f32 %v3197_v37, %v7757_v31  ;;  %v3881_v31 = vpop.permute.xlu1 %3880 }
 0x37f   : > { %v5533_v56 = vpop.f32.mrf.mxu1  ;;  %v5629_v35 = vpop.f32.mrf.mxu0 }
 0x380   : > { %v4132_v53 = vadd.f32 %v4131_v28, %v4092_v23  ;;  %3717 = vst [vmem:[%s7893_s20 + $0x80] sm:$0xff] %v3676_v13  ;;  %v4004_v50 = vmul.f32 %v3866_v57, %v3676_v13 }
 0x381   : > { %v3200_v16 = vpop.f32.mrf.mxu1  ;;  %v3561_v21 = vpop.f32.mrf.mxu0 }
 0x382   : > { %v4044_v49 = vadd.f32 %v4043_v44, %v4004_v50  ;;  %v4093_v0 = vmul.f32 %v4004_v50, %v3676_v13  ;;  %v3677_v30 = vadd.f32 %v3561_v21, %v3308_v10  ;;  %v3310_v19 = vadd.f32 %v3200_v16, %v7766_v7  ;;  %v3886_v7 = vpop.permute.xlu0 %3885 }
 0x383   : > { %v5534_v29 = vpop.f32.mrf.mxu1  ;;  %v5630_v58 = vpop.f32.mrf.mxu0 }
 0x384   : > { %v4133_v38 = vadd.f32 %v4132_v53, %v4093_v0  ;;  %3718 = vst [vmem:[%s7893_s20 + $0x88] sm:$0xff] %v3677_v30  ;;  %v4005_v52 = vmul.f32 %v3871_v12, %v3677_v30 }
 0x385   : > { %v3205_v5 = vpop.f32.mrf.mxu1  ;;  %v3566_v59 = vpop.f32.mrf.mxu0 }
 0x386   : > { %v4045_v8 = vadd.f32 %v4044_v49, %v4005_v52  ;;  %v4094_v27 = vmul.f32 %v4005_v52, %v3677_v30  ;;  %v3678_v61 = vadd.f32 %v3566_v59, %v3309_v2  ;;  %v3311_v18 = vadd.f32 %v3205_v5, %v7771_v15  ;;  %v3891_v15 = vpop.permute.xlu1 %3890 }
 0x387   : > { %v5537_v11 = vpop.f32.mrf.mxu1  ;;  %v5633_v63 = vpop.f32.mrf.mxu0 }
 0x388   : > { %v4134_v62 = vadd.f32 %v4133_v38, %v4094_v27  ;;  %3719 = vst [vmem:[%s7893_s20 + $0x90] sm:$0xff] %v3678_v61  ;;  %v4006_v24 = vmul.f32 %v3876_v4, %v3678_v61 }
 0x389   : > { %v3208_v41 = vpop.f32.mrf.mxu1  ;;  %v3569_v17 = vpop.f32.mrf.mxu0 }
 0x38a   : > { %v4046_v3 = vadd.f32 %v4045_v8, %v4006_v24  ;;  %v4095_v26 = vmul.f32 %v4006_v24, %v3678_v61  ;;  %v3679_v60 = vadd.f32 %v3569_v17, %v3310_v19  ;;  %v3312_v53 = vadd.f32 %v3208_v41, %v7781_v33  ;;  %v3896_v33 = vpop.permute.xlu0 %3895 }
 0x38b   : > { %v5538_v55 = vpop.f32.mrf.mxu1  ;;  %v5634_v28 = vpop.f32.mrf.mxu0 }
 0x38c   : > { %v4135_v37 = vadd.f32 %v4134_v62, %v4095_v26  ;;  %3720 = vst [vmem:[%s7893_s20 + $0x98] sm:$0xff] %v3679_v60  ;;  %v4007_v22 = vmul.f32 %v3881_v31, %v3679_v60 }
 0x38d   : > { %v3213_v57 = vpop.f32.mrf.mxu1  ;;  %v3574_v44 = vpop.f32.mrf.mxu0 }
 0x38e   : > { %v4047_v23 = vadd.f32 %v4046_v3, %v4007_v22  ;;  %v4096_v13 = vmul.f32 %v4007_v22, %v3679_v60  ;;  %v3680_v56 = vadd.f32 %v3574_v44, %v3311_v18  ;;  %v3313_v2 = vadd.f32 %v3213_v57, %v7787_v40  ;;  %v3901_v40 = vpop.permute.xlu1 %3900 }
 0x38f   : > { %v5541_v35 = vpop.f32.mrf.mxu1  ;;  %v5637_v10 = vpop.f32.mrf.mxu0 }
 0x390   : > { %v4136_v50 = vadd.f32 %v4135_v37, %v4096_v13  ;;  %3721 = vst [vmem:[%s7893_s20 + $0xa0] sm:$0xff] %v3680_v56  ;;  %v4008_v16 = vmul.f32 %v3886_v7, %v3680_v56 }
 0x391   : > { %v3216_v21 = vpop.f32.mrf.mxu1  ;;  %v3577_v12 = vpop.f32.mrf.mxu0 }
 0x392   : > { %v4048_v49 = vadd.f32 %v4047_v23, %v4008_v16  ;;  %v4097_v0 = vmul.f32 %v4008_v16, %v3680_v56  ;;  %v3681_v30 = vadd.f32 %v3577_v12, %v3312_v53  ;;  %v3314_v63 = vadd.f32 %v3216_v21, %v7796_v48  ;;  %v3906_v48 = vpop.permute.xlu0 %3905 }
 0x393   : > { %v5542_v29 = vpop.f32.mrf.mxu1  ;;  %v5638_v58 = vpop.f32.mrf.mxu0 }
 0x394   : > { %v4137_v38 = vadd.f32 %v4136_v50, %v4097_v0  ;;  %3722 = vst [vmem:[%s7893_s20 + $0xa8] sm:$0xff] %v3681_v30  ;;  %v4009_v52 = vmul.f32 %v3891_v15, %v3681_v30 }
 0x395   : > { %v3221_v5 = vpop.f32.mrf.mxu1  ;;  %v3582_v59 = vpop.f32.mrf.mxu0 }
 0x396   : > { %v4049_v4 = vadd.f32 %v4048_v49, %v4009_v52  ;;  %v4098_v8 = vmul.f32 %v4009_v52, %v3681_v30  ;;  %v3682_v27 = vadd.f32 %v3582_v59, %v3313_v2  ;;  %v3315_v55 = vadd.f32 %v3221_v5, %v7806_v32  ;;  %v3911_v32 = vpop.permute.xlu1 %3910 }
 0x397   : > { %v5545_v61 = vpop.f32.mrf.mxu1  ;;  %v5641_v11 = vpop.f32.mrf.mxu0 }
 0x398   : > { %v4138_v19 = vadd.f32 %v4137_v38, %v4098_v8  ;;  %3723 = vst [vmem:[%s7893_s20 + $0xb0] sm:$0xff] %v3682_v27  ;;  %v4010_v62 = vmul.f32 %v3896_v33, %v3682_v27 }
 0x399   : > { %v3224_v24 = vpop.f32.mrf.mxu1  ;;  %v3585_v41 = vpop.f32.mrf.mxu0 }
 0x39a   : > { %v4050_v17 = vadd.f32 %v4049_v4, %v4010_v62  ;;  %v4099_v31 = vmul.f32 %v4010_v62, %v3682_v27  ;;  %v3683_v3 = vadd.f32 %v3585_v41, %v3314_v63  ;;  %v3316_v56 = vadd.f32 %v3224_v24, %v7817_v43  ;;  %v3916_v43 = vpop.permute.xlu0 %3915 }
 0x39b   : > { %v5546_v26 = vpop.f32.mrf.mxu1  ;;  %v5642_v60 = vpop.f32.mrf.mxu0 }
 0x39c   : > { %v4139_v28 = vadd.f32 %v4138_v19, %v4099_v31  ;;  %3724 = vst [vmem:[%s7893_s20 + $0xb8] sm:$0xff] %v3683_v3  ;;  %v4011_v18 = vmul.f32 %v3901_v40, %v3683_v3 }
 0x39d   : > { %v3229_v37 = vpop.f32.mrf.mxu1  ;;  %v3590_v22 = vpop.f32.mrf.mxu0 }
 0x39e   : > { %v4051_v57 = vadd.f32 %v4050_v17, %v4011_v18  ;;  %v4100_v44 = vmul.f32 %v4011_v18, %v3683_v3  ;;  %v3684_v7 = vadd.f32 %v3590_v22, %v3315_v55  ;;  %v3317_v0 = vadd.f32 %v3229_v37, %v7823_v6  ;;  %v3921_v6 = vpop.permute.xlu1 %3920 }
 0x39f   : > { %v5549_v23 = vpop.f32.mrf.mxu1  ;;  %v5645_v13 = vpop.f32.mrf.mxu0 }
 0x3a0   : > { %v4140_v35 = vadd.f32 %v4139_v28, %v4100_v44  ;;  %3725 = vst [vmem:[%s7893_s20 + $0xc0] sm:$0xff] %v3684_v7  ;;  %v4012_v10 = vmul.f32 %v3906_v48, %v3684_v7 }
 0x3a1   : > { %v3232_v53 = vpop.f32.mrf.mxu1  ;;  %v3593_v50 = vpop.f32.mrf.mxu0 }
 0x3a2   : > { %v4052_v16 = vadd.f32 %v4051_v57, %v4012_v10  ;;  %v4101_v21 = vmul.f32 %v4012_v10, %v3684_v7  ;;  %v3685_v12 = vadd.f32 %v3593_v50, %v3316_v56  ;;  %v3318_v4 = vadd.f32 %v3232_v53, %v7834_v54  ;;  %v3926_v54 = vpop.permute.xlu0 %3925 }
 0x3a3   : > { %v5550_v15 = vpop.f32.mrf.mxu1  ;;  %v5646_v49 = vpop.f32.mrf.mxu0 }
 0x3a4   : > { %v4141_v30 = vadd.f32 %v4140_v35, %v4101_v21  ;;  %3726 = vst [vmem:[%s7893_s20 + $0xc8] sm:$0xff] %v3685_v12  ;;  %v4013_v29 = vmul.f32 %v3911_v32, %v3685_v12 }
 0x3a5   : > { %v3237_v58 = vpop.f32.mrf.mxu1  ;;  %v3598_v2 = vpop.f32.mrf.mxu0 }
 0x3a6   : > { %v4053_v38 = vadd.f32 %v4052_v16, %v4013_v29  ;;  %v4102_v52 = vmul.f32 %v4013_v29, %v3685_v12  ;;  %v3686_v5 = vadd.f32 %v3598_v2, %v3317_v0  ;;  %v3319_v40 = vadd.f32 %v3237_v58, %v7837_v20  ;;  %v3931_v20 = vpop.permute.xlu1 %3930 }
 0x3a7   : > { %v5553_v59 = vpop.f32.mrf.mxu1  ;;  %v5649_v33 = vpop.f32.mrf.mxu0 }
 0x3a8   : > { %v4142_v8 = vadd.f32 %v4141_v30, %v4102_v52  ;;  %3727 = vst [vmem:[%s7893_s20 + $0xd0] sm:$0xff] %v3686_v5  ;;  %v4014_v27 = vmul.f32 %v3916_v43, %v3686_v5 }
 0x3a9   : > { %v3240_v61 = vpop.f32.mrf.mxu1  ;;  %v3601_v11 = vpop.f32.mrf.mxu0 }
 0x3aa   : > { %v4054_v63 = vadd.f32 %v4053_v38, %v4014_v27  ;;  %v4103_v19 = vmul.f32 %v4014_v27, %v3686_v5  ;;  %v3687_v62 = vadd.f32 %v3601_v11, %v3318_v4  ;;  %v3320_v22 = vadd.f32 %v3240_v61, %v7845_v51  ;;  %v3936_v51 = vpop.permute.xlu0 %3935 }
 0x3ab   : > { %v5554_v24 = vpop.f32.mrf.mxu1  ;;  %v5650_v41 = vpop.f32.mrf.mxu0 }
 0x3ac   : > { %v4143_v17 = vadd.f32 %v4142_v8, %v4103_v19  ;;  %3728 = vst [vmem:[%s7893_s20 + $0xd8] sm:$0xff] %v3687_v62  ;;  %v4015_v31 = vmul.f32 %v3921_v6, %v3687_v62 }
 0x3ad   : > { %v3245_v3 = vpop.f32.mrf.mxu1  ;;  %v3606_v26 = vpop.f32.mrf.mxu0 }
 0x3ae   : > { %v4055_v60 = vadd.f32 %v4054_v63, %v4015_v31  ;;  %v4104_v55 = vmul.f32 %v4015_v31, %v3687_v62  ;;  %v3688_v28 = vadd.f32 %v3606_v26, %v3319_v40  ;;  %v3321_v53 = vadd.f32 %v3245_v3, %v7850_v34  ;;  %v3941_v34 = vpop.permute.xlu1 %3940 }
 0x3af   : > { %v5557_v18 = vpop.f32.mrf.mxu1  ;;  %v5653_v37 = vpop.f32.mrf.mxu0 }
 0x3b0   : > { %v4144_v48 = vadd.f32 %v4143_v17, %v4104_v55  ;;  %3729 = vst [vmem:[%s7893_s20 + $0xe0] sm:$0xff] %v3688_v28  ;;  %v4016_v57 = vmul.f32 %v3926_v54, %v3688_v28 }
 0x3b1   : > { %v3248_v44 = vpop.f32.mrf.mxu1  ;;  %v3609_v7 = vpop.f32.mrf.mxu0 }
 0x3b2   : > { %v4056_v23 = vadd.f32 %v4055_v60, %v4016_v57  ;;  %v4105_v13 = vmul.f32 %v4016_v57, %v3688_v28  ;;  %v3689_v56 = vadd.f32 %v3609_v7, %v3320_v22  ;;  %v3322_v29 = vadd.f32 %v3248_v44, %v7858_v36  ;;  %v3946_v36 = vpop.permute.xlu0 %3945 }
 0x3b3   : > { %v5558_v35 = vpop.f32.mrf.mxu1  ;;  %v5654_v10 = vpop.f32.mrf.mxu0 }
 0x3b4   : > { %v4145_v50 = vadd.f32 %v4144_v48, %v4105_v13  ;;  %3730 = vst [vmem:[%s7893_s20 + $0xe8] sm:$0xff] %v3689_v56  ;;  %v4017_v32 = vmul.f32 %v3931_v20, %v3689_v56 }
 0x3b5   : > { %v3253_v16 = vpop.f32.mrf.mxu1  ;;  %v3614_v21 = vpop.f32.mrf.mxu0 }
 0x3b6   : > { %v4057_v12 = vadd.f32 %v4056_v23, %v4017_v32  ;;  %v4106_v15 = vmul.f32 %v4017_v32, %v3689_v56  ;;  %v3690_v49 = vadd.f32 %v3614_v21, %v3321_v53  ;;  %v3323_v8 = vadd.f32 %v3253_v16, %v7862_v47  ;;  %v3951_v47 = vpop.permute.xlu1 %3950 }
 0x3b7   : > { %v5561_v0 = vpop.f32.mrf.mxu1  ;;  %v5657_v30 = vpop.f32.mrf.mxu0 }
 0x3b8   : > { %v4146_v58 = vadd.f32 %v4145_v50, %v4106_v15  ;;  %3731 = vst [vmem:[%s7893_s20 + $0xf0] sm:$0xff] %v3690_v49  ;;  %v4018_v2 = vmul.f32 %v3936_v51, %v3690_v49 }
 0x3b9   : > { %v3256_v43 = vpop.f32.mrf.mxu1  ;;  %v3617_v38 = vpop.f32.mrf.mxu0 }
 0x3ba   : > { %v4058_v52 = vadd.f32 %v4057_v12, %v4018_v2  ;;  %v4107_v5 = vmul.f32 %v4018_v2, %v3690_v49  ;;  %v3691_v59 = vadd.f32 %v3617_v38, %v3322_v29  ;;  %v3324_v40 = vadd.f32 %v3256_v43, %v7867_v39  ;;  %v3956_v39 = vpop.permute.xlu0 %3955 }
 0x3bb   : > { %v5562_v33 = vpop.f32.mrf.mxu1  ;;  %v5658_v4 = vpop.f32.mrf.mxu0 }
 0x3bc   : > { %v4147_v27 = vadd.f32 %v4146_v58, %v4107_v5  ;;  %3732 = vst [vmem:[%s7893_s20 + $0xf8] sm:$0xff] %v3691_v59  ;;  %v4019_v61 = vmul.f32 %v3941_v34, %v3691_v59 }
 0x3bd   : > { %v3261_v11 = vpop.f32.mrf.mxu1  ;;  %v3622_v6 = vpop.f32.mrf.mxu0 }
 0x3be   : > { %v4059_v63 = vadd.f32 %v4058_v52, %v4019_v61  ;;  %v4108_v19 = vmul.f32 %v4019_v61, %v3691_v59  ;;  %v3692_v62 = vadd.f32 %v3622_v6, %v3323_v8  ;;  %v3325_v37 = vadd.f32 %v3261_v11, %v7870_v46  ;;  %v3961_v46 = vpop.permute.xlu1 %3960 }
 0x3bf   : > { %v5565_v24 = vpop.f32.mrf.mxu1  ;;  %v5661_v41 = vpop.f32.mrf.mxu0 }
 0x3c0   : > { %v4148_v17 = vadd.f32 %v4147_v27, %v4108_v19  ;;  %3733 = vst [vmem:[%s7893_s20 + $0x100] sm:$0xff] %v3692_v62  ;;  %v4020_v31 = vmul.f32 %v3946_v36, %v3692_v62 }
 0x3c1   : > { %v3264_v3 = vpop.f32.mrf.mxu1  ;;  %v3625_v26 = vpop.f32.mrf.mxu0 }
 0x3c2   : > { %v4060_v54 = vadd.f32 %v4059_v63, %v4020_v31  ;;  %v4109_v60 = vmul.f32 %v4020_v31, %v3692_v62  ;;  %v3693_v55 = vadd.f32 %v3625_v26, %v3324_v40  ;;  %v3326_v35 = vadd.f32 %v3264_v3, %v7873_v1  ;;  %v3966_v1 = vpop.permute.xlu0 %3965 }
 0x3c3   : > { %v5566_v28 = vpop.f32.mrf.mxu1  ;;  %v5662_v18 = vpop.f32.mrf.mxu0 }
 0x3c4   : > { %v4149_v22 = vadd.f32 %v4148_v17, %v4109_v60  ;;  %3734 = vst [vmem:[%s7893_s20 + $0x108] sm:$0xff] %v3693_v55  ;;  %v4021_v48 = vmul.f32 %v3951_v47, %v3693_v55 }
 0x3c5   : > { %v3269_v57 = vpop.f32.mrf.mxu1  ;;  %v3630_v44 = vpop.f32.mrf.mxu0 }
 0x3c6   : > { %v4061_v7 = vadd.f32 %v4060_v54, %v4021_v48  ;;  %v4110_v20 = vmul.f32 %v4021_v48, %v3693_v55  ;;  %v3694_v23 = vadd.f32 %v3630_v44, %v3325_v37  ;;  %v3327_v49 = vadd.f32 %v3269_v57, %v7876_v42  ;;  %v3971_v42 = vpop.permute.xlu1 %3970 }
 0x3c7   : > { %v5569_v13 = vpop.f32.mrf.mxu1  ;;  %v5665_v56 = vpop.f32.mrf.mxu0 }
 0x3c8   : > { %v4150_v10 = vadd.f32 %v4149_v22, %v4110_v20  ;;  %3735 = vst [vmem:[%s7893_s20 + $0x110] sm:$0xff] %v3694_v23  ;;  %v4022_v53 = vmul.f32 %v3956_v39, %v3694_v23 }
 0x3c9   : > { %v3272_v50 = vpop.f32.mrf.mxu1  ;;  %v3633_v32 = vpop.f32.mrf.mxu0 }
 0x3ca   : > { %v4062_v16 = vadd.f32 %v4061_v7, %v4022_v53  ;;  %v4111_v21 = vmul.f32 %v4022_v53, %v3694_v23  ;;  %v3695_v51 = vadd.f32 %v3633_v32, %v3326_v35  ;;  %v3328_v5 = vadd.f32 %v3272_v50, %v7879_v14  ;;  %v3976_v14 = vpop.permute.xlu0 %3975 }
 0x3cb   : > { %v5570_v12 = vpop.f32.mrf.mxu1  ;;  %v5666_v15 = vpop.f32.mrf.mxu0 }
 0x3cc   : > { %v4151_v0 = vadd.f32 %v4150_v10, %v4111_v21  ;;  %3736 = vst [vmem:[%s7893_s20 + $0x118] sm:$0xff] %v3695_v51  ;;  %v4023_v30 = vmul.f32 %v3961_v46, %v3695_v51 }
 0x3cd   : > { %v3277_v29 = vpop.f32.mrf.mxu1  ;;  %v3638_v58 = vpop.f32.mrf.mxu0 }
 0x3ce   : > { %v4063_v2 = vadd.f32 %v4062_v16, %v4023_v30  ;;  %v4112_v43 = vmul.f32 %v4023_v30, %v3695_v51  ;;  %v3696_v38 = vadd.f32 %v3638_v58, %v3327_v49  ;;  %v3329_v63 = vadd.f32 %v3277_v29, %v7882_v25  ;;  %v3981_v25 = vpop.permute.xlu1 %3980  ;;  %v3986_v56 = vpop.permute.xlu0 %3985 }
 0x3cf   : > { %v5573_v34 = vpop.f32.mrf.mxu1  ;;  %v5669_v52 = vpop.f32.mrf.mxu0 }
 0x3d0   : > { %v4152_v59 = vadd.f32 %v4151_v0, %v4112_v43  ;;  %3737 = vst [vmem:[%s7893_s20 + $0x120] sm:$0xff] %v3696_v38  ;;  %v4024_v33 = vmul.f32 %v3966_v1, %v3696_v38 }
 0x3d1   : > { %v3280_v4 = vpop.f32.mrf.mxu1  ;;  %v3641_v8 = vpop.f32.mrf.mxu0 }
 0x3d2   : > { %v4064_v27 = vadd.f32 %v4063_v2, %v4024_v33  ;;  %v4113_v61 = vmul.f32 %v4024_v33, %v3696_v38  ;;  %v3697_v11 = vadd.f32 %v3641_v8, %v3328_v5  ;;  %v3330_v47 = vadd.f32 %v3280_v4, %v7884_v45 }
 0x3d3   : > { %v5574_v6 = vpop.f32.mrf.mxu1  ;;  %v5670_v36 = vpop.f32.mrf.mxu0 }
 0x3d4   : > { %v4153_v19 = vadd.f32 %v4152_v59, %v4113_v61  ;;  %3738 = vst [vmem:[%s7893_s20 + $0x128] sm:$0xff] %v3697_v11  ;;  %v4025_v62 = vmul.f32 %v3971_v42, %v3697_v11 }
 0x3d5   : > { %v3285_v24 = vpop.f32.mrf.mxu1  ;;  %v3646_v41 = vpop.f32.mrf.mxu0 }
 0x3d6   : > { %v4065_v40 = vadd.f32 %v4064_v27, %v4025_v62  ;;  %v4114_v17 = vmul.f32 %v4025_v62, %v3697_v11  ;;  %v3698_v31 = vadd.f32 %v3646_v41, %v3329_v63  ;;  %v3331_v44 = vadd.f32 %v3285_v24, %v7886_v9 }
 0x3d7   : > { %v5673_v3 = vpop.f32.mrf.mxu0  ;;  %v5577_v26 = vpop.f32.mrf.mxu1 }
 0x3d8   : > { %v4154_v54 = vadd.f32 %v4153_v19, %v4114_v17  ;;  %3739 = vst [vmem:[%s7893_s20 + $0x130] sm:$0xff] %v3698_v31  ;;  %v4026_v60 = vmul.f32 %v3976_v14, %v3698_v31 }
 0x3d9   : > { %v3649_v55 = vpop.f32.mrf.mxu0  ;;  %v3288_v28 = vpop.f32.mrf.mxu1 }
 0x3da   : > { %v4066_v18 = vadd.f32 %v4065_v40, %v4026_v60  ;;  %v4115_v37 = vmul.f32 %v4026_v60, %v3698_v31  ;;  %v3699_v22 = vadd.f32 %v3649_v55, %v3330_v47 }
 0x3db   : > { %v5674_v48 = vpop.f32.mrf.mxu0  ;;  %v5578_v57 = vpop.f32.mrf.mxu1 }
 0x3dc   : > { %v4155_v39 = vadd.f32 %v4154_v54, %v4115_v37  ;;  %3740 = vst [vmem:[%s7893_s20 + $0x138] sm:$0xff] %v3699_v22  ;;  %v4027_v7 = vmul.f32 %v3981_v25, %v3699_v22 }
 0x3dd   : > { %v3654_v20 = vpop.f32.mrf.mxu0 }
 0x3de   : > { %v4067_v23 = vadd.f32 %v4066_v18, %v4027_v7  ;;  %v4116_v45 = vmul.f32 %v4027_v7, %v3699_v22  ;;  %v3700_v13 = vadd.f32 %v3654_v20, %v3331_v44 }
 0x3df   : > { %v5677_v35 = vpop.f32.mrf.mxu0 }
 0x3e0   : > { %v4156_v10 = vadd.f32 %v4155_v39, %v4116_v45  ;;  %3741 = vst [vmem:[%s7893_s20 + $0x140] sm:$0xf] %v3700_v13  ;;  %v4028_v53 = vmul.f32 %v3986_v56, %v3700_v13 }
 0x3e1   : > { %v3657_v50 = vpop.f32.mrf.mxu0 }
 0x3e2   : > { %v4069_v32 = vsel %vm4068_vm7, %v4028_v53, 0.0  ;;  %v4117_v46 = vmul.f32 %v4028_v53, %v3700_v13 }
 0x3e3   : > { %v4070_v16 = vadd.f32 %v4069_v32, %v4067_v23  ;;  %v5678_v21 = vpop.f32.mrf.mxu0 }
 0x3e4   : > { %v4157_v51 = vsel %vm4068_vm7, %v4117_v46, 0.0 }
 0x3e5   : > { %v4071_v9 = vrot.slane %v4070_v16, 4  ;;  %v4158_v12 = vadd.f32 %v4157_v51, %v4156_v10 }
 0x3e7   : > { %v4072_v15 = vadd.f32 %v4071_v9, %v4070_v16  ;;  %v4159_v49 = vrot.slane %v4158_v12, 4 }
 0x3e9   : > { %v4073_v0 = vrot.slane %v4072_v15, 2  ;;  %v4160_v30 = vadd.f32 %v4159_v49, %v4158_v12 }
 0x3eb   : > { %v4074_v29 = vadd.f32 %v4073_v0, %v4072_v15  ;;  %v4161_v58 = vrot.slane %v4160_v30, 2 }
 0x3ed   : > { %v4075_v1 = vrot.slane %v4074_v29, 1  ;;  %v4162_v2 = vadd.f32 %v4161_v58, %v4160_v30  ;;  %4168 = sbr.rel (%p4511_p4) target bundleno = 1012 (0x3f4), region = 36 }
 0x3ef   : > { %v4076_v43 = vadd.f32 %v4075_v1, %v4074_v29  ;;  %v4163_v38 = vrot.slane %v4162_v2, 1 }
 0x3f1   : > { %v4164_v34 = vadd.f32 %v4163_v38, %v4162_v2 }
 0x3f2   : > { %v5917_v52 = vmov 0.0  }
 0x3f3   : > { %4169 = vst [vmem:[#allocation2] sm:$0x1] %v5917_v52  ;;  %4170 = vst [vmem:[#allocation4] sm:$0x1] %v5917_v52 }
 0x3f4 PF: > { %p5705_p5 = scmp.eq.s32.totalorder %s5956_s19, 1  ;;  %s5918_s24 = smov [#allocation2]  }
 0x3f5   : > { %s4192_s21 = sshll.u32 %s5918_s24, 4  ;;  %s5919_s22 = smov [#allocation4]   ;;  %s4193_s21 = int_to_ptr.vmem [resolvable:$true] %s4192_s21 }
 0x3f6   : > { %s4203_s23 = sshll.u32 %s5919_s22, 4  ;;  %s5850_s25 = scalar_lea.vmem %s4193_s21, 16  ;;  %s4204_s23 = int_to_ptr.vmem [resolvable:$true] %s4203_s23 }
 0x3f7   : > { %p5851_p6 = scmp.ne.s32.totalorder %s4193_s21, %s5850_s25  ;;  %s5856_s26 = scalar_lea.vmem %s4193_s21, 32 }
 0x3f8   : > { %p5857_p9 = scmp.lt.s32.totalorder %s4193_s21, %s4193_s21  ;;  %p5858_p10 = scmp.lt.s32.totalorder %s5856_s26, %s5850_s25 }
 0x3f9   : > { %p5852_p7 = pnand %p5851_p6, %p5705_p5 }
 0x3fa   : > { %v4171_v5 = vld [vmem:[#allocation2] sm:$0x1]  ;;  %v4174_v59 = vld [vmem:[#allocation4] sm:$0x1]  ;;  %p5859_p11 = por %p5858_p10, %p5857_p9 }
 0x3fb   : > { %v4172_v33 = vadd.f32 %v4171_v5, %v4076_v43  ;;  %v4175_v4 = vadd.f32 %v4174_v59, %v4164_v34  ;;  %p5853_p8 = pneg %p5852_p7 }
 0x3fd   : > { %4173 = vst [vmem:[#allocation2] sm:$0x1] %v4172_v33  ;;  %4176 = vst [vmem:[#allocation4] sm:$0x1] %v4175_v4  ;;  %p5860_p12 = pnand %p5859_p11, %p5853_p8 }
 0x3ff   : > { %5863 = shalt.err (!%p5860_p12)
}
 0x400   : > { %5698 = dma.vmem_to_hbm [thread:$0]  (%p5705_p5), %s4193_s21, 16, %s8007_s4, [#allocation3]  }
 0x401   : > { %s5874_s29 = scalar_lea.vmem %s4204_s23, 16  ;;  %s5880_s6 = scalar_lea.vmem %s4204_s23, 32 }
 0x402   : > { %p5875_p13 = scmp.ne.s32.totalorder %s4204_s23, %s5874_s29  ;;  %p5881_p2 = scmp.lt.s32.totalorder %s4204_s23, %s4204_s23 }
 0x403   : > { %p5882_p3 = scmp.lt.s32.totalorder %s5880_s6, %s5874_s29 }
 0x404   : > { %p5876_p0 = pnand %p5875_p13, %p5705_p5 }
 0x405   : > { %p5883_p4 = por %p5882_p3, %p5881_p2 }
 0x406   : > { %p5877_p1 = pneg %p5876_p0 }
 0x408   : > { %p5884_p6 = pnand %p5883_p4, %p5877_p1 }
 0x40a   : > { %5887 = shalt.err (!%p5884_p6)
}
 0x40b   : > { %5700 = dma.vmem_to_hbm [thread:$0]  (%p5705_p5), %s4204_s23, 16, %s8008_s5, [#allocation5]  }
 0x40c   : > { %5903 = dma.done.wait (%p5705_p5), [#allocation3], 16  }
 0x40d   : > { %5905 = vsyncadd (%p5705_p5), [#allocation3], 4294967280 }
 0x40e   : > { %5907 = dma.done.wait (%p5705_p5), [#allocation5], 16  }
 0x40f   : > { %5909 = vsyncadd (%p5705_p5), [#allocation5], 4294967280 }
 0x410 PF: > { %s18_s18 = sadd.s32 1, %s5912_s18  }
 0x411   : > { %p15_p7 = scmp.ge.s32.totalorder %s18_s18, 4  }
 0x413   :  { %17 = sbr.rel (!%p15_p7) target bundleno = 2 (0x2), region = 91 }
 0x418   :  { %4228 = vsyncpa [#allocation3], 1 }
 0x419   :  { %4230 = vsyncpa [#allocation3 + $0x1], 1 }
 0x41a   :  { %4231 = vsyncpa [#allocation5], 1 }

</bundles_post_ra>
